<compile_context>
chip_gen: v5e
topology: v5e:2x2
jax: 0.10.0
libtpu: 0.0.40
codegen_flags: <defaults>
</compile_context>

<pallas_src>
import functools
import math

import jax
import jax.numpy as jnp
from jax.experimental import pallas as pl
from jax.experimental.pallas import tpu as pltpu


# ---------------------------------------------------------------------------
# Helpers
# ---------------------------------------------------------------------------
_SQRT_2_OVER_PI = math.sqrt(2.0 / math.pi)


def _gelu(x):
    # TODO(synk): PyTorch nn.GELU() is the exact erf form; tanh approx differs by ~1e-3.
    return 0.5 * x * (1.0 + jnp.tanh(_SQRT_2_OVER_PI * (x + 0.044715 * x * x * x)))


def _const_spec(a):
    """Whole-array block for small weights, fixed across the grid."""
    nd = a.ndim
    return pl.BlockSpec(a.shape, lambda *_: (0,) * nd)


# ---------------------------------------------------------------------------
# Kernel 1: MaskDownSampler (2 x [conv4x4/s4 + LN2d + GELU] + 1x1 proj)
#           fused with pix_feat_proj (1x1 conv) and the `+ masks` add.
# Input rows are the B*Hf*Wf output pixels; each row carries its 16x16 mask
# receptive field laid out (sub_kh, sub_kw, in_kh, in_kw) -> 256 lanes (bf16).
# ---------------------------------------------------------------------------
def _maskdown_fuse_kernel(xm_ref, pf_ref,
                          w1_ref, b1_ref, g1_ref, be1_ref, ag_ref,
                          w2_ref, b2_ref, g2_ref, be2_ref,
                          wp_ref, bp_ref, wpx_ref, bpx_ref,
                          o_ref):
    bf16 = jnp.bfloat16

    # --- stage 1: 16 sub-positions x (4x4 conv -> LN over 16 ch -> GELU) as a
    # block-diagonal (256,256) bf16 matmul + grouped LN via a group-mean matrix.
    y = jnp.dot(xm_ref[...], w1_ref[...], preferred_element_type=jnp.float32) + b1_ref[...]
    ag = ag_ref[...]                                                # (256,256) bf16, 1/16 entries
    mu = jnp.dot(y.astype(bf16), ag, preferred_element_type=jnp.float32)     # per-group mean
    d = y - mu
    var = jnp.dot((d * d).astype(bf16), ag, preferred_element_type=jnp.float32)  # two-pass var
    y = _gelu(d * jax.lax.rsqrt(var + 1e-6) * g1_ref[...] + be1_ref[...])

    # --- stage 2: 4x4 conv over the 4x4x16 intermediate (-> 256) + LN + GELU
    h = jnp.dot(y.astype(bf16), w2_ref[...], preferred_element_type=jnp.float32) + b2_ref[...]
    u = jnp.mean(h, axis=-1, keepdims=True)
    v = jnp.mean(jnp.square(h - u), axis=-1, keepdims=True)
    h = _gelu((h - u) * jax.lax.rsqrt(v + 1e-6) * g2_ref[...] + be2_ref[...])

    # --- mask projection (256 -> in_dim) + fused pix_feat 1x1 projection + add
    m = jnp.dot(h.astype(bf16), wp_ref[...], preferred_element_type=jnp.float32) + bp_ref[...]
    px = jnp.dot(pf_ref[...], wpx_ref[...], preferred_element_type=jnp.float32) + bpx_ref[...]
    o_ref[...] = (px + m).astype(o_ref.dtype)


def _run_mask_pix_fuse(prep, xm, pf):
    rows, kp = xm.shape
    cin = pf.shape[1]
    tr = rows if rows <= 1024 else 1024
    weights = [prep['md1_wbig'], prep['md1_bbig'], prep['md1_gbig'], prep['md1_bebig'],
               prep['agrp'],
               prep['md2_w'], prep['md2_b'], prep['md2_g'], prep['md2_be'],
               prep['mdp_w'], prep['mdp_b'], prep['pix_w'], prep['pix_b']]
    in_specs = [pl.BlockSpec((tr, kp), lambda i: (i, 0)),
                pl.BlockSpec((tr, cin), lambda i: (i, 0))] + [_const_spec(w) for w in weights]
    return pl.pallas_call(
        _maskdown_fuse_kernel,
        out_shape=jax.ShapeDtypeStruct((rows, cin), jnp.float32),
        grid=(pl.cdiv(rows, tr),),
        in_specs=in_specs,
        out_specs=pl.BlockSpec((tr, cin), lambda i: (i, 0)),
        compiler_params=pltpu.CompilerParams(dimension_semantics=("parallel",)),
    )(xm, pf, *weights)


# ---------------------------------------------------------------------------
# Kernel 2: one CXBlock (dwconv7x7 + LayerNorm2d + 1x1 MLP + GELU + layer scale
#           + residual), optionally fused with out_proj (last block).
# Grid is (batch, row-strips); the vertically padded image block is reused
# across strips; the 3-px horizontal halo lives in a strip-sized VMEM scratch.
# ---------------------------------------------------------------------------
def _pick_strip_rows(H, W):
    """Strip height: whole image when small; else the smallest divisor of H whose
    flattened strip (SH*W) is a multiple of 128 (lane-dense) and >= 256 rows of work."""
    if H * W <= 1024:
        return H
    for sh in range(1, H + 1):
        if H % sh == 0 and (sh * W) % 128 == 0 and sh * W >= 256:
            return sh
    return H


def _make_cx_kernel(SH, W, C, fuse_out_proj):
    bf16 = jnp.bfloat16

    def core(x_ref, dww_ref, dwb_ref, g_ref, b_ref,
             w1_ref, b1_ref, w2_ref, b2_ref, gm_ref, pad_ref):
        r0 = pl.multiple_of(pl.program_id(1) * SH, SH)
        xs = x_ref[pl.ds(r0, SH + 6), :, :]                 # (SH+6, W, C) strip + vertical halo

        # horizontal 3-px halo: zero only the 3-col borders, single strided interior store
        zcol = jnp.zeros((SH + 6, 3, C), jnp.float32)
        pad_ref[:, 0:3, :] = zcol
        pad_ref[:, 3 + W:, :] = zcol
        pad_ref[:, 3:3 + W, :] = xs

        # depthwise 7x7; accumulator is a strip-sized value (no full-image VMEM streaming)
        # TODO(synk): at full SAM2 scale a per-row fori_loop + pltpu.roll shift formulation
        #             would further cut the 49 strip-wide VMEM reads.
        w = dww_ref[...]                                    # (7, 7, C)
        acc = jnp.zeros((SH, W, C), jnp.float32)
        for dy in range(7):
            for dx in range(7):
                acc = acc + pad_ref[dy:dy + SH, dx:dx + W, :] * w[dy:dy + 1, dx:dx + 1, :]
        acc = acc + dwb_ref[...]                            # (1,1,C) bias

        # (SH, W, C) -> (SH*W, C): layout-free (W % 8 == 0), no bridge scratch
        a = acc.reshape(SH * W, C)
        xres = xs[3:3 + SH, :, :].reshape(SH * W, C)

        # LayerNorm2d: per pixel over channels
        u = jnp.mean(a, axis=-1, keepdims=True)
        v = jnp.mean(jnp.square(a - u), axis=-1, keepdims=True)
        a = (a - u) * jax.lax.rsqrt(v + 1e-6) * g_ref[...] + b_ref[...]

        # pointwise MLP (1x1 convs): bf16 activations/weights, f32 accumulation
        h = _gelu((jnp.dot(a.astype(bf16), w1_ref[...],
                           preferred_element_type=jnp.float32) + b1_ref[...]).astype(bf16))
        y = jnp.dot(h, w2_ref[...], preferred_element_type=jnp.float32) + b2_ref[...]
        return xres + gm_ref[...] * y                       # layer scale + residual, (SH*W, C)

    if fuse_out_proj:
        def kernel(x_ref, dww_ref, dwb_ref, g_ref, b_ref,
                   w1_ref, b1_ref, w2_ref, b2_ref, gm_ref, ow_ref, ob_ref,
                   o_ref, pad_ref):
            res = core(x_ref, dww_ref, dwb_ref, g_ref, b_ref,
                       w1_ref, b1_ref, w2_ref, b2_ref, gm_ref, pad_ref)
            # out_proj fused into the last CXBlock
            # TODO(synk): Cout < 128 -> lane-sparse store; a transposed (Cout, HW) block would fix it.
            feat = jnp.dot(res.astype(bf16), ow_ref[...],
                           preferred_element_type=jnp.float32) + ob_ref[...]
            o_ref[...] = feat.astype(o_ref.dtype)
    else:
        def kernel(x_ref, dww_ref, dwb_ref, g_ref, b_ref,
                   w1_ref, b1_ref, w2_ref, b2_ref, gm_ref,
                   o_ref, pad_ref):
            res = core(x_ref, dww_ref, dwb_ref, g_ref, b_ref,
                       w1_ref, b1_ref, w2_ref, b2_ref, gm_ref, pad_ref)
            o_ref[...] = res.reshape(SH, W, C).astype(o_ref.dtype)
    return kernel


def _run_cx_block(blk, xpad, H, W, out_w=None, out_b=None):
    B, Hp, _, C = xpad.shape
    assert Hp == H + 6
    SH = _pick_strip_rows(H, W)
    ns = H // SH
    fuse = out_w is not None

    weights = [blk['dw_w'], blk['dw_b'], blk['ln_g'], blk['ln_b'],
               blk['w1'], blk['b1'], blk['w2'], blk['b2'], blk['gamma']]
    if fuse:
        weights += [out_w, out_b]
        cd = out_w.shape[1]
        out_shape = jax.ShapeDtypeStruct((B, H * W, cd), jnp.float32)
        out_spec = pl.BlockSpec((None, SH * W, cd), lambda b, s: (b, s, 0))
    else:
        out_shape = jax.ShapeDtypeStruct((B, H, W, C), jnp.float32)
        out_spec = pl.BlockSpec((None, SH, W, C), lambda b, s: (b, s, 0, 0))

    kernel = _make_cx_kernel(SH, W, C, fuse)
    # Input block = full vertically-padded image; index_map constant in the strip axis,
    # so Pallas fetches it once per batch element and reuses it across strips.
    in_specs = [pl.BlockSpec((None, Hp, W, C), lambda b, s: (b, 0, 0, 0))] + \
               [_const_spec(w) for w in weights]
    return pl.pallas_call(
        kernel,
        out_shape=out_shape,
        grid=(B, ns),
        in_specs=in_specs,
        out_specs=out_spec,
        scratch_shapes=[pltpu.VMEM((SH + 6, W + 6, C), jnp.float32)],   # strip halo pad
        compiler_params=pltpu.CompilerParams(
            dimension_semantics=("parallel", "parallel"),
            vmem_limit_bytes=64 * 1024 * 1024),
    )(xpad, *weights)


# ---------------------------------------------------------------------------
# PositionEmbeddingSine: input-independent constant -> hoisted out of Pallas
# (computed once per (H, W, C), cached, returned NCHW-ready).
# ---------------------------------------------------------------------------
@functools.lru_cache(maxsize=8)
def _pos_embed_sine(H, W, C):
    npf = C // 2
    eps = 1e-6
    scale = 2.0 * math.pi
    y_embed = (jnp.arange(H, dtype=jnp.float32) + 1.0) / (H + eps) * scale
    x_embed = (jnp.arange(W, dtype=jnp.float32) + 1.0) / (W + eps) * scale
    idx = jnp.arange(npf)
    dim_t = 10000.0 ** (2.0 * (idx // 2).astype(jnp.float32) / npf)
    py = y_embed[:, None, None] / dim_t                    # (H, 1, npf)
    px = x_embed[None, :, None] / dim_t                    # (1, W, npf)
    even = (idx % 2) == 0
    py = jnp.where(even, jnp.sin(py), jnp.cos(py))
    px = jnp.where(even, jnp.sin(px), jnp.cos(px))
    emb = jnp.concatenate([jnp.broadcast_to(py, (H, W, npf)),
                           jnp.broadcast_to(px, (H, W, npf))], axis=-1)   # (H, W, C)
    return jnp.transpose(emb, (2, 0, 1))                   # (C, H, W)


# ---------------------------------------------------------------------------
# Deterministic synthetic parameters + one-time kernel-ready preprocessing
# ---------------------------------------------------------------------------
def init_params(key, in_dim=32, out_dim=16, fuser_layers=2):
    keys = iter(jax.random.split(key, 64))

    def w(shape, scale=0.05):
        return (scale * jax.random.normal(next(keys), shape)).astype(jnp.float32)

    p = {}
    # MaskDownSampler: Conv(1->16, 4x4/s4)+LN+GELU, Conv(16->256, 4x4/s4)+LN+GELU, Conv1x1(256->in_dim)
    p['md1_w'] = w((16, 16)); p['md1_b'] = w((1, 16))
    p['md1_g'] = 1.0 + w((1, 16)); p['md1_be'] = w((1, 16))
    p['md2_w'] = w((256, 256)); p['md2_b'] = w((1, 256))
    p['md2_g'] = 1.0 + w((1, 256)); p['md2_be'] = w((1, 256))
    p['mdp_w'] = w((256, in_dim)); p['mdp_b'] = w((1, in_dim))
    # pix_feat_proj: Conv1x1(in_dim -> in_dim)
    p['pix_w'] = w((in_dim, in_dim)); p['pix_b'] = w((1, in_dim))
    # Fuser: CXBlocks
    p['cx'] = []
    for _ in range(fuser_layers):
        p['cx'].append(dict(
            dw_w=w((7, 7, in_dim)), dw_b=w((1, 1, in_dim)),
            ln_g=1.0 + w((1, in_dim)), ln_b=w((1, in_dim)),
            w1=w((in_dim, 4 * in_dim)), b1=w((1, 4 * in_dim)),
            w2=w((4 * in_dim, in_dim)), b2=w((1, in_dim)),
            gamma=w((1, in_dim), scale=0.1),
        ))
    # out_proj: Conv1x1(in_dim -> out_dim)
    p['out_w'] = w((in_dim, out_dim)); p['out_b'] = w((1, out_dim))
    return p


def prepare_params(params):
    """One-time weight preprocessing: block-diag stage-1 conv, bf16 grouped-LN mean matrix,
    bf16 copies of all matmul weights (f32 accumulation stays in-kernel).
    NOTE: importing real PyTorch Conv2d weights requires an explicit lane-order permutation here."""
    bf16 = jnp.bfloat16
    prep = {}
    eye16 = jnp.eye(16, dtype=jnp.float32)
    prep['md1_wbig'] = jnp.kron(eye16, params['md1_w']).astype(bf16)               # (256,256)
    prep['md1_bbig'] = jnp.tile(params['md1_b'], (1, 16))
    prep['md1_gbig'] = jnp.tile(params['md1_g'], (1, 16))
    prep['md1_bebig'] = jnp.tile(params['md1_be'], (1, 16))
    prep['agrp'] = jnp.kron(eye16, jnp.full((16, 16), 1.0 / 16.0, jnp.float32)).astype(bf16)
    prep['md2_w'] = params['md2_w'].astype(bf16)
    prep['md2_b'] = params['md2_b']; prep['md2_g'] = params['md2_g']; prep['md2_be'] = params['md2_be']
    prep['mdp_w'] = params['mdp_w'].astype(bf16); prep['mdp_b'] = params['mdp_b']
    prep['pix_w'] = params['pix_w'].astype(bf16); prep['pix_b'] = params['pix_b']
    prep['cx'] = []
    for blk in params['cx']:
        prep['cx'].append(dict(
            dw_w=blk['dw_w'], dw_b=blk['dw_b'],
            ln_g=blk['ln_g'], ln_b=blk['ln_b'],
            w1=blk['w1'].astype(bf16), b1=blk['b1'],
            w2=blk['w2'].astype(bf16), b2=blk['b2'],
            gamma=blk['gamma'],
        ))
    prep['out_w'] = params['out_w'].astype(bf16); prep['out_b'] = params['out_b']
    prep['in_dim'] = params['pix_w'].shape[0]
    prep['out_dim'] = params['out_w'].shape[1]
    return prep


# ---------------------------------------------------------------------------
# Forward (equivalent to SamVideoMemoryEncoderModel.forward)
# ---------------------------------------------------------------------------
def memory_encoder_forward(prep, pix_feat, mask_for_mem, skip_mask_sigmoid=True):
    B, Cin, Hf, Wf = pix_feat.shape
    assert Cin == prep['in_dim']
    assert mask_for_mem.shape[2] == 16 * Hf and mask_for_mem.shape[3] == 16 * Wf
    assert len(prep['cx']) >= 1

    masks = mask_for_mem[:, 0, :, :].astype(jnp.float32)            # (B, 16H, 16W)
    if not skip_mask_sigmoid:
        masks = jax.nn.sigmoid(masks)

    # 16x16 receptive-field patches (sub_kh, sub_kw, in_kh, in_kw) lane order, in bf16 so the
    # dominant kernel-1 inputs are half-width in HBM (layout-only XLA glue).
    xm = masks.astype(jnp.bfloat16).reshape(B, Hf, 4, 4, Wf, 4, 4)
    xm = xm.transpose(0, 1, 4, 2, 5, 3, 6).reshape(B * Hf * Wf, 256)
    pf = jnp.transpose(pix_feat, (0, 2, 3, 1)).reshape(B * Hf * Wf, Cin).astype(jnp.bfloat16)

    # MaskDownSampler + pix_feat_proj + add, in one row-tiled kernel
    x = _run_mask_pix_fuse(prep, xm, pf).reshape(B, Hf, Wf, Cin)     # NHWC residual stream (f32)

    # Fuser: fused CXBlocks (grid over batch x row-strips); out_proj folded into the last one
    n_blocks = len(prep['cx'])
    for bi, blk in enumerate(prep['cx']):
        last = bi == n_blocks - 1
        xpad = jnp.pad(x, ((0, 0), (3, 3), (0, 0), (0, 0)))          # vertical halo only
        x = _run_cx_block(blk, xpad, Hf, Wf,
                          out_w=prep['out_w'] if last else None,
                          out_b=prep['out_b'] if last else None)
        # middle blocks return (B, Hf, Wf, C); the last returns (B, Hf*Wf, out_dim)

    Cout = prep['out_dim']
    feat = x.reshape(B, Hf, Wf, Cout)
    vision_features = jnp.transpose(feat, (0, 3, 1, 2))              # (B, out_dim, H, W) NCHW

    # PositionEmbeddingSine: constant, precomputed & cached (no per-call kernel)
    pos = _pos_embed_sine(Hf, Wf, Cout)                              # (Cout, H, W)
    vision_pos_enc = [jnp.broadcast_to(pos[None], (B, Cout, Hf, Wf))]
    return vision_features, vision_pos_enc


if __name__ == "__main__":
    key = jax.random.PRNGKey(0)
    kp, kx, km = jax.random.split(key, 3)

    in_dim, out_dim = 32, 16          # small stand-ins for SAM2's 256 / 64
    B, Hf, Wf = 2, 8, 8               # pix_feat spatial; mask is 16x larger per side

    params = init_params(kp, in_dim=in_dim, out_dim=out_dim, fuser_layers=2)
    prepared = prepare_params(params)

    pix_feat = jax.random.normal(kx, (B, in_dim, Hf, Wf), dtype=jnp.float32)
    mask_for_mem = jax.random.normal(km, (B, 1, Hf * 16, Wf * 16), dtype=jnp.float32)

    # skip_mask_sigmoid defaults to torch.tensor(1) in the PyTorch module -> True here.
    feats, pos_list = memory_encoder_forward(prepared, pix_feat, mask_for_mem,
                                             skip_mask_sigmoid=True)
    jax.block_until_ready((feats, pos_list))

    assert feats.shape == (B, out_dim, Hf, Wf)
    assert pos_list[0].shape == (B, out_dim, Hf, Wf)
    assert bool(jnp.all(jnp.isfinite(feats))) and bool(jnp.all(jnp.isfinite(pos_list[0])))
    print("KERNEL_OK")
</pallas_src>

<mosaic_0001>
module attributes {stable_mosaic.version = 11 : i64} {
  func.func @_maskdown_fuse_kernel(%arg0: i32, %arg1: memref<128x256xbf16, #tpu.memory_space<vmem>>, %arg2: memref<128x32xbf16, #tpu.memory_space<vmem>>, %arg3: memref<256x256xbf16, #tpu.memory_space<vmem>>, %arg4: memref<1x256xf32, #tpu.memory_space<vmem>>, %arg5: memref<1x256xf32, #tpu.memory_space<vmem>>, %arg6: memref<1x256xf32, #tpu.memory_space<vmem>>, %arg7: memref<256x256xbf16, #tpu.memory_space<vmem>>, %arg8: memref<256x256xbf16, #tpu.memory_space<vmem>>, %arg9: memref<1x256xf32, #tpu.memory_space<vmem>>, %arg10: memref<1x256xf32, #tpu.memory_space<vmem>>, %arg11: memref<1x256xf32, #tpu.memory_space<vmem>>, %arg12: memref<256x32xbf16, #tpu.memory_space<vmem>>, %arg13: memref<1x32xf32, #tpu.memory_space<vmem>>, %arg14: memref<32x32xbf16, #tpu.memory_space<vmem>>, %arg15: memref<1x32xf32, #tpu.memory_space<vmem>>, %arg16: memref<128x32xf32, #tpu.memory_space<vmem>>) attributes {dimension_semantics = [#tpu.dimension_semantics<parallel>], iteration_bounds = array<i64: 1>, scalar_prefetch = 0 : i64, scratch_operands = 0 : i64, tpu.core_type = #tpu.core_type<tc>, window_params = [{transform_indices = @transform_0, window_bounds = array<i64: 128, 256>}, {transform_indices = @transform_1, window_bounds = array<i64: 128, 32>}, {pipeline_mode = #tpu.pipeline_mode<synchronous>, transform_indices = @transform_2, window_bounds = array<i64: 256, 256>}, {pipeline_mode = #tpu.pipeline_mode<synchronous>, transform_indices = @transform_3, window_bounds = array<i64: 1, 256>}, {pipeline_mode = #tpu.pipeline_mode<synchronous>, transform_indices = @transform_4, window_bounds = array<i64: 1, 256>}, {pipeline_mode = #tpu.pipeline_mode<synchronous>, transform_indices = @transform_5, window_bounds = array<i64: 1, 256>}, {pipeline_mode = #tpu.pipeline_mode<synchronous>, transform_indices = @transform_6, window_bounds = array<i64: 256, 256>}, {pipeline_mode = #tpu.pipeline_mode<synchronous>, transform_indices = @transform_7, window_bounds = array<i64: 256, 256>}, {pipeline_mode = #tpu.pipeline_mode<synchronous>, transform_indices = @transform_8, window_bounds = array<i64: 1, 256>}, {pipeline_mode = #tpu.pipeline_mode<synchronous>, transform_indices = @transform_9, window_bounds = array<i64: 1, 256>}, {pipeline_mode = #tpu.pipeline_mode<synchronous>, transform_indices = @transform_10, window_bounds = array<i64: 1, 256>}, {pipeline_mode = #tpu.pipeline_mode<synchronous>, transform_indices = @transform_11, window_bounds = array<i64: 256, 32>}, {pipeline_mode = #tpu.pipeline_mode<synchronous>, transform_indices = @transform_12, window_bounds = array<i64: 1, 32>}, {pipeline_mode = #tpu.pipeline_mode<synchronous>, transform_indices = @transform_13, window_bounds = array<i64: 32, 32>}, {pipeline_mode = #tpu.pipeline_mode<synchronous>, transform_indices = @transform_14, window_bounds = array<i64: 1, 32>}, {transform_indices = @transform_15, window_bounds = array<i64: 128, 32>}]} {
    %c0 = arith.constant 0 : index
    %c0_0 = arith.constant 0 : index
    %0 = vector.load %arg1[%c0, %c0_0] : memref<128x256xbf16, #tpu.memory_space<vmem>>, vector<128x256xbf16>
    %c0_1 = arith.constant 0 : index
    %c0_2 = arith.constant 0 : index
    %1 = vector.load %arg3[%c0_1, %c0_2] : memref<256x256xbf16, #tpu.memory_space<vmem>>, vector<256x256xbf16>
    %cst = arith.constant dense<0.000000e+00> : vector<128x256xf32>
    %2 = tpu.matmul %0, %1, %cst {dimension_numbers = #tpu.dot_dimension_numbers<[1], [0], [0], [1], [0, 0, 1, 1], [], []>} : vector<128x256xbf16>, vector<256x256xbf16>, vector<128x256xf32> -> vector<128x256xf32>
    %c0_3 = arith.constant 0 : index
    %c0_4 = arith.constant 0 : index
    %3 = vector.load %arg4[%c0_3, %c0_4] : memref<1x256xf32, #tpu.memory_space<vmem>>, vector<1x256xf32>
    %4 = vector.broadcast %3 : vector<1x256xf32> to vector<128x256xf32>
    %5 = arith.addf %2, %4 : vector<128x256xf32>
    %c0_5 = arith.constant 0 : index
    %c0_6 = arith.constant 0 : index
    %6 = vector.load %arg7[%c0_5, %c0_6] : memref<256x256xbf16, #tpu.memory_space<vmem>>, vector<256x256xbf16>
    %7 = arith.truncf %5 : vector<128x256xf32> to vector<128x256xbf16>
    %cst_7 = arith.constant dense<0.000000e+00> : vector<128x256xf32>
    %8 = tpu.matmul %7, %6, %cst_7 {dimension_numbers = #tpu.dot_dimension_numbers<[1], [0], [0], [1], [0, 0, 1, 1], [], []>} : vector<128x256xbf16>, vector<256x256xbf16>, vector<128x256xf32> -> vector<128x256xf32>
    %9 = arith.subf %5, %8 : vector<128x256xf32>
    %10 = arith.mulf %9, %9 : vector<128x256xf32>
    %11 = arith.truncf %10 : vector<128x256xf32> to vector<128x256xbf16>
    %cst_8 = arith.constant dense<0.000000e+00> : vector<128x256xf32>
    %12 = tpu.matmul %11, %6, %cst_8 {dimension_numbers = #tpu.dot_dimension_numbers<[1], [0], [0], [1], [0, 0, 1, 1], [], []>} : vector<128x256xbf16>, vector<256x256xbf16>, vector<128x256xf32> -> vector<128x256xf32>
    %cst_9 = arith.constant 9.99999997E-7 : f32
    %13 = vector.broadcast %cst_9 : f32 to vector<128x256xf32>
    %14 = arith.addf %12, %13 : vector<128x256xf32>
    %15 = math.rsqrt %14 : vector<128x256xf32>
    %16 = arith.mulf %9, %15 : vector<128x256xf32>
    %c0_10 = arith.constant 0 : index
    %c0_11 = arith.constant 0 : index
    %17 = vector.load %arg5[%c0_10, %c0_11] : memref<1x256xf32, #tpu.memory_space<vmem>>, vector<1x256xf32>
    %18 = vector.broadcast %17 : vector<1x256xf32> to vector<128x256xf32>
    %19 = arith.mulf %16, %18 : vector<128x256xf32>
    %c0_12 = arith.constant 0 : index
    %c0_13 = arith.constant 0 : index
    %20 = vector.load %arg6[%c0_12, %c0_13] : memref<1x256xf32, #tpu.memory_space<vmem>>, vector<1x256xf32>
    %21 = vector.broadcast %20 : vector<1x256xf32> to vector<128x256xf32>
    %22 = arith.addf %19, %21 : vector<128x256xf32>
    %cst_14 = arith.constant 5.000000e-01 : f32
    %23 = vector.broadcast %cst_14 : f32 to vector<128x256xf32>
    %24 = arith.mulf %23, %22 : vector<128x256xf32>
    %cst_15 = arith.constant 4.471500e-02 : f32
    %25 = vector.broadcast %cst_15 : f32 to vector<128x256xf32>
    %26 = arith.mulf %25, %22 : vector<128x256xf32>
    %27 = arith.mulf %26, %22 : vector<128x256xf32>
    %28 = arith.mulf %27, %22 : vector<128x256xf32>
    %29 = arith.addf %22, %28 : vector<128x256xf32>
    %cst_16 = arith.constant 0.797884583 : f32
    %30 = vector.broadcast %cst_16 : f32 to vector<128x256xf32>
    %31 = arith.mulf %30, %29 : vector<128x256xf32>
    %32 = math.tanh %31 : vector<128x256xf32>
    %cst_17 = arith.constant 1.000000e+00 : f32
    %33 = vector.broadcast %cst_17 : f32 to vector<128x256xf32>
    %34 = arith.addf %33, %32 : vector<128x256xf32>
    %35 = arith.mulf %24, %34 : vector<128x256xf32>
    %36 = arith.truncf %35 : vector<128x256xf32> to vector<128x256xbf16>
    %c0_18 = arith.constant 0 : index
    %c0_19 = arith.constant 0 : index
    %37 = vector.load %arg8[%c0_18, %c0_19] : memref<256x256xbf16, #tpu.memory_space<vmem>>, vector<256x256xbf16>
    %cst_20 = arith.constant dense<0.000000e+00> : vector<128x256xf32>
    %38 = tpu.matmul %36, %37, %cst_20 {dimension_numbers = #tpu.dot_dimension_numbers<[1], [0], [0], [1], [0, 0, 1, 1], [], []>} : vector<128x256xbf16>, vector<256x256xbf16>, vector<128x256xf32> -> vector<128x256xf32>
    %c0_21 = arith.constant 0 : index
    %c0_22 = arith.constant 0 : index
    %39 = vector.load %arg9[%c0_21, %c0_22] : memref<1x256xf32, #tpu.memory_space<vmem>>, vector<1x256xf32>
    %40 = vector.broadcast %39 : vector<1x256xf32> to vector<128x256xf32>
    %41 = arith.addf %38, %40 : vector<128x256xf32>
    %cst_23 = arith.constant dense<0.000000e+00> : vector<128xf32>
    %42 = vector.multi_reduction <add>, %41, %cst_23 [1] : vector<128x256xf32> to vector<128xf32>
    %43 = vector.shape_cast %42 : vector<128xf32> to vector<128x1xf32>
    %cst_24 = arith.constant 2.560000e+02 : f32
    %44 = vector.broadcast %cst_24 : f32 to vector<128x1xf32>
    %45 = arith.divf %43, %44 : vector<128x1xf32>
    %46 = vector.broadcast %45 : vector<128x1xf32> to vector<128x256xf32>
    %47 = arith.subf %41, %46 : vector<128x256xf32>
    %48 = arith.mulf %47, %47 : vector<128x256xf32>
    %cst_25 = arith.constant dense<0.000000e+00> : vector<128xf32>
    %49 = vector.multi_reduction <add>, %48, %cst_25 [1] : vector<128x256xf32> to vector<128xf32>
    %50 = vector.shape_cast %49 : vector<128xf32> to vector<128x1xf32>
    %cst_26 = arith.constant 2.560000e+02 : f32
    %51 = vector.broadcast %cst_26 : f32 to vector<128x1xf32>
    %52 = arith.divf %50, %51 : vector<128x1xf32>
    %53 = vector.broadcast %45 : vector<128x1xf32> to vector<128x256xf32>
    %54 = arith.subf %41, %53 : vector<128x256xf32>
    %cst_27 = arith.constant 9.99999997E-7 : f32
    %55 = vector.broadcast %cst_27 : f32 to vector<128x1xf32>
    %56 = arith.addf %52, %55 : vector<128x1xf32>
    %57 = math.rsqrt %56 : vector<128x1xf32>
    %58 = vector.broadcast %57 : vector<128x1xf32> to vector<128x256xf32>
    %59 = arith.mulf %54, %58 : vector<128x256xf32>
    %c0_28 = arith.constant 0 : index
    %c0_29 = arith.constant 0 : index
    %60 = vector.load %arg10[%c0_28, %c0_29] : memref<1x256xf32, #tpu.memory_space<vmem>>, vector<1x256xf32>
    %61 = vector.broadcast %60 : vector<1x256xf32> to vector<128x256xf32>
    %62 = arith.mulf %59, %61 : vector<128x256xf32>
    %c0_30 = arith.constant 0 : index
    %c0_31 = arith.constant 0 : index
    %63 = vector.load %arg11[%c0_30, %c0_31] : memref<1x256xf32, #tpu.memory_space<vmem>>, vector<1x256xf32>
    %64 = vector.broadcast %63 : vector<1x256xf32> to vector<128x256xf32>
    %65 = arith.addf %62, %64 : vector<128x256xf32>
    %cst_32 = arith.constant 5.000000e-01 : f32
    %66 = vector.broadcast %cst_32 : f32 to vector<128x256xf32>
    %67 = arith.mulf %66, %65 : vector<128x256xf32>
    %cst_33 = arith.constant 4.471500e-02 : f32
    %68 = vector.broadcast %cst_33 : f32 to vector<128x256xf32>
    %69 = arith.mulf %68, %65 : vector<128x256xf32>
    %70 = arith.mulf %69, %65 : vector<128x256xf32>
    %71 = arith.mulf %70, %65 : vector<128x256xf32>
    %72 = arith.addf %65, %71 : vector<128x256xf32>
    %cst_34 = arith.constant 0.797884583 : f32
    %73 = vector.broadcast %cst_34 : f32 to vector<128x256xf32>
    %74 = arith.mulf %73, %72 : vector<128x256xf32>
    %75 = math.tanh %74 : vector<128x256xf32>
    %cst_35 = arith.constant 1.000000e+00 : f32
    %76 = vector.broadcast %cst_35 : f32 to vector<128x256xf32>
    %77 = arith.addf %76, %75 : vector<128x256xf32>
    %78 = arith.mulf %67, %77 : vector<128x256xf32>
    %79 = arith.truncf %78 : vector<128x256xf32> to vector<128x256xbf16>
    %c0_36 = arith.constant 0 : index
    %c0_37 = arith.constant 0 : index
    %80 = vector.load %arg12[%c0_36, %c0_37] : memref<256x32xbf16, #tpu.memory_space<vmem>>, vector<256x32xbf16>
    %cst_38 = arith.constant dense<0.000000e+00> : vector<128x32xf32>
    %81 = tpu.matmul %79, %80, %cst_38 {dimension_numbers = #tpu.dot_dimension_numbers<[1], [0], [0], [1], [0, 0, 1, 1], [], []>} : vector<128x256xbf16>, vector<256x32xbf16>, vector<128x32xf32> -> vector<128x32xf32>
    %c0_39 = arith.constant 0 : index
    %c0_40 = arith.constant 0 : index
    %82 = vector.load %arg13[%c0_39, %c0_40] : memref<1x32xf32, #tpu.memory_space<vmem>>, vector<1x32xf32>
    %83 = vector.broadcast %82 : vector<1x32xf32> to vector<128x32xf32>
    %84 = arith.addf %81, %83 : vector<128x32xf32>
    %c0_41 = arith.constant 0 : index
    %c0_42 = arith.constant 0 : index
    %85 = vector.load %arg2[%c0_41, %c0_42] : memref<128x32xbf16, #tpu.memory_space<vmem>>, vector<128x32xbf16>
    %c0_43 = arith.constant 0 : index
    %c0_44 = arith.constant 0 : index
    %86 = vector.load %arg14[%c0_43, %c0_44] : memref<32x32xbf16, #tpu.memory_space<vmem>>, vector<32x32xbf16>
    %cst_45 = arith.constant dense<0.000000e+00> : vector<128x32xf32>
    %87 = tpu.matmul %85, %86, %cst_45 {dimension_numbers = #tpu.dot_dimension_numbers<[1], [0], [0], [1], [0, 0, 1, 1], [], []>} : vector<128x32xbf16>, vector<32x32xbf16>, vector<128x32xf32> -> vector<128x32xf32>
    %c0_46 = arith.constant 0 : index
    %c0_47 = arith.constant 0 : index
    %88 = vector.load %arg15[%c0_46, %c0_47] : memref<1x32xf32, #tpu.memory_space<vmem>>, vector<1x32xf32>
    %89 = vector.broadcast %88 : vector<1x32xf32> to vector<128x32xf32>
    %90 = arith.addf %87, %89 : vector<128x32xf32>
    %91 = arith.addf %90, %84 : vector<128x32xf32>
    %c0_48 = arith.constant 0 : index
    %c0_49 = arith.constant 0 : index
    %92 = vector.load %arg16[%c0_48, %c0_49] : memref<128x32xf32, #tpu.memory_space<vmem>>, vector<128x32xf32>
    tpu.vector_store %arg16[%c0_48, %c0_49], %91 {strides = array<i32>} : memref<128x32xf32, #tpu.memory_space<vmem>>, vector<128x32xf32>,
    return
  }
  func.func @transform_0(%arg0: i32) -> (i32, i32) {
    %c0_i32 = arith.constant 0 : i32
    %c0_i32_0 = arith.constant 0 : i32
    return %arg0, %c0_i32 : i32, i32
  }
  func.func @transform_1(%arg0: i32) -> (i32, i32) {
    %c0_i32 = arith.constant 0 : i32
    %c0_i32_0 = arith.constant 0 : i32
    return %arg0, %c0_i32 : i32, i32
  }
  func.func @transform_2(%arg0: i32) -> (i32, i32) {
    %c0_i32 = arith.constant 0 : i32
    %c0_i32_0 = arith.constant 0 : i32
    %c0_i32_1 = arith.constant 0 : i32
    return %c0_i32, %c0_i32_0 : i32, i32
  }
  func.func @transform_3(%arg0: i32) -> (i32, i32) {
    %c0_i32 = arith.constant 0 : i32
    %c0_i32_0 = arith.constant 0 : i32
    %c0_i32_1 = arith.constant 0 : i32
    return %c0_i32, %c0_i32_0 : i32, i32
  }
  func.func @transform_4(%arg0: i32) -> (i32, i32) {
    %c0_i32 = arith.constant 0 : i32
    %c0_i32_0 = arith.constant 0 : i32
    %c0_i32_1 = arith.constant 0 : i32
    return %c0_i32, %c0_i32_0 : i32, i32
  }
  func.func @transform_5(%arg0: i32) -> (i32, i32) {
    %c0_i32 = arith.constant 0 : i32
    %c0_i32_0 = arith.constant 0 : i32
    %c0_i32_1 = arith.constant 0 : i32
    return %c0_i32, %c0_i32_0 : i32, i32
  }
  func.func @transform_6(%arg0: i32) -> (i32, i32) {
    %c0_i32 = arith.constant 0 : i32
    %c0_i32_0 = arith.constant 0 : i32
    %c0_i32_1 = arith.constant 0 : i32
    return %c0_i32, %c0_i32_0 : i32, i32
  }
  func.func @transform_7(%arg0: i32) -> (i32, i32) {
    %c0_i32 = arith.constant 0 : i32
    %c0_i32_0 = arith.constant 0 : i32
    %c0_i32_1 = arith.constant 0 : i32
    return %c0_i32, %c0_i32_0 : i32, i32
  }
  func.func @transform_8(%arg0: i32) -> (i32, i32) {
    %c0_i32 = arith.constant 0 : i32
    %c0_i32_0 = arith.constant 0 : i32
    %c0_i32_1 = arith.constant 0 : i32
    return %c0_i32, %c0_i32_0 : i32, i32
  }
  func.func @transform_9(%arg0: i32) -> (i32, i32) {
    %c0_i32 = arith.constant 0 : i32
    %c0_i32_0 = arith.constant 0 : i32
    %c0_i32_1 = arith.constant 0 : i32
    return %c0_i32, %c0_i32_0 : i32, i32
  }
  func.func @transform_10(%arg0: i32) -> (i32, i32) {
    %c0_i32 = arith.constant 0 : i32
    %c0_i32_0 = arith.constant 0 : i32
    %c0_i32_1 = arith.constant 0 : i32
    return %c0_i32, %c0_i32_0 : i32, i32
  }
  func.func @transform_11(%arg0: i32) -> (i32, i32) {
    %c0_i32 = arith.constant 0 : i32
    %c0_i32_0 = arith.constant 0 : i32
    %c0_i32_1 = arith.constant 0 : i32
    return %c0_i32, %c0_i32_0 : i32, i32
  }
  func.func @transform_12(%arg0: i32) -> (i32, i32) {
    %c0_i32 = arith.constant 0 : i32
    %c0_i32_0 = arith.constant 0 : i32
    %c0_i32_1 = arith.constant 0 : i32
    return %c0_i32, %c0_i32_0 : i32, i32
  }
  func.func @transform_13(%arg0: i32) -> (i32, i32) {
    %c0_i32 = arith.constant 0 : i32
    %c0_i32_0 = arith.constant 0 : i32
    %c0_i32_1 = arith.constant 0 : i32
    return %c0_i32, %c0_i32_0 : i32, i32
  }
  func.func @transform_14(%arg0: i32) -> (i32, i32) {
    %c0_i32 = arith.constant 0 : i32
    %c0_i32_0 = arith.constant 0 : i32
    %c0_i32_1 = arith.constant 0 : i32
    return %c0_i32, %c0_i32_0 : i32, i32
  }
  func.func @transform_15(%arg0: i32) -> (i32, i32) {
    %c0_i32 = arith.constant 0 : i32
    %c0_i32_0 = arith.constant 0 : i32
    return %arg0, %c0_i32 : i32, i32
  }
}

</mosaic_0001>

<bundles_post_ra>
// kernel: tpu_custom_call.1
= control target key start
LH: loop header
LB: loop body
LE: loop exit
PB: predicated region body
PF: predicated region fallthrough
CT: control target
= control target key end

     0   :  { %20 = vsyncpa [#allocation3], 0  ;;  %s7223_s0 = inlined_call_operand.vmem [shape: bf16[128,256], index: 0, kind: input, shape index: {}]   ;;  %s7224_s1 = inlined_call_operand.vmem [shape: bf16[128,32], index: 1, kind: input, shape index: {}]   ;;  %s7225_s2 = inlined_call_operand.hbm [shape: bf16[256,256], index: 2, kind: input, shape index: {}]   ;;  %s7226_s3 = inlined_call_operand.vmem [shape: f32[1,256], index: 3, kind: input, shape index: {}]   ;;  %s7227_s4 = inlined_call_operand.vmem [shape: f32[1,256], index: 4, kind: input, shape index: {}]   ;;  %s7228_s5 = inlined_call_operand.vmem [shape: f32[1,256], index: 5, kind: input, shape index: {}]   ;;  %s7229_s6 = inlined_call_operand.hbm [shape: bf16[256,256], index: 6, kind: input, shape index: {}]   ;;  %s7230_s7 = inlined_call_operand.hbm [shape: bf16[256,256], index: 7, kind: input, shape index: {}]   ;;  %s7231_s8 = inlined_call_operand.vmem [shape: f32[1,256], index: 8, kind: input, shape index: {}]   ;;  %s7232_s9 = inlined_call_operand.vmem [shape: f32[1,256], index: 9, kind: input, shape index: {}]   ;;  %s7233_s10 = inlined_call_operand.vmem [shape: f32[1,256], index: 10, kind: input, shape index: {}]   ;;  %s7234_s11 = inlined_call_operand.vmem [shape: bf16[256,32], index: 11, kind: input, shape index: {}]   ;;  %s7235_s12 = inlined_call_operand.vmem [shape: f32[1,32], index: 12, kind: input, shape index: {}]   ;;  %s7236_s13 = inlined_call_operand.vmem [shape: bf16[32,32], index: 13, kind: input, shape index: {}]   ;;  %s7237_s14 = inlined_call_operand.vmem [shape: f32[1,32], index: 14, kind: input, shape index: {}]   ;;  %s7238_s15 = inlined_call_operand.vmem [shape: f32[128,32], index: 15, kind: output, shape index: {}]  }
   0x1   :  { %21 = vsyncpa [#allocation5], 0  ;;  %s49_s20 = sshll.u32 %s7229_s6, 4  ;;  %s4631_s21 = smov [#allocation4]   ;;  %s50_s20 = int_to_ptr.hbm [resolvable:$true] %s49_s20 }
   0x2   :  { %s51_s22 = sshll.u32 %s4631_s21, 4  ;;  %s30_s25 = sshll.u32 %s7225_s2, 4  ;;  %s52_s22 = int_to_ptr.vmem [resolvable:$true] %s51_s22  ;;  %s31_s25 = int_to_ptr.hbm [resolvable:$true] %s30_s25 }
   0x3   :  { %s4632_s26 = smov 128   ;;  %s4633_s27 = smov 8  }
   0x4   :  { %57 = dma.hbm_to_vmem [thread:$0]  %s50_s20, 4096, %s52_s22, [#allocation5], %s4632_s26, %s4632_s26, %s4633_s27  }
   0x5   :  { %s4634_s28 = smov [#allocation2]   ;;  %s62_s17 = sshll.u32 %s7230_s7, 4  ;;  %s63_s17 = int_to_ptr.hbm [resolvable:$true] %s62_s17 }
   0x6   :  { %s32_s29 = sshll.u32 %s4634_s28, 4  ;;  %s4635_s6 = smov [#allocation6]   ;;  %s33_s29 = int_to_ptr.vmem [resolvable:$true] %s32_s29 }
   0x7   :  { %38 = dma.hbm_to_vmem [thread:$0]  %s31_s25, 4096, %s33_s29, [#allocation3], %s4632_s26, %s4632_s26, %s4633_s27  }
   0x8   :  { %s64_s18 = sshll.u32 %s4635_s6, 4  ;;  %s65_s18 = int_to_ptr.vmem [resolvable:$true] %s64_s18 }
   0x9   :  { %70 = dma.hbm_to_vmem [thread:$0]  %s63_s17, 4096, %s65_s18, [#allocation5], %s4632_s26, %s4632_s26, %s4633_s27  }
   0xa   :  { %4627 = dma.done.wait [#allocation3], 4096  }
   0xb   :  { %4628 = vsyncadd [#allocation3], 4294963200 }
   0xc   :  { %4629 = dma.done.wait [#allocation5], 8192  }
   0xd   :  { %4630 = vsyncadd [#allocation5], 4294959104  ;;  %v3721_v0 = vld [vmem:[#allocation2 + $0x70] sm:$0xf]  ;;  %v4190_v1 = vld [vmem:[#allocation2 + $0x74] sm:$0xf0] }
   0xe   :  { %v3713_v2 = vld [vmem:[#allocation2 + $0x60] sm:$0xf]  ;;  %v3722_v3 = vor.u32 %v4190_v1, %v3721_v0  ;;  %v4188_v4 = vld [vmem:[#allocation2 + $0x64] sm:$0xf0]  ;;  %v3785_v5 = vld [vmem:[#allocation2 + $0xf0] sm:$0xf] }
   0xf   :  { %v4206_v6 = vld [vmem:[#allocation2 + $0xf4] sm:$0xf0]  ;;  %v3714_v7 = vor.u32 %v4188_v4, %v3713_v2  ;;  %v3777_v9 = vld [vmem:[#allocation2 + $0xe0] sm:$0xf]  ;;  %v4204_v10 = vld [vmem:[#allocation2 + $0xe4] sm:$0xf0] }
  0x10   :  { %392 = vmatpush.bf16.msra.mxu0 %v3722_v3  ;;  %4297 = vmatpush.bf16.msra.mxu3 %v3722_v3  ;;  %v4726_v8 = vor.u32 %v4206_v6, %v3785_v5  ;;  %v3705_v11 = vld [vmem:[#allocation2 + $0x50] sm:$0xf]  ;;  %v4186_v12 = vld [vmem:[#allocation2 + $0x54] sm:$0xf0]  ;;  %v4729_v13 = vor.u32 %v4204_v10, %v3777_v9  ;;  %v3697_v17 = vld [vmem:[#allocation2 + $0x40] sm:$0xf] }
  0x11   :  { %v3769_v14 = vld [vmem:[#allocation2 + $0xd0] sm:$0xf]  ;;  %v4202_v15 = vld [vmem:[#allocation2 + $0xd4] sm:$0xf0]  ;;  %v3706_v16 = vor.u32 %v4186_v12, %v3705_v11  ;;  %v4184_v18 = vld [vmem:[#allocation2 + $0x44] sm:$0xf0] }
  0x12   :  { %4305 = vmatpush.bf16.msra.mxu1 %v4726_v8  ;;  %v4732_v19 = vor.u32 %v4202_v15, %v3769_v14  ;;  %v3761_v20 = vld [vmem:[#allocation2 + $0xc0] sm:$0xf]  ;;  %v4200_v21 = vld [vmem:[#allocation2 + $0xc4] sm:$0xf0]  ;;  %v3698_v22 = vor.u32 %v4184_v18, %v3697_v17  ;;  %v3689_v23 = vld [vmem:[#allocation2 + $0x30] sm:$0xf] }
  0x13   :  { %v4182_v24 = vld [vmem:[#allocation2 + $0x34] sm:$0xf0]  ;;  %v4735_v25 = vor.u32 %v4200_v21, %v3761_v20  ;;  %v3753_v26 = vld [vmem:[#allocation2 + $0xb0] sm:$0xf]  ;;  %v3681_v29 = vld [vmem:[#allocation2 + $0x20] sm:$0xf] }
  0x14   :  { %393 = vmatpush.bf16.msra.mxu0 %v3714_v7  ;;  %4298 = vmatpush.bf16.msra.mxu3 %v3714_v7  ;;  %v4198_v27 = vld [vmem:[#allocation2 + $0xb4] sm:$0xf0]  ;;  %v3690_v28 = vor.u32 %v4182_v24, %v3689_v23  ;;  %v4180_v30 = vld [vmem:[#allocation2 + $0x24] sm:$0xf0]  ;;  %v3745_v32 = vld [vmem:[#allocation2 + $0xa0] sm:$0xf] }
  0x15   :  { %v4738_v31 = vor.u32 %v4198_v27, %v3753_v26  ;;  %v4196_v33 = vld [vmem:[#allocation2 + $0xa4] sm:$0xf0]  ;;  %v3682_v34 = vor.u32 %v4180_v30, %v3681_v29  ;;  %v3673_v35 = vld [vmem:[#allocation2 + $0x10] sm:$0xf]  ;;  %v4178_v36 = vld [vmem:[#allocation2 + $0x14] sm:$0xf0] }
  0x16   :  { %4306 = vmatpush.bf16.msra.mxu1 %v4729_v13  ;;  %v4741_v37 = vor.u32 %v4196_v33, %v3745_v32  ;;  %v3737_v38 = vld [vmem:[#allocation2 + $0x90] sm:$0xf]  ;;  %v4194_v39 = vld [vmem:[#allocation2 + $0x94] sm:$0xf0]  ;;  %v3674_v40 = vor.u32 %v4178_v36, %v3673_v35  ;;  %v3665_v41 = vld [vmem:[#allocation2] sm:$0xf] }
  0x17   :  { %v4176_v42 = vld [vmem:[#allocation2 + $0x4] sm:$0xf0]  ;;  %v4205_v43 = vld [vmem:[#allocation2 + $0xf4] sm:$0xf]  ;;  %v3787_v44 = vld [vmem:[#allocation2 + $0xf8] sm:$0xf0]  ;;  %v4744_v45 = vor.u32 %v4194_v39, %v3737_v38 }
  0x18   :  { %394 = vmatpush.bf16.msra.mxu0 %v3706_v16  ;;  %4299 = vmatpush.bf16.msra.mxu3 %v3706_v16  ;;  %v3601_v46 = vld [vmem:[%s7223_s0] sm:$0xf]  ;;  %v4192_v48 = vld [vmem:[#allocation2 + $0x84] sm:$0xf0]  ;;  %v3666_v49 = vor.u32 %v4176_v42, %v3665_v41  ;;  %v3790_v53 = vor.u32 %v4205_v43, %v3787_v44  ;;  %v4163_v55 = vld [vmem:[%s7223_s0 + $0x24] sm:$0xf] }
  0x19   :  { %v3729_v47 = vld [vmem:[#allocation2 + $0x80] sm:$0xf]  ;;  %v4160_v50 = vld [vmem:[%s7223_s0 + $0x4] sm:$0xf0]  ;;  %v3619_v56 = vld [vmem:[%s7223_s0 + $0x28] sm:$0xf0] }
  0x1a   :  { %4307 = vmatpush.bf16.msra.mxu1 %v4732_v19  ;;  %v3617_v51 = vld [vmem:[%s7223_s0 + $0x20] sm:$0xf]  ;;  %v4164_v52 = vld [vmem:[%s7223_s0 + $0x24] sm:$0xf0]  ;;  %v4759_v54 = vor.u32 %v4192_v48, %v3729_v47  ;;  %v4767_v57 = vor.u32 %v4160_v50, %v3601_v46  ;;  %v4203_v59 = vld [vmem:[#allocation2 + $0xe4] sm:$0xf]  ;;  %v4772_v61 = vor.u32 %v4163_v55, %v3619_v56 }
  0x1b   :  { %v4769_v58 = vor.u32 %v4164_v52, %v3617_v51  ;;  %v3779_v60 = vld [vmem:[#allocation2 + $0xe8] sm:$0xf0]  ;;  %v4201_v63 = vld [vmem:[#allocation2 + $0xd4] sm:$0xf]  ;;  %v3771_v0 = vld [vmem:[#allocation2 + $0xd8] sm:$0xf0] }
  0x1c   :  { %395 = vmatpush.bf16.msra.mxu0 %v3698_v22  ;;  %4300 = vmatpush.bf16.msra.mxu3 %v3698_v22  ;;  %v3782_v62 = vor.u32 %v4203_v59, %v3779_v60  ;;  %v4189_v1 = vld [vmem:[#allocation2 + $0x74] sm:$0xf]  ;;  %v3723_v2 = vld [vmem:[#allocation2 + $0x78] sm:$0xf0]  ;;  %v4187_v3 = vld [vmem:[#allocation2 + $0x64] sm:$0xf]  ;;  %v3774_v4 = vor.u32 %v4201_v63, %v3771_v0 }
  0x1d   :  { %v3726_v5 = vor.u32 %v4189_v1, %v3723_v2  ;;  %v3715_v6 = vld [vmem:[#allocation2 + $0x68] sm:$0xf0]  ;;  %v4199_v7 = vld [vmem:[#allocation2 + $0xc4] sm:$0xf]  ;;  %v3609_v11 = vld [vmem:[%s7223_s0 + $0x10] sm:$0xf] }
  0x1e   :  { %4308 = vmatpush.bf16.msra.mxu1 %v4735_v25  ;;  %v3718_v9 = vor.u32 %v4187_v3, %v3715_v6  ;;  %v4162_v12 = vld [vmem:[%s7223_s0 + $0x14] sm:$0xf0]  ;;  %v4165_v15 = vld [vmem:[%s7223_s0 + $0x34] sm:$0xf]  ;;  %v3627_v16 = vld [vmem:[%s7223_s0 + $0x38] sm:$0xf0] }
  0x1f   :  { %4313 = vmatpush.bf16.msra.mxu2 %v3726_v5  ;;  %v4166_v14 = vld [vmem:[%s7223_s0 + $0x34] sm:$0xf0]  ;;  %v4799_v17 = vor.u32 %v4162_v12, %v3609_v11  ;;  %v4197_v20 = vld [vmem:[#allocation2 + $0xb4] sm:$0xf]  ;;  %v3755_v21 = vld [vmem:[#allocation2 + $0xb8] sm:$0xf0] }
  0x20   :  { %396 = vmatpush.bf16.msra.mxu0 %v3690_v28  ;;  %4301 = vmatpush.bf16.msra.mxu3 %v3690_v28  ;;  %v4185_v22 = vld [vmem:[#allocation2 + $0x54] sm:$0xf]  ;;  %v3758_v23 = vor.u32 %v4197_v20, %v3755_v21  ;;  %v3707_v24 = vld [vmem:[#allocation2 + $0x58] sm:$0xf0]  ;;  %v3699_v26 = vld [vmem:[#allocation2 + $0x48] sm:$0xf0] }
  0x21   :  { %v3710_v27 = vor.u32 %v4185_v22, %v3707_v24  ;;  %v4195_v28 = vld [vmem:[#allocation2 + $0xa4] sm:$0xf]  ;;  %v3747_v29 = vld [vmem:[#allocation2 + $0xa8] sm:$0xf0]  ;;  %v4181_v32 = vld [vmem:[#allocation2 + $0x34] sm:$0xf] }
  0x22   :  { %4309 = vmatpush.bf16.msra.mxu1 %v4738_v31  ;;  %v3691_v33 = vld [vmem:[#allocation2 + $0x38] sm:$0xf0]  ;;  %v4168_v36 = vld [vmem:[%s7223_s0 + $0x44] sm:$0xf0]  ;;  %v3603_v38 = vld [vmem:[%s7223_s0 + $0x8] sm:$0xf0] }
  0x23   :  { %4314 = vmatpush.bf16.msra.mxu2 %v3718_v9  ;;  %v3694_v35 = vor.u32 %v4181_v32, %v3691_v33  ;;  %v4179_v39 = vld [vmem:[#allocation2 + $0x24] sm:$0xf]  ;;  %v3635_v42 = vld [vmem:[%s7223_s0 + $0x48] sm:$0xf0]  ;;  %v4177_v47 = vld [vmem:[#allocation2 + $0x14] sm:$0xf] }
  0x24   :  { %397 = vmatpush.bf16.msra.mxu0 %v3682_v34  ;;  %4302 = vmatpush.bf16.msra.mxu3 %v3682_v34  ;;  %v3633_v34 = vld [vmem:[%s7223_s0 + $0x40] sm:$0xf]  ;;  %v4167_v41 = vld [vmem:[%s7223_s0 + $0x44] sm:$0xf]  ;;  %v3675_v48 = vld [vmem:[#allocation2 + $0x18] sm:$0xf0] }
  0x25   :  { %v3634_v43 = vor.u32 %v4168_v36, %v3633_v34  ;;  %v4832_v46 = vor.u32 %v4167_v41, %v3635_v42  ;;  %v4175_v50 = vld [vmem:[#allocation2 + $0x4] sm:$0xf]  ;;  %v3667_v51 = vld [vmem:[#allocation2 + $0x8] sm:$0xf0]  ;;  %v4193_v52 = vld [vmem:[#allocation2 + $0x94] sm:$0xf] }
  0x26   :  { %4310 = vmatpush.bf16.msra.mxu1 %v4741_v37  ;;  %v3670_v55 = vor.u32 %v4175_v50, %v3667_v51  ;;  %v3641_v56 = vld [vmem:[%s7223_s0 + $0x50] sm:$0xf]  ;;  %v4170_v59 = vld [vmem:[%s7223_s0 + $0x54] sm:$0xf0]  ;;  %v4161_v60 = vld [vmem:[%s7223_s0 + $0x14] sm:$0xf] }
  0x27   :  { %4315 = vmatpush.bf16.msra.mxu2 %v3710_v27  ;;  %v4169_v63 = vld [vmem:[%s7223_s0 + $0x54] sm:$0xf]  ;;  %v3643_v0 = vld [vmem:[%s7223_s0 + $0x58] sm:$0xf0]  ;;  %v3642_v1 = vor.u32 %v4170_v59, %v3641_v56  ;;  %v3657_v12 = vld [vmem:[%s7223_s0 + $0x70] sm:$0xf] }
  0x28   :  { %398 = vmatpush.bf16.msra.mxu0 %v3674_v40  ;;  %4303 = vmatpush.bf16.msra.mxu3 %v3674_v40  ;;  %v3683_v40 = vld [vmem:[#allocation2 + $0x28] sm:$0xf0]  ;;  %v4855_v3 = vor.u32 %v4169_v63, %v3643_v0  ;;  %v3915_v20 = vld [vmem:[#allocation4 + $0xf8] sm:$0xf0]  ;;  %v4235_v22 = vld [vmem:[#allocation4 + $0xe4] sm:$0xf] }
  0x29   :  { %v4219_v32 = vld [vmem:[#allocation4 + $0x64] sm:$0xf]  ;;  %v3843_v34 = vld [vmem:[#allocation4 + $0x68] sm:$0xf0]  ;;  %v4233_v36 = vld [vmem:[#allocation4 + $0xd4] sm:$0xf] }
  0x2a   :  { %4311 = vmatpush.bf16.msra.mxu1 %v4744_v45  ;;  %v4217_v41 = vld [vmem:[#allocation4 + $0x54] sm:$0xf]  ;;  %v3835_v42 = vld [vmem:[#allocation4 + $0x58] sm:$0xf0]  ;;  %v4216_v50 = vld [vmem:[#allocation4 + $0x44] sm:$0xf0] }
  0x2b   :  { %v4215_v51 = vld [vmem:[#allocation4 + $0x44] sm:$0xf]  ;;  %v4214_v56 = vld [vmem:[#allocation4 + $0x34] sm:$0xf0]  ;;  %v4213_v59 = vld [vmem:[#allocation4 + $0x34] sm:$0xf] }
  0x2c   :  { %399 = vmatpush.bf16.msra.mxu0 %v3666_v49  ;;  %4304 = vmatpush.bf16.msra.mxu3 %v3666_v49  ;;  %v3678_v49 = vor.u32 %v4177_v47, %v3675_v48  ;;  %v4238_v47 = vld [vmem:[#allocation4 + $0xf4] sm:$0xf0]  ;;  %v3825_v48 = vld [vmem:[#allocation4 + $0x40] sm:$0xf] }
  0x2d   :  { %v3809_v0 = vld [vmem:[#allocation4 + $0x20] sm:$0xf] }
  0x2e   :  { %4312 = vmatpush.bf16.msra.mxu1 %v4759_v54 }
  0x2f   :  { %400 = vmatmul.bf16.vlgmr.msra.gmra.mxu0 %v4767_v57  ;;  %410 = vmatmul.bf16.vlgmr.msra.gmra.mxu3 %v4769_v58 }
  0x30   :  { %539 = vmatpush.bf16.msrb.mxu3 %v3790_v53  ;;  %441 = vmatpush.bf16.msrb.mxu0 %v4726_v8  ;;  %v3763_v8 = vld [vmem:[#allocation2 + $0xc8] sm:$0xf0]  ;;  %v3739_v53 = vld [vmem:[#allocation2 + $0x98] sm:$0xf0] }
  0x31   :  { %459 = vmatmul.bf16.vlgmr.msra.gmra.mxu1 %v4772_v61  ;;  %v3766_v10 = vor.u32 %v4199_v7, %v3763_v8  ;;  %v3649_v7 = vld [vmem:[%s7223_s0 + $0x60] sm:$0xf]  ;;  %v4171_v8 = vld [vmem:[%s7223_s0 + $0x64] sm:$0xf] }
  0x34   :  { %442 = vmatpush.bf16.msrb.mxu0 %v4729_v13  ;;  %540 = vmatpush.bf16.msrb.mxu3 %v3782_v62  ;;  %v3625_v13 = vld [vmem:[%s7223_s0 + $0x30] sm:$0xf]  ;;  %v3611_v62 = vld [vmem:[%s7223_s0 + $0x18] sm:$0xf0] }
  0x35   :  { %v4801_v18 = vor.u32 %v4166_v14, %v3625_v13  ;;  %v3614_v2 = vor.u32 %v4161_v60, %v3611_v62  ;;  %v4174_v13 = vld [vmem:[%s7223_s0 + $0x74] sm:$0xf0]  ;;  %v4173_v14 = vld [vmem:[%s7223_s0 + $0x74] sm:$0xf]  ;;  %v3819_v62 = vld [vmem:[#allocation4 + $0x38] sm:$0xf0] }
  0x36   :  { %v4933_v63 = vor.u32 %v4213_v59, %v3819_v62  ;;  %v4230_v59 = vld [vmem:[#allocation4 + $0xb4] sm:$0xf0] }
  0x38   :  { %443 = vmatpush.bf16.msrb.mxu0 %v4732_v19  ;;  %541 = vmatpush.bf16.msrb.mxu3 %v3774_v4  ;;  %v4804_v19 = vor.u32 %v4165_v15, %v3627_v16  ;;  %v4191_v4 = vld [vmem:[#allocation2 + $0x84] sm:$0xf]  ;;  %v3659_v15 = vld [vmem:[%s7223_s0 + $0x78] sm:$0xf0]  ;;  %v4887_v16 = vor.u32 %v4174_v13, %v3657_v12  ;;  %v3891_v12 = vld [vmem:[#allocation4 + $0xc8] sm:$0xf0] }
  0x39   :  { %v3801_v13 = vld [vmem:[#allocation4 + $0x10] sm:$0xf] }
  0x3c   :  { %444 = vmatpush.bf16.msrb.mxu0 %v4735_v25  ;;  %542 = vmatpush.bf16.msrb.mxu3 %v3766_v10  ;;  %v4183_v25 = vld [vmem:[#allocation2 + $0x44] sm:$0xf] }
  0x3d   :  { %v3702_v30 = vor.u32 %v4183_v25, %v3699_v26  ;;  %v3849_v25 = vld [vmem:[#allocation4 + $0x70] sm:$0xf]  ;;  %v4222_v26 = vld [vmem:[#allocation4 + $0x74] sm:$0xf0] }
  0x3f   :  { %405 = vmatmul.bf16.gmra.mxu0 %v4799_v17  ;;  %415 = vmatmul.bf16.gmra.mxu3 %v4801_v18 }
  0x40   :  { %445 = vmatpush.bf16.msrb.mxu0 %v4738_v31  ;;  %543 = vmatpush.bf16.msrb.mxu3 %v3758_v23  ;;  %v3750_v31 = vor.u32 %v4195_v28, %v3747_v29  ;;  %v3907_v23 = vld [vmem:[#allocation4 + $0xe8] sm:$0xf0]  ;;  %v3851_v28 = vld [vmem:[#allocation4 + $0x78] sm:$0xf0] }
  0x41   :  { %464 = vmatmul.bf16.gmra.mxu1 %v4804_v19  ;;  %4316 = vmatpush.bf16.msra.mxu2 %v3702_v30  ;;  %v4898_v24 = vor.u32 %v4235_v22, %v3907_v23  ;;  %v3793_v23 = vld [vmem:[#allocation4] sm:$0xf] }
  0x44   :  { %446 = vmatpush.bf16.msrb.mxu0 %v4741_v37  ;;  %544 = vmatpush.bf16.msrb.mxu3 %v3750_v31  ;;  %v4159_v37 = vld [vmem:[%s7223_s0 + $0x4] sm:$0xf]  ;;  %v4220_v31 = vld [vmem:[#allocation4 + $0x64] sm:$0xf0] }
  0x45   :  { %v4830_v44 = vor.u32 %v4159_v37, %v3603_v38  ;;  %4317 = vmatpush.bf16.msra.mxu2 %v3694_v35  ;;  %v3899_v37 = vld [vmem:[#allocation4 + $0xd8] sm:$0xf0]  ;;  %v3833_v38 = vld [vmem:[#allocation4 + $0x50] sm:$0xf] }
  0x48   :  { %447 = vmatpush.bf16.msrb.mxu0 %v4744_v45  ;;  %v3686_v45 = vor.u32 %v4179_v39, %v3683_v40  ;;  %v4913_v39 = vor.u32 %v4233_v36, %v3899_v37  ;;  %v4218_v40 = vld [vmem:[#allocation4 + $0x54] sm:$0xf0] }
  0x49   :  { %v4234_v36 = vld [vmem:[#allocation4 + $0xd4] sm:$0xf0] }
  0x4a   :  { %4318 = vmatpush.bf16.msra.mxu2 %v3686_v45 }
  0x4c   :  { %448 = vmatpush.bf16.msrb.mxu0 %v4759_v54  ;;  %v3742_v54 = vor.u32 %v4193_v52, %v3739_v53  ;;  %v3827_v52 = vld [vmem:[#allocation4 + $0x48] sm:$0xf0]  ;;  %v4924_v53 = vor.u32 %v4216_v50, %v3825_v48  ;;  %v4227_v48 = vld [vmem:[#allocation4 + $0xa4] sm:$0xf] }
  0x4d   :  { %v3875_v50 = vld [vmem:[#allocation4 + $0xa8] sm:$0xf0] }
  0x4e   :  { %4319 = vmatpush.bf16.msra.mxu2 %v3678_v49  ;;  %545 = vmatpush.bf16.msrb.mxu3 %v3742_v54  ;;  %v4926_v54 = vor.u32 %v4215_v51, %v3827_v52  ;;  %v4984_v51 = vor.u32 %v4227_v48, %v3875_v50 }
  0x4f   :  { %420 = vmatmul.bf16.gmra.mxu3 %v3634_v43  ;;  %449 = vmatmul.bf16.vlgmr.msrb.gmra.mxu0 %v4830_v44 }
  0x50   :  { %490 = vmatpush.bf16.msra.mxu0 %v3726_v5  ;;  %v3731_v5 = vld [vmem:[#allocation2 + $0x88] sm:$0xf0] }
  0x51   :  { %469 = vmatmul.bf16.gmra.mxu1 %v4832_v46  ;;  %v3734_v6 = vor.u32 %v4191_v4, %v3731_v5 }
  0x52   :  { %4320 = vmatpush.bf16.msra.mxu2 %v3670_v55 }
  0x53   :  { %546 = vmatpush.bf16.msrb.mxu3 %v3734_v6  ;;  %v3811_v6 = vld [vmem:[#allocation4 + $0x28] sm:$0xf0] }
  0x54   :  { %491 = vmatpush.bf16.msra.mxu0 %v3718_v9  ;;  %v3651_v9 = vld [vmem:[%s7223_s0 + $0x68] sm:$0xf0] }
  0x55   :  { %508 = vmatmul.bf16.vlgmr.msra.gmra.mxu2 %v4769_v58  ;;  %v4172_v58 = vld [vmem:[%s7223_s0 + $0x64] sm:$0xf0]  ;;  %v4871_v11 = vor.u32 %v4171_v8, %v3651_v9  ;;  %v4231_v9 = vld [vmem:[#allocation4 + $0xc4] sm:$0xf] }
  0x56   :  { %v3650_v10 = vor.u32 %v4172_v58, %v3649_v7  ;;  %v3905_v58 = vld [vmem:[#allocation4 + $0xe0] sm:$0xf]  ;;  %v4236_v8 = vld [vmem:[#allocation4 + $0xe4] sm:$0xf0] }
  0x58   :  { %492 = vmatpush.bf16.msra.mxu0 %v3710_v27  ;;  %v4901_v27 = vor.u32 %v4222_v26, %v3849_v25  ;;  %v4208_v25 = vld [vmem:[#allocation4 + $0x4] sm:$0xf0]  ;;  %v4207_v26 = vld [vmem:[#allocation4 + $0x4] sm:$0xf] }
  0x5c   :  { %493 = vmatpush.bf16.msra.mxu0 %v3702_v30  ;;  %v3841_v30 = vld [vmem:[#allocation4 + $0x60] sm:$0xf] }
  0x5d   :  { %v4907_v33 = vor.u32 %v4220_v31, %v3841_v30  ;;  %v3795_v30 = vld [vmem:[#allocation4 + $0x8] sm:$0xf0] }
  0x5e   :  { %v3798_v31 = vor.u32 %v4207_v26, %v3795_v30  ;;  %v4226_v26 = vld [vmem:[#allocation4 + $0x94] sm:$0xf0]  ;;  %v4223_v30 = vld [vmem:[#allocation4 + $0x84] sm:$0xf] }
  0x5f   :  { %425 = vmatmul.bf16.gmra.mxu3 %v3642_v1  ;;  %454 = vmatmul.bf16.gmra.mxu0 %v3614_v2 }
  0x60   :  { %494 = vmatpush.bf16.msra.mxu0 %v3694_v35  ;;  %v4909_v35 = vor.u32 %v4219_v32, %v3843_v34  ;;  %v3897_v34 = vld [vmem:[#allocation4 + $0xd0] sm:$0xf] }
  0x61   :  { %474 = vmatmul.bf16.gmra.mxu1 %v4855_v3 }
  0x64   :  { %495 = vmatpush.bf16.msra.mxu0 %v3686_v45  ;;  %v3913_v45 = vld [vmem:[#allocation4 + $0xf0] sm:$0xf] }
  0x65   :  { %513 = vmatmul.bf16.gmra.mxu2 %v4801_v18  ;;  %v4237_v18 = vld [vmem:[#allocation4 + $0xf4] sm:$0xf] }
  0x66   :  { %v4893_v21 = vor.u32 %v4237_v18, %v3915_v20  ;;  %v4209_v18 = vld [vmem:[#allocation4 + $0x14] sm:$0xf]  ;;  %v3803_v20 = vld [vmem:[#allocation4 + $0x18] sm:$0xf0] }
  0x68   :  { %496 = vmatpush.bf16.msra.mxu0 %v3678_v49  ;;  %943 = vmatpush.bf16.msra.mxu3 %v4893_v21  ;;  %v4922_v49 = vor.u32 %v4238_v47, %v3913_v45 }
  0x6a   :  { %845 = vmatpush.bf16.msrb.mxu1 %v4922_v49 }
  0x6c   :  { %497 = vmatpush.bf16.msra.mxu0 %v3670_v55  ;;  %944 = vmatpush.bf16.msra.mxu3 %v4898_v24  ;;  %v3817_v55 = vld [vmem:[#allocation4 + $0x30] sm:$0xf] }
  0x6d   :  { %v4931_v60 = vor.u32 %v4214_v56, %v3817_v55  ;;  %v3881_v56 = vld [vmem:[#allocation4 + $0xb0] sm:$0xf] }
  0x6f   :  { %430 = vmatmul.bf16.gmra.mxu3 %v3650_v10  ;;  %498 = vmatmul.bf16.vlgmr.msra.gmra.mxu0 %v4767_v57  ;;  %v4889_v57 = vor.u32 %v4173_v14, %v3659_v15  ;;  %v4210_v14 = vld [vmem:[#allocation4 + $0x14] sm:$0xf0]  ;;  %v4943_v15 = vor.u32 %v4231_v9, %v3891_v12 }
  0x70   :  { %796 = vmatpush.bf16.msrb.mxu0 %v4901_v27  ;;  %945 = vmatpush.bf16.msra.mxu3 %v4913_v39 }
  0x71   :  { %479 = vmatmul.bf16.gmra.mxu1 %v4871_v11 }
  0x74   :  { %797 = vmatpush.bf16.msrb.mxu0 %v4907_v33  ;;  %946 = vmatpush.bf16.msra.mxu3 %v4943_v15 }
  0x75   :  { %518 = vmatmul.bf16.gmra.mxu2 %v3634_v43  ;;  %v4915_v43 = vor.u32 %v4218_v40, %v3833_v38  ;;  %v4953_v38 = vor.u32 %v4234_v36, %v3897_v34  ;;  %v4229_v40 = vld [vmem:[#allocation4 + $0xb4] sm:$0xf] }
  0x78   :  { %798 = vmatpush.bf16.msrb.mxu0 %v4915_v43 }
  0x7c   :  { %799 = vmatpush.bf16.msrb.mxu0 %v4924_v53 }
  0x7f   :  { %435 = vmatmul.bf16.gmra.mxu3 %v4887_v16  ;;  %503 = vmatmul.bf16.gmra.mxu0 %v4799_v17  ;;  %v4221_v17 = vld [vmem:[#allocation4 + $0x74] sm:$0xf] }
  0x80   :  { %v4903_v29 = vor.u32 %v4221_v17, %v3851_v28  ;;  %800 = vmatpush.bf16.msrb.mxu0 %v4931_v60  ;;  %v3794_v28 = vor.u32 %v4208_v25, %v3793_v23  ;;  %v3865_v25 = vld [vmem:[#allocation4 + $0x90] sm:$0xf] }
  0x81   :  { %484 = vmatmul.bf16.gmra.mxu1 %v4889_v57 }
  0x82   :  { %894 = vmatpush.bf16.msrb.mxu2 %v4903_v29 }
  0x85   :  { %523 = vmatmul.bf16.gmra.mxu2 %v3642_v1  ;;  %v4212_v1 = vld [vmem:[#allocation4 + $0x24] sm:$0xf0] }
  0x86   :  { %895 = vmatpush.bf16.msrb.mxu2 %v4909_v35  ;;  %v3810_v5 = vor.u32 %v4212_v1, %v3809_v0 }
  0x88   :  { %801 = vmatpush.bf16.msrb.mxu0 %v3810_v5 }
  0x8f   :  { %547 = vmatmul.bf16.vlgmr.msrb.gmra.mxu3 %v4830_v44  ;;  %v4917_v44 = vor.u32 %v4217_v41, %v3835_v42  ;;  %v3883_v41 = vld [vmem:[#allocation4 + $0xb8] sm:$0xf0] }
  0x91   :  { %896 = vmatpush.bf16.msrb.mxu2 %v4917_v44 }
  0x95   :  { %528 = vmatmul.bf16.gmra.mxu2 %v3650_v10  ;;  %v4941_v10 = vor.u32 %v4236_v8, %v3905_v58  ;;  %v4225_v58 = vld [vmem:[#allocation4 + $0x94] sm:$0xf]  ;;  %v3867_v8 = vld [vmem:[#allocation4 + $0x98] sm:$0xf0] }
  0x96   :  { %897 = vmatpush.bf16.msrb.mxu2 %v4926_v54  ;;  %v3870_v12 = vor.u32 %v4225_v58, %v3867_v8 }
  0x97   :  { %846 = vmatpush.bf16.msrb.mxu1 %v4941_v10 }
  0x9a   :  { %898 = vmatpush.bf16.msrb.mxu2 %v4933_v63 }
  0x9b   :  { %847 = vmatpush.bf16.msrb.mxu1 %v4953_v38 }
  0x9f   :  { %552 = vmatmul.bf16.gmra.mxu3 %v3614_v2  ;;  %v4211_v2 = vld [vmem:[#allocation4 + $0x24] sm:$0xf] }
  0xa0   :  { %v3814_v7 = vor.u32 %v4211_v2, %v3811_v6  ;;  %v4228_v6 = vld [vmem:[#allocation4 + $0xa4] sm:$0xf0] }
  0xa2   :  { %899 = vmatpush.bf16.msrb.mxu2 %v3814_v7 }
  0xa5   :  { %533 = vmatmul.bf16.gmra.mxu2 %v4887_v16  ;;  %v3802_v16 = vor.u32 %v4210_v14, %v3801_v13 }
  0xa7   :  { %802 = vmatpush.bf16.msrb.mxu0 %v3802_v16 }
  0xab   :  { %803 = vmatpush.bf16.msrb.mxu0 %v3794_v28 }
  0xac   :  { %v4937_v4 = vpop.f32.mrf.mxu0 }
  0xaf   :  { %557 = vmatmul.bf16.gmra.mxu3 %v4772_v61  ;;  %v3806_v61 = vor.u32 %v4209_v18, %v3803_v20  ;;  %1072 = vmatpush.bf16.msra.mxu0 %v4901_v27  ;;  %v4959_v27 = vor.u32 %v4229_v40, %v3883_v41 }
  0xb1   :  { %900 = vmatpush.bf16.msrb.mxu2 %v3806_v61  ;;  %947 = vmatpush.bf16.msra.mxu3 %v4959_v27 }
  0xb2   :  { %v4945_v22 = vpop.f32.mrf.mxu3 }
  0xb3   :  { %1073 = vmatpush.bf16.msra.mxu0 %v4907_v33  ;;  %v3889_v33 = vld [vmem:[#allocation4 + $0xc0] sm:$0xf] }
  0xb4   :  { %v403_v17 = vpop.f32.mrf.mxu0 }
  0xb5   :  { %901 = vmatpush.bf16.msrb.mxu2 %v3798_v31  ;;  %948 = vmatpush.bf16.msra.mxu3 %v4984_v51 }
  0xb7   :  { %1074 = vmatpush.bf16.msra.mxu0 %v4915_v43 }
  0xb9   :  { %1170 = vmatpush.bf16.msra.mxu2 %v4903_v29  ;;  %949 = vmatpush.bf16.msra.mxu3 %v3870_v12 }
  0xba   :  { %v4951_v32 = vpop.f32.mrf.mxu3 }
  0xbb   :  { %1075 = vmatpush.bf16.msra.mxu0 %v4924_v53  ;;  %v460_v53 = vpop.f32.mrf.mxu1 }
  0xbc   :  { %v406_v37 = vpop.f32.mrf.mxu0 }
  0xbd   :  { %1171 = vmatpush.bf16.msra.mxu2 %v4909_v35  ;;  %v4232_v35 = vld [vmem:[#allocation4 + $0xc4] sm:$0xf0] }
  0xbf   :  { %562 = vmatmul.bf16.gmra.mxu3 %v4804_v19  ;;  %v4968_v19 = vor.u32 %v4232_v35, %v3889_v33  ;;  %1076 = vmatpush.bf16.msra.mxu0 %v4931_v60  ;;  %v4224_v33 = vld [vmem:[#allocation4 + $0x84] sm:$0xf0] }
  0xc1   :  { %1172 = vmatpush.bf16.msra.mxu2 %v4917_v44  ;;  %848 = vmatpush.bf16.msrb.mxu1 %v4968_v19  ;;  %v4978_v44 = vld [vmem:[%s7226_s3] sm:$0x3] }
  0xc2   :  { %v4963_v29 = vpop.f32.mrf.mxu3  ;;  %v4981_v47 = vperm.slane %v4978_v44, 0 }
  0xc3   :  { %1077 = vmatpush.bf16.msra.mxu0 %v3810_v5  ;;  %v462_v2 = vpop.f32.mrf.mxu1  ;;  %v3873_v5 = vld [vmem:[#allocation4 + $0xa0] sm:$0xf] }
  0xc4   :  { %v408_v42 = vpop.f32.mrf.mxu0  ;;  %v402_v52 = vadd.f32 %v4937_v4, %v4981_v47  ;;  %v404_v55 = vadd.f32 %v403_v17, %v4981_v47  ;;  %v407_v9 = vadd.f32 %v406_v37, %v4981_v47  ;;  %v3866_v17 = vor.u32 %v4226_v26, %v3865_v25 }
  0xc5   :  { %1173 = vmatpush.bf16.msra.mxu2 %v4926_v54  ;;  %v409_v14 = vadd.f32 %v408_v42, %v4981_v47  ;;  %v412_v37 = vadd.f32 %v4945_v22, %v4981_v47  ;;  %v3857_v42 = vld [vmem:[#allocation4 + $0x80] sm:$0xf] }
  0xc6   :  { %v3858_v35 = vor.u32 %v4224_v33, %v3857_v42 }
  0xc7   :  { %1078 = vmatpush.bf16.msra.mxu0 %v3802_v16 }
  0xc9   :  { %1174 = vmatpush.bf16.msra.mxu2 %v4933_v63 }
  0xca   :  { %v4973_v43 = vpop.f32.mrf.mxu3 }
  0xcb   :  { %1079 = vmatpush.bf16.msra.mxu0 %v3794_v28  ;;  %v465_v20 = vpop.f32.mrf.mxu1  ;;  %v414_v28 = vadd.f32 %v4951_v32, %v4981_v47  ;;  %v5029_v32 = vadd.f32 %v460_v53, %v412_v37  ;;  %v5068_v53 = vperm.slane %v4978_v44, 1 }
  0xcc   :  { %v450_v45 = vpop.f32.mrf.mxu0 }
  0xcd   :  { %1175 = vmatpush.bf16.msra.mxu2 %v3814_v7  ;;  %v4994_v62 = vadd.f32 %v450_v45, %v402_v52  ;;  %v5004_v7 = vor.u32 %v4228_v6, %v3873_v5  ;;  %v5026_v41 = vadd.f32 %v462_v2, %v414_v28 }
  0xcf   :  { %567 = vmatmul.bf16.gmra.mxu3 %v4832_v46  ;;  %v4992_v46 = vor.u32 %v4230_v59, %v3881_v56 }
  0xd1   :  { %1176 = vmatpush.bf16.msra.mxu2 %v3806_v61  ;;  %849 = vmatpush.bf16.msrb.mxu1 %v4992_v46 }
  0xd2   :  { %v4988_v54 = vpop.f32.mrf.mxu3 }
  0xd3   :  { %v467_v34 = vpop.f32.mrf.mxu1 }
  0xd4   :  { %v452_v60 = vpop.f32.mrf.mxu0 }
  0xd5   :  { %v4996_v63 = vadd.f32 %v452_v60, %v404_v55  ;;  %1177 = vmatpush.bf16.msra.mxu2 %v3798_v31  ;;  %850 = vmatpush.bf16.msrb.mxu1 %v5004_v7  ;;  %v3859_v31 = vld [vmem:[#allocation4 + $0x88] sm:$0xf0] }
  0xd6   :  { %v3862_v36 = vor.u32 %v4223_v30, %v3859_v31 }
  0xd7   :  { %v620_v0 = vpack.c.bf16 %v4996_v63, %v4994_v62 }
  0xd8   :  { %950 = vmatpush.bf16.msra.mxu3 %v3862_v36 }
  0xd9   :  { %804 = vmatmul.bf16.vlgmr.msrb.gmra.mxu0 %v620_v0  ;;  %902 = vmatmul.bf16.vlgmr.msrb.gmra.mxu2 %v620_v0 }
  0xda   :  { %v5001_v1 = vpop.f32.mrf.mxu3  ;;  %851 = vmatpush.bf16.msrb.mxu1 %v3866_v17 }
  0xdb   :  { %v470_v22 = vpop.f32.mrf.mxu1 }
  0xdc   :  { %v455_v4 = vpop.f32.mrf.mxu0  ;;  %1219 = vmatpush.bf16.msrb.mxu3 %v4893_v21  ;;  %v419_v21 = vadd.f32 %v4973_v43, %v4981_v47  ;;  %v422_v43 = vadd.f32 %v4988_v54, %v4981_v47 }
  0xdd   :  { %v5011_v18 = vadd.f32 %v455_v4, %v407_v9 }
  0xde   :  { %852 = vmatpush.bf16.msrb.mxu1 %v3858_v35  ;;  %v5048_v48 = vadd.f32 %v467_v34, %v419_v21  ;;  %v5070_v55 = vadd.f32 %v470_v22, %v422_v43 }
  0xdf   :  { %572 = vmatmul.bf16.gmra.mxu3 %v4855_v3 }
  0xe0   :  { %1220 = vmatpush.bf16.msrb.mxu3 %v4898_v24  ;;  %v417_v24 = vadd.f32 %v4963_v29, %v4981_v47  ;;  %v509_v29 = vpop.f32.mrf.mxu2 }
  0xe2   :  { %v5007_v13 = vpop.f32.mrf.mxu3  ;;  %1121 = vmatpush.bf16.msra.mxu1 %v4922_v49 }
  0xe4   :  { %v457_v16 = vpop.f32.mrf.mxu0  ;;  %1221 = vmatpush.bf16.msrb.mxu3 %v4913_v39  ;;  %v5052_v39 = vadd.f32 %v465_v20, %v417_v24 }
  0xe5   :  { %v5013_v3 = vadd.f32 %v457_v16, %v409_v14 }
  0xe6   :  { %1122 = vmatpush.bf16.msra.mxu1 %v4941_v10  ;;  %v472_v10 = vpop.f32.mrf.mxu1 }
  0xe7   :  { %v622_v61 = vpack.c.bf16 %v5013_v3, %v5011_v18 }
  0xe8   :  { %1222 = vmatpush.bf16.msrb.mxu3 %v4943_v15  ;;  %v511_v56 = vpop.f32.mrf.mxu2 }
  0xe9   :  { %809 = vmatmul.bf16.gmra.mxu0 %v622_v61  ;;  %907 = vmatmul.bf16.gmra.mxu2 %v622_v61  ;;  %v512_v22 = vadd.f32 %v511_v56, %v5068_v53 }
  0xea   :  { %v5017_v23 = vpop.f32.mrf.mxu3  ;;  %1123 = vmatpush.bf16.msra.mxu1 %v4953_v38 }
  0xeb   :  { %v429_v5 = vadd.f32 %v5017_v23, %v4981_v47 }
  0xec   :  { %1223 = vmatpush.bf16.msrb.mxu3 %v4959_v27  ;;  %v499_v15 = vpop.f32.mrf.mxu0  ;;  %v424_v27 = vadd.f32 %v5001_v1, %v4981_v47 }
  0xed   :  { %v500_v59 = vadd.f32 %v499_v15, %v5068_v53 }
  0xee   :  { %1124 = vmatpush.bf16.msra.mxu1 %v4968_v19  ;;  %v475_v19 = vpop.f32.mrf.mxu1 }
  0xef   :  { %577 = vmatmul.bf16.gmra.mxu3 %v4871_v11  ;;  %v624_v11 = vpack.c.bf16 %v5026_v41, %v5029_v32 }
  0xf0   :  { %1224 = vmatpush.bf16.msrb.mxu3 %v4984_v51  ;;  %v5065_v51 = vadd.f32 %v472_v10, %v424_v27  ;;  %v514_v6 = vpop.f32.mrf.mxu2 }
  0xf2   :  { %v5024_v40 = vpop.f32.mrf.mxu3  ;;  %1125 = vmatpush.bf16.msra.mxu1 %v4992_v46  ;;  %v628_v60 = vpack.c.bf16 %v5065_v51, %v5070_v55 }
  0xf3   :  { %v432_v31 = vadd.f32 %v5024_v40, %v4981_v47 }
  0xf4   :  { %1225 = vmatpush.bf16.msrb.mxu3 %v3870_v12  ;;  %v501_v50 = vpop.f32.mrf.mxu0 }
  0xf5   :  { %v502_v0 = vadd.f32 %v501_v50, %v5068_v53 }
  0xf6   :  { %1126 = vmatpush.bf16.msra.mxu1 %v5004_v7  ;;  %v477_v46 = vpop.f32.mrf.mxu1  ;;  %v427_v7 = vadd.f32 %v5007_v13, %v4981_v47 }
  0xf7   :  { %v5086_v9 = vadd.f32 %v477_v46, %v429_v5 }
  0xf8   :  { %1226 = vmatpush.bf16.msrb.mxu3 %v3862_v36  ;;  %v5088_v12 = vadd.f32 %v475_v19, %v427_v7  ;;  %v516_v23 = vpop.f32.mrf.mxu2 }
  0xf9   :  { %814 = vmatmul.bf16.gmra.mxu0 %v624_v11  ;;  %912 = vmatmul.bf16.gmra.mxu2 %v624_v11  ;;  %v510_v11 = vadd.f32 %v509_v29, %v5068_v53 }
  0xfa   :  { %v5035_v45 = vpop.f32.mrf.mxu3  ;;  %1127 = vmatpush.bf16.msra.mxu1 %v3866_v17  ;;  %v630_v20 = vpack.c.bf16 %v5086_v9, %v5088_v12 }
  0xfb   :  { %v434_v30 = vadd.f32 %v5035_v45, %v4981_v47 }
  0xfc   :  { %v504_v44 = vpop.f32.mrf.mxu0 }
  0xfd   :  { %v505_v16 = vadd.f32 %v504_v44, %v5068_v53 }
  0xfe   :  { %1128 = vmatpush.bf16.msra.mxu1 %v3858_v35  ;;  %v480_v58 = vpop.f32.mrf.mxu1 }
  0xff   :  { %582 = vmatmul.bf16.gmra.mxu3 %v4889_v57  ;;  %v626_v57 = vpack.c.bf16 %v5048_v48, %v5052_v39  ;;  %v5106_v42 = vadd.f32 %v480_v58, %v432_v31 }
 0x100   :  { %v519_v37 = vpop.f32.mrf.mxu2 }
 0x102   :  { %v5046_v49 = vpop.f32.mrf.mxu3 }
 0x103   :  { %v437_v29 = vadd.f32 %v5046_v49, %v4981_v47 }
 0x104   :  { %v506_v14 = vpop.f32.mrf.mxu0 }
 0x105   :  { %v507_v61 = vadd.f32 %v506_v14, %v5068_v53 }
 0x106   :  { %v482_v17 = vpop.f32.mrf.mxu1 }
 0x107   :  { %v5104_v36 = vadd.f32 %v482_v17, %v434_v30 }
 0x108   :  { %v521_v10 = vpop.f32.mrf.mxu2 }
 0x109   :  { %819 = vmatmul.bf16.gmra.mxu0 %v626_v57  ;;  %917 = vmatmul.bf16.gmra.mxu2 %v626_v57  ;;  %v632_v35 = vpack.c.bf16 %v5104_v36, %v5106_v42  ;;  %v522_v44 = vadd.f32 %v521_v10, %v5068_v53 }
 0x10a   :  { %v5058_v38 = vpop.f32.mrf.mxu3 }
 0x10b   :  { %v439_v57 = vadd.f32 %v5058_v38, %v4981_v47 }
 0x10e   :  { %v485_v33 = vpop.f32.mrf.mxu1 }
 0x10f   :  { %v5124_v43 = vadd.f32 %v485_v33, %v437_v29 }
 0x110   :  { %v524_v56 = vpop.f32.mrf.mxu2 }
 0x111   :  { %v525_v14 = vadd.f32 %v524_v56, %v5068_v53 }
 0x112   :  { %v548_v52 = vpop.f32.mrf.mxu3 }
 0x113   :  { %v5076_v1 = vadd.f32 %v548_v52, %v500_v59  ;;  %v515_v52 = vadd.f32 %v514_v6, %v5068_v53  ;;  %v517_v59 = vadd.f32 %v516_v23, %v5068_v53 }
 0x116   :  { %v487_v15 = vpop.f32.mrf.mxu1 }
 0x117   :  { %v5122_v27 = vadd.f32 %v487_v15, %v439_v57 }
 0x118   :  { %v526_v49 = vpop.f32.mrf.mxu2 }
 0x119   :  { %824 = vmatmul.bf16.gmra.mxu0 %v628_v60  ;;  %922 = vmatmul.bf16.gmra.mxu2 %v628_v60  ;;  %v634_v50 = vpack.c.bf16 %v5122_v27, %v5124_v43 }
 0x11a   :  { %v550_v54 = vpop.f32.mrf.mxu3 }
 0x11b   :  { %v5078_v2 = vadd.f32 %v550_v54, %v502_v0  ;;  %v520_v54 = vadd.f32 %v519_v37, %v5068_v53 }
 0x11d   :  { %v621_v4 = vpack.c.bf16 %v5078_v2, %v5076_v1 }
 0x11f   :  { %853 = vmatmul.bf16.vlgmr.msrb.gmra.mxu1 %v621_v4  ;;  %951 = vmatmul.bf16.vlgmr.msra.gmra.mxu3 %v621_v4 }
 0x120   :  { %v529_v7 = vpop.f32.mrf.mxu2 }
 0x121   :  { %v530_v31 = vadd.f32 %v529_v7, %v5068_v53 }
 0x122   :  { %v553_v8 = vpop.f32.mrf.mxu3 }
 0x123   :  { %v5094_v26 = vadd.f32 %v553_v8, %v505_v16 }
 0x128   :  { %v531_v16 = vpop.f32.mrf.mxu2 }
 0x129   :  { %829 = vmatmul.bf16.gmra.mxu0 %v630_v20  ;;  %927 = vmatmul.bf16.gmra.mxu2 %v630_v20  ;;  %v527_v20 = vadd.f32 %v526_v49, %v5068_v53 }
 0x12a   :  { %v555_v25 = vpop.f32.mrf.mxu3 }
 0x12b   :  { %v5096_v13 = vadd.f32 %v555_v25, %v507_v61 }
 0x12d   :  { %v623_v28 = vpack.c.bf16 %v5096_v13, %v5094_v26 }
 0x12f   :  { %858 = vmatmul.bf16.gmra.mxu1 %v623_v28  ;;  %956 = vmatmul.bf16.gmra.mxu3 %v623_v28 }
 0x130   :  { %v534_v28 = vpop.f32.mrf.mxu2 }
 0x131   :  { %v535_v57 = vadd.f32 %v534_v28, %v5068_v53 }
 0x132   :  { %v558_v34 = vpop.f32.mrf.mxu3 }
 0x133   :  { %v5112_v21 = vadd.f32 %v558_v34, %v510_v11  ;;  %v532_v34 = vadd.f32 %v531_v16, %v5068_v53 }
 0x138   :  { %v536_v33 = vpop.f32.mrf.mxu2 }
 0x139   :  { %834 = vmatmul.bf16.gmra.mxu0 %v632_v35  ;;  %932 = vmatmul.bf16.gmra.mxu2 %v632_v35  ;;  %v537_v15 = vadd.f32 %v536_v33, %v5068_v53 }
 0x13a   :  { %v560_v45 = vpop.f32.mrf.mxu3 }
 0x13b   :  { %v5114_v40 = vadd.f32 %v560_v45, %v512_v22 }
 0x13d   :  { %v625_v24 = vpack.c.bf16 %v5114_v40, %v5112_v21 }
 0x13f   :  { %863 = vmatmul.bf16.gmra.mxu1 %v625_v24  ;;  %961 = vmatmul.bf16.gmra.mxu3 %v625_v24 }
 0x142   :  { %v563_v19 = vpop.f32.mrf.mxu3 }
 0x143   :  { %v5130_v60 = vadd.f32 %v563_v19, %v515_v52 }
 0x149   :  { %839 = vmatmul.bf16.gmra.mxu0 %v634_v50  ;;  %937 = vmatmul.bf16.gmra.mxu2 %v634_v50 }
 0x14a   :  { %v565_v38 = vpop.f32.mrf.mxu3 }
 0x14b   :  { %v5132_v46 = vadd.f32 %v565_v38, %v517_v59 }
 0x14d   :  { %v627_v47 = vpack.c.bf16 %v5132_v46, %v5130_v60 }
 0x14f   :  { %868 = vmatmul.bf16.gmra.mxu1 %v627_v47  ;;  %966 = vmatmul.bf16.gmra.mxu3 %v627_v47 }
 0x152   :  { %v568_v0 = vpop.f32.mrf.mxu3 }
 0x153   :  { %v5138_v4 = vadd.f32 %v568_v0, %v520_v54 }
 0x156   :  { %v805_v45 = vpop.f32.mrf.mxu0 }
 0x15a   :  { %v570_v5 = vpop.f32.mrf.mxu3 }
 0x15b   :  { %v5140_v6 = vadd.f32 %v570_v5, %v522_v44 }
 0x15c   :  { %v903_v10 = vpop.f32.mrf.mxu2 }
 0x15d   :  { %v629_v58 = vpack.c.bf16 %v5140_v6, %v5138_v4 }
 0x15e   :  { %v807_v29 = vpop.f32.mrf.mxu0 }
 0x15f   :  { %873 = vmatmul.bf16.gmra.mxu1 %v629_v58  ;;  %971 = vmatmul.bf16.gmra.mxu3 %v629_v58 }
 0x162   :  { %v573_v8 = vpop.f32.mrf.mxu3 }
 0x163   :  { %v5146_v61 = vadd.f32 %v573_v8, %v525_v14 }
 0x164   :  { %v905_v59 = vpop.f32.mrf.mxu2 }
 0x166   :  { %v810_v38 = vpop.f32.mrf.mxu0 }
 0x16a   :  { %v575_v23 = vpop.f32.mrf.mxu3 }
 0x16b   :  { %v5148_v25 = vadd.f32 %v575_v23, %v527_v20 }
 0x16c   :  { %v908_v47 = vpop.f32.mrf.mxu2 }
 0x16d   :  { %v631_v17 = vpack.c.bf16 %v5148_v25, %v5146_v61 }
 0x16e   :  { %v812_v49 = vpop.f32.mrf.mxu0 }
 0x16f   :  { %878 = vmatmul.bf16.gmra.mxu1 %v631_v17  ;;  %976 = vmatmul.bf16.gmra.mxu3 %v631_v17 }
 0x172   :  { %v578_v30 = vpop.f32.mrf.mxu3 }
 0x173   :  { %v5154_v37 = vadd.f32 %v578_v30, %v530_v31 }
 0x174   :  { %v910_v44 = vpop.f32.mrf.mxu2 }
 0x176   :  { %v815_v8 = vpop.f32.mrf.mxu0 }
 0x17a   :  { %v580_v35 = vpop.f32.mrf.mxu3 }
 0x17b   :  { %v5156_v11 = vadd.f32 %v580_v35, %v532_v34 }
 0x17d   :  { %v633_v22 = vpack.c.bf16 %v5156_v11, %v5154_v37 }
 0x17f   :  { %883 = vmatmul.bf16.gmra.mxu1 %v633_v22  ;;  %981 = vmatmul.bf16.gmra.mxu3 %v633_v22  ;;  %v817_v22 = vpop.f32.mrf.mxu0 }
 0x182   :  { %v583_v24 = vpop.f32.mrf.mxu3 }
 0x183   :  { %v5162_v19 = vadd.f32 %v583_v24, %v535_v57 }
 0x18a   :  { %v585_v50 = vpop.f32.mrf.mxu3 }
 0x18b   :  { %v5164_v52 = vadd.f32 %v585_v50, %v537_v15 }
 0x18d   :  { %v635_v56 = vpack.c.bf16 %v5164_v52, %v5162_v19 }
 0x18f   :  { %888 = vmatmul.bf16.gmra.mxu1 %v635_v56  ;;  %986 = vmatmul.bf16.gmra.mxu3 %v635_v56 }
 0x19c   :  { %v854_v0 = vpop.f32.mrf.mxu1 }
 0x19d   :  { %v855_v54 = vadd.f32 %v854_v0, %v805_v45 }
 0x19f   :  { %v5169_v7 = vsub.f32 %v4994_v62, %v855_v54  ;;  %v913_v62 = vpop.f32.mrf.mxu2 }
 0x1a1   :  { %v1024_v20 = vmul.f32 %v5169_v7, %v5169_v7 }
 0x1a2   :  { %v952_v5 = vpop.f32.mrf.mxu3 }
 0x1a3   :  { %v953_v14 = vadd.f32 %v952_v5, %v903_v10 }
 0x1a4   :  { %v856_v53 = vpop.f32.mrf.mxu1 }
 0x1a5   :  { %v857_v58 = vadd.f32 %v856_v53, %v807_v29  ;;  %v5179_v28 = vsub.f32 %v5076_v1, %v953_v14 }
 0x1a7   :  { %v5172_v16 = vsub.f32 %v4996_v63, %v857_v58  ;;  %v1025_v63 = vmul.f32 %v5179_v28, %v5179_v28  ;;  %v915_v15 = vpop.f32.mrf.mxu2 }
 0x1a9   :  { %v1026_v23 = vmul.f32 %v5172_v16, %v5172_v16 }
 0x1aa   :  { %v954_v17 = vpop.f32.mrf.mxu3 }
 0x1ab   :  { %v1056_v30 = vpack.c.bf16 %v1026_v23, %v1024_v20  ;;  %v955_v31 = vadd.f32 %v954_v17, %v905_v59 }
 0x1ac   :  { %v859_v34 = vpop.f32.mrf.mxu1 }
 0x1ad   :  { %v5182_v33 = vsub.f32 %v5078_v2, %v955_v31  ;;  %1080 = vmatmul.bf16.vlgmr.msra.gmra.mxu0 %v1056_v30  ;;  %1178 = vmatmul.bf16.vlgmr.msra.gmra.mxu2 %v1056_v30  ;;  %v860_v24 = vadd.f32 %v859_v34, %v810_v38  ;;  %v820_v38 = vpop.f32.mrf.mxu0 }
 0x1af   :  { %v1027_v35 = vmul.f32 %v5182_v33, %v5182_v33  ;;  %v5189_v57 = vsub.f32 %v5011_v18, %v860_v24  ;;  %v918_v58 = vpop.f32.mrf.mxu2 }
 0x1b1   :  { %v1057_v45 = vpack.c.bf16 %v1027_v35, %v1025_v63  ;;  %v1028_v56 = vmul.f32 %v5189_v57, %v5189_v57 }
 0x1b2   :  { %v957_v1 = vpop.f32.mrf.mxu3 }
 0x1b3   :  { %1129 = vmatmul.bf16.vlgmr.msra.gmra.mxu1 %v1057_v45  ;;  %1227 = vmatmul.bf16.vlgmr.msrb.gmra.mxu3 %v1057_v45  ;;  %v958_v29 = vadd.f32 %v957_v1, %v908_v47 }
 0x1b4   :  { %v861_v10 = vpop.f32.mrf.mxu1 }
 0x1b5   :  { %v862_v2 = vadd.f32 %v861_v10, %v812_v49  ;;  %v5199_v54 = vsub.f32 %v5094_v26, %v958_v29  ;;  %v822_v26 = vpop.f32.mrf.mxu0 }
 0x1b7   :  { %v5192_v50 = vsub.f32 %v5013_v3, %v862_v2  ;;  %v1029_v3 = vmul.f32 %v5199_v54, %v5199_v54  ;;  %v920_v63 = vpop.f32.mrf.mxu2 }
 0x1b9   :  { %v1030_v59 = vmul.f32 %v5192_v50, %v5192_v50 }
 0x1ba   :  { %v959_v0 = vpop.f32.mrf.mxu3 }
 0x1bb   :  { %v960_v5 = vadd.f32 %v959_v0, %v910_v44  ;;  %v1058_v18 = vpack.c.bf16 %v1030_v59, %v1028_v56  ;;  %v4253_v56 = vld [vmem:[#allocation6 + $0x74] sm:$0xf] }
 0x1bc   :  { %v864_v53 = vpop.f32.mrf.mxu1  ;;  %v4269_v59 = vld [vmem:[#allocation6 + $0xf4] sm:$0xf] }
 0x1bd   :  { %v5202_v49 = vsub.f32 %v5096_v13, %v960_v5  ;;  %1085 = vmatmul.bf16.gmra.mxu0 %v1058_v18  ;;  %1183 = vmatmul.bf16.gmra.mxu2 %v1058_v18  ;;  %v865_v14 = vadd.f32 %v864_v53, %v815_v8  ;;  %v4043_v5 = vld [vmem:[#allocation6 + $0xf8] sm:$0xf0] }
 0x1bf   :  { %v1031_v47 = vmul.f32 %v5202_v49, %v5202_v49  ;;  %v5209_v17 = vsub.f32 %v5029_v32, %v865_v14  ;;  %v923_v18 = vpop.f32.mrf.mxu2 }
 0x1c1   :  { %v1059_v20 = vpack.c.bf16 %v1031_v47, %v1029_v3  ;;  %v1032_v34 = vmul.f32 %v5209_v17, %v5209_v17 }
 0x1c2   :  { %v962_v23 = vpop.f32.mrf.mxu3 }
 0x1c3   :  { %1134 = vmatmul.bf16.gmra.mxu1 %v1059_v20  ;;  %1232 = vmatmul.bf16.gmra.mxu3 %v1059_v20  ;;  %v963_v30 = vadd.f32 %v962_v23, %v913_v62 }
 0x1c4   :  { %v866_v44 = vpop.f32.mrf.mxu1 }
 0x1c5   :  { %v867_v13 = vadd.f32 %v866_v44, %v817_v22  ;;  %v5219_v45 = vsub.f32 %v5112_v21, %v963_v30  ;;  %v3979_v21 = vld [vmem:[#allocation6 + $0x78] sm:$0xf0]  ;;  %v4254_v30 = vld [vmem:[#allocation6 + $0x74] sm:$0xf0] }
 0x1c6   :  { %v3982_v0 = vor.u32 %v4253_v56, %v3979_v21  ;;  %v3971_v56 = vld [vmem:[#allocation6 + $0x68] sm:$0xf0]  ;;  %v4267_v21 = vld [vmem:[#allocation6 + $0xe4] sm:$0xf] }
 0x1c7   :  { %v5212_v31 = vsub.f32 %v5026_v41, %v867_v13  ;;  %v825_v41 = vpop.f32.mrf.mxu0  ;;  %v1033_v62 = vmul.f32 %v5219_v45, %v5219_v45  ;;  %v3977_v13 = vld [vmem:[#allocation6 + $0x70] sm:$0xf] }
 0x1c8   :  { %2296 = vmatpush.bf16.msrb.mxu2 %v3982_v0 }
 0x1c9   :  { %v1034_v8 = vmul.f32 %v5212_v31, %v5212_v31 }
 0x1ca   :  { %v964_v35 = vpop.f32.mrf.mxu3 }
 0x1cb   :  { %v965_v24 = vadd.f32 %v964_v35, %v915_v15  ;;  %v1060_v1 = vpack.c.bf16 %v1034_v8, %v1032_v34  ;;  %v4041_v34 = vld [vmem:[#allocation6 + $0xf0] sm:$0xf]  ;;  %v3978_v35 = vor.u32 %v4254_v30, %v3977_v13  ;;  %v3969_v30 = vld [vmem:[#allocation6 + $0x60] sm:$0xf] }
 0x1cc   :  { %v869_v32 = vpop.f32.mrf.mxu1 }
 0x1cd   :  { %v5222_v22 = vsub.f32 %v5114_v40, %v965_v24  ;;  %1090 = vmatmul.bf16.gmra.mxu0 %v1060_v1  ;;  %1188 = vmatmul.bf16.gmra.mxu2 %v1060_v1  ;;  %v870_v2 = vadd.f32 %v869_v32, %v820_v38  ;;  %v4046_v40 = vor.u32 %v4269_v59, %v4043_v5 }
 0x1ce   :  { %2198 = vmatpush.bf16.msrb.mxu0 %v3978_v35 }
 0x1cf   :  { %v1035_v10 = vmul.f32 %v5222_v22, %v5222_v22  ;;  %v5229_v3 = vsub.f32 %v5052_v39, %v870_v2  ;;  %2345 = vmatpush.bf16.msra.mxu3 %v4046_v40  ;;  %v827_v20 = vpop.f32.mrf.mxu0  ;;  %v4270_v39 = vld [vmem:[#allocation6 + $0xf4] sm:$0xf0] }
 0x1d1   :  { %v1061_v29 = vpack.c.bf16 %v1035_v10, %v1033_v62  ;;  %v1036_v23 = vmul.f32 %v5229_v3, %v5229_v3  ;;  %v925_v62 = vpop.f32.mrf.mxu2 }
 0x1d2   :  { %v967_v15 = vpop.f32.mrf.mxu3 }
 0x1d3   :  { %1139 = vmatmul.bf16.gmra.mxu1 %v1061_v29  ;;  %1237 = vmatmul.bf16.gmra.mxu3 %v1061_v29  ;;  %v968_v14 = vadd.f32 %v967_v15, %v918_v58 }
 0x1d4   :  { %v871_v53 = vpop.f32.mrf.mxu1 }
 0x1d5   :  { %v872_v47 = vadd.f32 %v871_v53, %v822_v26  ;;  %v5239_v26 = vsub.f32 %v5130_v60, %v968_v14 }
 0x1d7   :  { %v5232_v38 = vsub.f32 %v5048_v48, %v872_v47  ;;  %v4042_v48 = vor.u32 %v4270_v39, %v4041_v34  ;;  %v1037_v10 = vmul.f32 %v5239_v26, %v5239_v26  ;;  %v830_v59 = vpop.f32.mrf.mxu0  ;;  %v4252_v34 = vld [vmem:[#allocation6 + $0x64] sm:$0xf0] }
 0x1d8   :  { %v3970_v39 = vor.u32 %v4252_v34, %v3969_v30  ;;  %v3961_v30 = vld [vmem:[#allocation6 + $0x50] sm:$0xf]  ;;  %v4250_v34 = vld [vmem:[#allocation6 + $0x54] sm:$0xf0] }
 0x1d9   :  { %v1038_v44 = vmul.f32 %v5232_v38, %v5232_v38  ;;  %2247 = vmatpush.bf16.msrb.mxu1 %v4042_v48 }
 0x1da   :  { %v969_v8 = vpop.f32.mrf.mxu3  ;;  %2199 = vmatpush.bf16.msrb.mxu0 %v3970_v39  ;;  %v3962_v39 = vor.u32 %v4250_v34, %v3961_v30 }
 0x1db   :  { %v970_v58 = vadd.f32 %v969_v8, %v920_v63  ;;  %v1062_v24 = vpack.c.bf16 %v1038_v44, %v1036_v23  ;;  %v4251_v63 = vld [vmem:[#allocation6 + $0x64] sm:$0xf]  ;;  %v928_v23 = vpop.f32.mrf.mxu2  ;;  %v4033_v8 = vld [vmem:[#allocation6 + $0xe0] sm:$0xf] }
 0x1dc   :  { %v874_v1 = vpop.f32.mrf.mxu1  ;;  %v3974_v0 = vor.u32 %v4251_v63, %v3971_v56  ;;  %v4265_v63 = vld [vmem:[#allocation6 + $0xd4] sm:$0xf] }
 0x1dd   :  { %v5242_v32 = vsub.f32 %v5132_v46, %v970_v58  ;;  %1095 = vmatmul.bf16.gmra.mxu0 %v1062_v24  ;;  %1193 = vmatmul.bf16.gmra.mxu2 %v1062_v24  ;;  %v875_v60 = vadd.f32 %v874_v1, %v825_v41  ;;  %v4035_v46 = vld [vmem:[#allocation6 + $0xe8] sm:$0xf0] }
 0x1de   :  { %v4038_v5 = vor.u32 %v4267_v21, %v4035_v46  ;;  %2297 = vmatpush.bf16.msrb.mxu2 %v3974_v0  ;;  %v4027_v0 = vld [vmem:[#allocation6 + $0xd8] sm:$0xf0]  ;;  %2200 = vmatpush.bf16.msrb.mxu0 %v3962_v39 }
 0x1df   :  { %v1039_v2 = vmul.f32 %v5242_v32, %v5242_v32  ;;  %v5249_v53 = vsub.f32 %v5070_v55, %v875_v60  ;;  %v4268_v55 = vld [vmem:[#allocation6 + $0xe4] sm:$0xf0]  ;;  %v832_v24 = vpop.f32.mrf.mxu0 }
 0x1e0   :  { %2346 = vmatpush.bf16.msra.mxu3 %v4038_v5 }
 0x1e1   :  { %v1063_v29 = vpack.c.bf16 %v1039_v2, %v1037_v10  ;;  %v1040_v44 = vmul.f32 %v5249_v53, %v5249_v53 }
 0x1e2   :  { %v972_v15 = vpop.f32.mrf.mxu3 }
 0x1e3   :  { %1144 = vmatmul.bf16.gmra.mxu1 %v1063_v29  ;;  %1242 = vmatmul.bf16.gmra.mxu3 %v1063_v29  ;;  %v973_v14 = vadd.f32 %v972_v15, %v923_v18  ;;  %v3963_v29 = vld [vmem:[#allocation6 + $0x58] sm:$0xf0]  ;;  %v930_v56 = vpop.f32.mrf.mxu2 }
 0x1e4   :  { %v876_v40 = vpop.f32.mrf.mxu1 }
 0x1e5   :  { %v877_v47 = vadd.f32 %v876_v40, %v827_v20  ;;  %v5259_v20 = vsub.f32 %v5138_v4, %v973_v14 }
 0x1e7   :  { %v5252_v41 = vsub.f32 %v5065_v51, %v877_v47  ;;  %v4034_v51 = vor.u32 %v4268_v55, %v4033_v8  ;;  %v1041_v10 = vmul.f32 %v5259_v20, %v5259_v20  ;;  %v835_v47 = vpop.f32.mrf.mxu0  ;;  %v4025_v8 = vld [vmem:[#allocation6 + $0xd0] sm:$0xf] }
 0x1e9   :  { %v1042_v13 = vmul.f32 %v5252_v41, %v5252_v41  ;;  %2248 = vmatpush.bf16.msrb.mxu1 %v4034_v51 }
 0x1ea   :  { %v974_v35 = vpop.f32.mrf.mxu3 }
 0x1eb   :  { %v975_v18 = vadd.f32 %v974_v35, %v925_v62  ;;  %v1064_v58 = vpack.c.bf16 %v1042_v13, %v1040_v44  ;;  %v4249_v62 = vld [vmem:[#allocation6 + $0x54] sm:$0xf] }
 0x1ec   :  { %v879_v48 = vpop.f32.mrf.mxu1  ;;  %v3966_v15 = vor.u32 %v4249_v62, %v3963_v29  ;;  %v4019_v29 = vld [vmem:[#allocation6 + $0xc8] sm:$0xf0] }
 0x1ed   :  { %v5262_v1 = vsub.f32 %v5140_v6, %v975_v18  ;;  %1100 = vmatmul.bf16.gmra.mxu0 %v1064_v58  ;;  %1198 = vmatmul.bf16.gmra.mxu2 %v1064_v58  ;;  %v880_v4 = vadd.f32 %v879_v48, %v830_v59  ;;  %v4030_v6 = vor.u32 %v4265_v63, %v4027_v0  ;;  %v4248_v0 = vld [vmem:[#allocation6 + $0x44] sm:$0xf0] }
 0x1ee   :  { %2298 = vmatpush.bf16.msrb.mxu2 %v3966_v15  ;;  %v3953_v15 = vld [vmem:[#allocation6 + $0x40] sm:$0xf] }
 0x1ef   :  { %v1043_v2 = vmul.f32 %v5262_v1, %v5262_v1  ;;  %v5269_v5 = vsub.f32 %v5088_v12, %v880_v4  ;;  %2347 = vmatpush.bf16.msra.mxu3 %v4030_v6  ;;  %v4266_v12 = vld [vmem:[#allocation6 + $0xd4] sm:$0xf0]  ;;  %v4263_v4 = vld [vmem:[#allocation6 + $0xc4] sm:$0xf]  ;;  %v4017_v6 = vld [vmem:[#allocation6 + $0xc0] sm:$0xf] }
 0x1f0   :  { %v4026_v58 = vor.u32 %v4266_v12, %v4025_v8 }
 0x1f1   :  { %v1065_v60 = vpack.c.bf16 %v1043_v2, %v1041_v10  ;;  %7251 = vst [vmem:[#allocation9_spill] sm:$0xff] %v5269_v5  ;;  %v1044_v44 = vmul.f32 %v5269_v5, %v5269_v5  ;;  %v3955_v2 = vld [vmem:[#allocation6 + $0x48] sm:$0xf0] }
 0x1f2   :  { %v977_v21 = vpop.f32.mrf.mxu3  ;;  %2249 = vmatpush.bf16.msrb.mxu1 %v4026_v58 }
 0x1f3   :  { %1149 = vmatmul.bf16.gmra.mxu1 %v1065_v60  ;;  %1247 = vmatmul.bf16.gmra.mxu3 %v1065_v60  ;;  %v978_v59 = vadd.f32 %v977_v21, %v928_v23  ;;  %v837_v60 = vpop.f32.mrf.mxu0  ;;  %v4022_v21 = vor.u32 %v4263_v4, %v4019_v29 }
 0x1f4   :  { %v881_v46 = vpop.f32.mrf.mxu1 }
 0x1f5   :  { %v882_v40 = vadd.f32 %v881_v46, %v832_v24  ;;  %v5279_v55 = vsub.f32 %v5146_v61, %v978_v59  ;;  %v4247_v61 = vld [vmem:[#allocation6 + $0x44] sm:$0xf]  ;;  %2348 = vmatpush.bf16.msra.mxu3 %v4022_v21  ;;  %v4264_v59 = vld [vmem:[#allocation6 + $0xc4] sm:$0xf0] }
 0x1f6   :  { %v3958_v62 = vor.u32 %v4247_v61, %v3955_v2  ;;  %v4018_v30 = vor.u32 %v4264_v59, %v4017_v6 }
 0x1f7   :  { %v5272_v14 = vsub.f32 %v5086_v9, %v882_v40  ;;  %7253 = vst [vmem:[#allocation11_spill] sm:$0xff] %v5279_v55  ;;  %v933_v9 = vpop.f32.mrf.mxu2  ;;  %v1045_v48 = vmul.f32 %v5279_v55, %v5279_v55  ;;  %v3954_v40 = vor.u32 %v4248_v0, %v3953_v15 }
 0x1f8   :  { %2299 = vmatpush.bf16.msrb.mxu2 %v3958_v62  ;;  %2250 = vmatpush.bf16.msrb.mxu1 %v4018_v30 }
 0x1f9   :  { %7252 = vst [vmem:[#allocation10_spill] sm:$0xff] %v5272_v14  ;;  %v1046_v13 = vmul.f32 %v5272_v14, %v5272_v14  ;;  %2201 = vmatpush.bf16.msrb.mxu0 %v3954_v40 }
 0x1fa   :  { %v979_v35 = vpop.f32.mrf.mxu3 }
 0x1fb   :  { %v980_v18 = vadd.f32 %v979_v35, %v930_v56  ;;  %v1066_v23 = vpack.c.bf16 %v1046_v13, %v1044_v44  ;;  %v840_v12 = vpop.f32.mrf.mxu0 }
 0x1fc   :  { %v884_v51 = vpop.f32.mrf.mxu1 }
 0x1fd   :  { %v5282_v24 = vsub.f32 %v5148_v25, %v980_v18  ;;  %1105 = vmatmul.bf16.gmra.mxu0 %v1066_v23  ;;  %1203 = vmatmul.bf16.gmra.mxu2 %v1066_v23  ;;  %v885_v63 = vadd.f32 %v884_v51, %v835_v47  ;;  %v4245_v51 = vld [vmem:[#allocation6 + $0x34] sm:$0xf] }
 0x1ff   :  { %7254 = vst [vmem:[#allocation12_spill] sm:$0xff] %v5282_v24  ;;  %v1047_v10 = vmul.f32 %v5282_v24, %v5282_v24  ;;  %v5289_v44 = vsub.f32 %v5106_v42, %v885_v63  ;;  %v935_v34 = vpop.f32.mrf.mxu2 }
 0x201   :  { %v1067_v56 = vpack.c.bf16 %v1047_v10, %v1045_v48  ;;  %7255 = vst [vmem:[#allocation13_spill] sm:$0xff] %v5289_v44  ;;  %v1048_v35 = vmul.f32 %v5289_v44, %v5289_v44  ;;  %v3947_v48 = vld [vmem:[#allocation6 + $0x38] sm:$0xf0] }
 0x202   :  { %v982_v25 = vpop.f32.mrf.mxu3  ;;  %v3950_v10 = vor.u32 %v4245_v51, %v3947_v48  ;;  %v4262_v51 = vld [vmem:[#allocation6 + $0xb4] sm:$0xf0] }
 0x203   :  { %1154 = vmatmul.bf16.gmra.mxu1 %v1067_v56  ;;  %1252 = vmatmul.bf16.gmra.mxu3 %v1067_v56  ;;  %v983_v47 = vadd.f32 %v982_v25, %v933_v9  ;;  %v842_v29 = vpop.f32.mrf.mxu0 }
 0x204   :  { %v886_v46 = vpop.f32.mrf.mxu1  ;;  %2300 = vmatpush.bf16.msrb.mxu2 %v3950_v10 }
 0x205   :  { %v887_v13 = vadd.f32 %v886_v46, %v837_v60  ;;  %v5299_v42 = vsub.f32 %v5154_v37, %v983_v47  ;;  %v4261_v47 = vld [vmem:[#allocation6 + $0xb4] sm:$0xf] }
 0x207   :  { %v5292_v8 = vsub.f32 %v5104_v36, %v887_v13  ;;  %7257 = vst [vmem:[#allocation15_spill] sm:$0xff] %v5299_v42  ;;  %v1049_v61 = vmul.f32 %v5299_v42, %v5299_v42  ;;  %v938_v37 = vpop.f32.mrf.mxu2 }
 0x209   :  { %7256 = vst [vmem:[#allocation14_spill] sm:$0xff] %v5292_v8  ;;  %v1050_v39 = vmul.f32 %v5292_v8, %v5292_v8 }
 0x20a   :  { %v984_v18 = vpop.f32.mrf.mxu3 }
 0x20b   :  { %v985_v23 = vadd.f32 %v984_v18, %v935_v34  ;;  %v1068_v58 = vpack.c.bf16 %v1050_v39, %v1048_v35  ;;  %v4011_v35 = vld [vmem:[#allocation6 + $0xb8] sm:$0xf0]  ;;  %v4246_v18 = vld [vmem:[#allocation6 + $0x34] sm:$0xf0] }
 0x20c   :  { %v889_v9 = vpop.f32.mrf.mxu1 }
 0x20d   :  { %v5302_v36 = vsub.f32 %v5156_v11, %v985_v23  ;;  %1110 = vmatmul.bf16.gmra.mxu0 %v1068_v58  ;;  %1208 = vmatmul.bf16.gmra.mxu2 %v1068_v58  ;;  %v890_v4 = vadd.f32 %v889_v9, %v840_v12  ;;  %v4014_v12 = vor.u32 %v4261_v47, %v4011_v35  ;;  %v4009_v58 = vld [vmem:[#allocation6 + $0xb0] sm:$0xf]  ;;  %v4244_v47 = vld [vmem:[#allocation6 + $0x24] sm:$0xf0] }
 0x20e   :  { %v4010_v10 = vor.u32 %v4262_v51, %v4009_v58  ;;  %v4001_v58 = vld [vmem:[#allocation6 + $0xa0] sm:$0xf]  ;;  %v4260_v51 = vld [vmem:[#allocation6 + $0xa4] sm:$0xf0] }
 0x20f   :  { %7258 = vst [vmem:[#allocation16_spill] sm:$0xff] %v5302_v36  ;;  %v1051_v2 = vmul.f32 %v5302_v36, %v5302_v36  ;;  %v5309_v11 = vsub.f32 %v5124_v43, %v890_v4  ;;  %v940_v6 = vpop.f32.mrf.mxu2  ;;  %2349 = vmatpush.bf16.msra.mxu3 %v4014_v12  ;;  %v3987_v36 = vld [vmem:[#allocation6 + $0x88] sm:$0xf0] }
 0x210   :  { %2251 = vmatpush.bf16.msrb.mxu1 %v4010_v10 }
 0x211   :  { %v1069_v60 = vpack.c.bf16 %v1051_v2, %v1049_v61  ;;  %7259 = vst [vmem:[#allocation17_spill] sm:$0xff] %v5309_v11  ;;  %v1052_v15 = vmul.f32 %v5309_v11, %v5309_v11  ;;  %v4255_v11 = vld [vmem:[#allocation6 + $0x84] sm:$0xf] }
 0x212   :  { %v987_v62 = vpop.f32.mrf.mxu3 }
 0x213   :  { %1159 = vmatmul.bf16.gmra.mxu1 %v1069_v60  ;;  %1257 = vmatmul.bf16.gmra.mxu3 %v1069_v60  ;;  %v988_v21 = vadd.f32 %v987_v62, %v938_v37 }
 0x214   :  { %v891_v63 = vpop.f32.mrf.mxu1 }
 0x215   :  { %v892_v56 = vadd.f32 %v891_v63, %v842_v29  ;;  %v5319_v40 = vsub.f32 %v5162_v19, %v988_v21  ;;  %v3945_v19 = vld [vmem:[#allocation6 + $0x30] sm:$0xf]  ;;  %v4243_v29 = vld [vmem:[#allocation6 + $0x24] sm:$0xf]  ;;  %v3939_v63 = vld [vmem:[#allocation6 + $0x28] sm:$0xf0] }
 0x216   :  { %v3946_v23 = vor.u32 %v4246_v18, %v3945_v19 }
 0x217   :  { %v5312_v25 = vsub.f32 %v5122_v27, %v892_v56  ;;  %7261 = vst [vmem:[#allocation19_spill] sm:$0xff] %v5319_v40  ;;  %v1053_v27 = vmul.f32 %v5319_v40, %v5319_v40 }
 0x218   :  { %2202 = vmatpush.bf16.msrb.mxu0 %v3946_v23 }
 0x219   :  { %7260 = vst [vmem:[#allocation18_spill] sm:$0xff] %v5312_v25  ;;  %v1054_v0 = vmul.f32 %v5312_v25, %v5312_v25 }
 0x21a   :  { %v989_v46 = vpop.f32.mrf.mxu3 }
 0x21b   :  { %v990_v59 = vadd.f32 %v989_v46, %v940_v6  ;;  %v1070_v13 = vpack.c.bf16 %v1054_v0, %v1052_v15  ;;  %v3942_v15 = vor.u32 %v4243_v29, %v3939_v63  ;;  %v4259_v46 = vld [vmem:[#allocation6 + $0xa4] sm:$0xf] }
 0x21d   :  { %v5322_v43 = vsub.f32 %v5164_v52, %v990_v59  ;;  %1115 = vmatmul.bf16.gmra.mxu0 %v1070_v13  ;;  %1213 = vmatmul.bf16.gmra.mxu2 %v1070_v13  ;;  %v4003_v59 = vld [vmem:[#allocation6 + $0xa8] sm:$0xf0] }
 0x21e   :  { %2301 = vmatpush.bf16.msrb.mxu2 %v3942_v15  ;;  %v3931_v15 = vld [vmem:[#allocation6 + $0x18] sm:$0xf0] }
 0x21f   :  { %7262 = vst [vmem:[#allocation20_spill] sm:$0xff] %v5322_v43  ;;  %v1055_v30 = vmul.f32 %v5322_v43, %v5322_v43 }
 0x221   :  { %v1071_v34 = vpack.c.bf16 %v1055_v30, %v1053_v27  ;;  %v4006_v30 = vor.u32 %v4259_v46, %v4003_v59 }
 0x223   :  { %1164 = vmatmul.bf16.gmra.mxu1 %v1071_v34  ;;  %1262 = vmatmul.bf16.gmra.mxu3 %v1071_v34  ;;  %v3937_v34 = vld [vmem:[#allocation6 + $0x20] sm:$0xf] }
 0x224   :  { %v3938_v35 = vor.u32 %v4244_v47, %v3937_v34  ;;  %2350 = vmatpush.bf16.msra.mxu3 %v4006_v30  ;;  %v5361_v34 = vld [vmem:[%s7227_s4] sm:$0x3] }
 0x226   :  { %2203 = vmatpush.bf16.msrb.mxu0 %v3938_v35 }
 0x22a   :  { %v1081_v39 = vpop.f32.mrf.mxu0 }
 0x22b   :  { %v1082_v52 = vadd.f32 1e-06, %v1081_v39 }
 0x230   :  { %v1130_v48 = vpop.f32.mrf.mxu1  ;;  %v1179_v9 = vpop.f32.mrf.mxu2 }
 0x231   :  { %v5328_v61 = vadd.f32 %v1130_v48, %v1082_v52  ;;  %v1180_v37 = vadd.f32 1e-06, %v1179_v9 }
 0x232   :  { %v1083_v2 = vpop.f32.mrf.mxu0 }
 0x233   :  { %4329 = vrsqrt.f32 %v5328_v61  ;;  %v1084_v60 = vadd.f32 1e-06, %v1083_v2  ;;  %v4002_v2 = vor.u32 %v4260_v51, %v4001_v58  ;;  %v5368_v58 = vld [vmem:[%s7228_s5] sm:$0x3]  ;;  %vm1274_vm1 = vweird.f32 %v5328_v61 }
 0x235   :  { %2252 = vmatpush.bf16.msrb.mxu1 %v4002_v2 }
 0x236   :  { %v1228_v4 = vpop.f32.mrf.mxu3 }
 0x237   :  { %v5331_v62 = vadd.f32 %v1228_v4, %v1180_v37 }
 0x238   :  { %v1132_v56 = vpop.f32.mrf.mxu1  ;;  %v1181_v21 = vpop.f32.mrf.mxu2 }
 0x239   :  { %v5333_v0 = vpop.eup %4329  ;;  %4331 = vrsqrt.f32 %v5331_v62  ;;  %v5336_v6 = vadd.f32 %v1132_v56, %v1084_v60  ;;  %v1182_v39 = vadd.f32 1e-06, %v1181_v21  ;;  %v4241_v21 = vld [vmem:[#allocation6 + $0x14] sm:$0xf]  ;;  %vm1284_vm5 = vweird.f32 %v5331_v62 }
 0x23a   :  { %v1269_v13 = vmul.f32 %v5333_v0, %v5328_v61  ;;  %v1086_v27 = vpop.f32.mrf.mxu0  ;;  %v3934_v59 = vor.u32 %v4241_v21, %v3931_v15  ;;  %vm1275_vm0 = vweird.f32 %v5333_v0  ;;  %v4239_v15 = vld [vmem:[#allocation6 + $0x4] sm:$0xf] }
 0x23b   :  { %4333 = vrsqrt.f32 %v5336_v6  ;;  %v1087_v23 = vadd.f32 1e-06, %v1086_v27  ;;  %v4242_v27 = vld [vmem:[#allocation6 + $0x14] sm:$0xf0]  ;;  %vm5394_vm2 = vmor %vm1274_vm1, %vm1275_vm0  ;;  %vm1294_vm8 = vweird.f32 %v5336_v6 }
 0x23c   :  { %v1270_v19 = vmul.f32 %v5333_v0, %v1269_v13  ;;  %v3929_v13 = vld [vmem:[#allocation6 + $0x10] sm:$0xf]  ;;  %2302 = vmatpush.bf16.msrb.mxu2 %v3934_v59 }
 0x23e   :  { %v1230_v12 = vpop.f32.mrf.mxu3  ;;  %v1271_v4 = vmul.f32 0.5, %v1270_v19  ;;  %v3930_v19 = vor.u32 %v4242_v27, %v3929_v13 }
 0x23f   :  { %v5342_v18 = vpop.eup %4331  ;;  %v5344_v52 = vadd.f32 %v1230_v12, %v1182_v39 }
 0x240   :  { %v1279_v48 = vmul.f32 %v5342_v18, %v5331_v62  ;;  %v1135_v9 = vpop.f32.mrf.mxu1  ;;  %v1184_v10 = vpop.f32.mrf.mxu2  ;;  %v1272_v30 = vsub.f32 1.5, %v1271_v4  ;;  %2204 = vmatpush.bf16.msrb.mxu0 %v3930_v19  ;;  %v4257_v19 = vld [vmem:[#allocation6 + $0x94] sm:$0xf]  ;;  %vm1285_vm3 = vweird.f32 %v5342_v18  ;;  %v4240_v62 = vld [vmem:[#allocation6 + $0x4] sm:$0xf0] }
 0x241   :  { %v5348_v37 = vpop.eup %4333  ;;  %4335 = vrsqrt.f32 %v5344_v52  ;;  %v5351_v60 = vadd.f32 %v1135_v9, %v1087_v23  ;;  %v1185_v35 = vadd.f32 1e-06, %v1184_v10  ;;  %v5374_v9 = vperm.slane %v5361_v34, 0  ;;  %vm5420_vm7 = vmor %vm1284_vm5, %vm1285_vm3 }
 0x242   :  { %v1280_v29 = vmul.f32 %v5342_v18, %v1279_v48  ;;  %v1289_v63 = vmul.f32 %v5348_v37, %v5336_v6  ;;  %v1088_v56 = vpop.f32.mrf.mxu0  ;;  %vm1295_vm4 = vweird.f32 %v5348_v37  ;;  %vm1304_vm10 = vweird.f32 %v5344_v52 }
 0x243   :  { %4337 = vrsqrt.f32 %v5351_v60  ;;  %v1089_v51 = vadd.f32 1e-06, %v1088_v56  ;;  %vm5433_vm9 = vmor %vm1294_vm8, %vm1295_vm4  ;;  %v5442_v6 = vperm.slane %v5361_v34, 1  ;;  %vm1314_vm13 = vweird.f32 %v5351_v60 }
 0x244   :  { %v1290_v46 = vmul.f32 %v5348_v37, %v1289_v63  ;;  %v1281_v47 = vmul.f32 0.5, %v1280_v29  ;;  %v1273_v63 = vmul.f32 %v5333_v0, %v1272_v30  ;;  %v3993_v30 = vld [vmem:[#allocation6 + $0x90] sm:$0xf] }
 0x246   :  { %v1291_v39 = vmul.f32 0.5, %v1290_v46  ;;  %v1233_v12 = vpop.f32.mrf.mxu3  ;;  %v1282_v21 = vsub.f32 1.5, %v1281_v47  ;;  %v5385_v46 = vperm.slane %v5368_v58, 0  ;;  %v4258_v47 = vld [vmem:[#allocation6 + $0x94] sm:$0xf0]  ;;  %v1277_v61 = vsel %vm5394_vm2, %v5333_v0, %v1273_v63 }
 0x247   :  { %v5363_v23 = vpop.eup %4335  ;;  %v5370_v48 = vadd.f32 %v1233_v12, %v1185_v35  ;;  %v3995_v12 = vld [vmem:[#allocation6 + $0x98] sm:$0xf0]  ;;  %v3994_v24 = vor.u32 %v4258_v47, %v3993_v30  ;;  %v3990_v0 = vor.u32 %v4255_v11, %v3987_v36 }
 0x248   :  { %v1299_v10 = vmul.f32 %v5363_v23, %v5344_v52  ;;  %v1137_v2 = vpop.f32.mrf.mxu1  ;;  %v1186_v4 = vpop.f32.mrf.mxu2  ;;  %v1292_v59 = vsub.f32 1.5, %v1291_v39  ;;  %v1283_v40 = vmul.f32 %v5342_v18, %v1282_v21  ;;  %v3998_v25 = vor.u32 %v4257_v19, %v3995_v12  ;;  %v4256_v19 = vld [vmem:[#allocation6 + $0x84] sm:$0xf0] }
 0x249   :  { %v5378_v29 = vpop.eup %4337  ;;  %4339 = vrsqrt.f32 %v5370_v48  ;;  %v5382_v56 = vadd.f32 %v1137_v2, %v1089_v51  ;;  %v3923_v51 = vld [vmem:[#allocation6 + $0x8] sm:$0xf0]  ;;  %v1187_v43 = vadd.f32 1e-06, %v1186_v4  ;;  %vm1305_vm6 = vweird.f32 %v5363_v23  ;;  %2253 = vmatpush.bf16.msrb.mxu1 %v3994_v24 }
 0x24a   :  { %v1300_v13 = vmul.f32 %v5363_v23, %v1299_v10  ;;  %v1309_v27 = vmul.f32 %v5378_v29, %v5351_v60  ;;  %v1091_v35 = vpop.f32.mrf.mxu0  ;;  %v1293_v8 = vmul.f32 %v5348_v37, %v1292_v59  ;;  %v3926_v14 = vor.u32 %v4239_v15, %v3923_v51  ;;  %2351 = vmatpush.bf16.msra.mxu3 %v3998_v25  ;;  %vm5449_vm11 = vmor %vm1304_vm10, %vm1305_vm6 }
 0x24b   :  { %4341 = vrsqrt.f32 %v5382_v56  ;;  %v5455_v12 = vperm.slane %v5368_v58, 1  ;;  %vm1315_vm12 = vweird.f32 %v5378_v29  ;;  %vm1324_vm1 = vweird.f32 %v5370_v48 }
 0x24c   :  { %v1301_v39 = vmul.f32 0.5, %v1300_v13  ;;  %v1310_v10 = vmul.f32 %v5378_v29, %v1309_v27  ;;  %v1092_v27 = vadd.f32 1e-06, %v1091_v35  ;;  %2303 = vmatpush.bf16.msrb.mxu2 %v3926_v14  ;;  %v1287_v14 = vsel %vm5420_vm7, %v5342_v18, %v1283_v40  ;;  %v3985_v35 = vld [vmem:[#allocation6 + $0x80] sm:$0xf]  ;;  %vm5486_vm14 = vmor %vm1314_vm13, %vm1315_vm12 }
 0x24d   :  { %v1297_v40 = vsel %vm5433_vm9, %v5348_v37, %v1293_v8  ;;  %v1589_v47 = vmul.f32 %v1287_v14, %v5179_v28  ;;  %vm1334_vm2 = vweird.f32 %v5382_v56 }
 0x24e   :  { %v1302_v42 = vsub.f32 1.5, %v1301_v39  ;;  %v1235_v44 = vpop.f32.mrf.mxu3  ;;  %v1311_v13 = vmul.f32 0.5, %v1310_v10  ;;  %2352 = vmatpush.bf16.msra.mxu3 %v3990_v0  ;;  %v1590_v39 = vmul.f32 %v1297_v40, %v5172_v16 }
 0x24f   :  { %v5406_v55 = vpop.eup %4339  ;;  %v5408_v5 = vadd.f32 %v1235_v44, %v1187_v43  ;;  %v1588_v44 = vmul.f32 %v1277_v61, %v5169_v7  ;;  %v3921_v43 = vld [vmem:[#allocation6] sm:$0xf]  ;;  %v3986_v61 = vor.u32 %v4256_v19, %v3985_v35  ;;  %v1627_v36 = vmul.f32 %v5442_v6, %v1589_v47 }
 0x250   :  { %v1303_v4 = vmul.f32 %v5363_v23, %v1302_v42  ;;  %v1319_v63 = vmul.f32 %v5406_v55, %v5370_v48  ;;  %v1140_v21 = vpop.f32.mrf.mxu1  ;;  %v1189_v59 = vpop.f32.mrf.mxu2  ;;  %v1312_v52 = vsub.f32 1.5, %v1311_v13  ;;  %v3922_v2 = vor.u32 %v4240_v62, %v3921_v43 }
 0x251   :  { %v5415_v15 = vpop.eup %4341  ;;  %4343 = vrsqrt.f32 %v5408_v5  ;;  %v5426_v42 = vadd.f32 %v1140_v21, %v1092_v27  ;;  %v1626_v30 = vmul.f32 %v5374_v9, %v1588_v44  ;;  %v1190_v51 = vadd.f32 1e-06, %v1189_v59  ;;  %2254 = vmatpush.bf16.msrb.mxu1 %v3986_v61 }
 0x252   :  { %v1320_v24 = vmul.f32 %v5406_v55, %v1319_v63  ;;  %v1329_v11 = vmul.f32 %v5415_v15, %v5382_v56  ;;  %v1093_v25 = vpop.f32.mrf.mxu0  ;;  %v1307_v34 = vsel %vm5449_vm11, %v5363_v23, %v1303_v4  ;;  %v1313_v27 = vmul.f32 %v5378_v29, %v1312_v52  ;;  %2205 = vmatpush.bf16.msrb.mxu0 %v3922_v2 }
 0x253   :  { %4345 = vrsqrt.f32 %v5426_v42  ;;  %v1591_v23 = vmul.f32 %v1307_v34, %v5182_v33  ;;  %v1094_v0 = vadd.f32 1e-06, %v1093_v25  ;;  %v5477_v33 = vadd.f32 %v5385_v46, %v1626_v30 }
 0x254   :  { %v1321_v8 = vmul.f32 0.5, %v1320_v24  ;;  %v1330_v37 = vmul.f32 %v5415_v15, %v1329_v11  ;;  %v1628_v60 = vmul.f32 %v5374_v9, %v1590_v39  ;;  %vm1325_vm15 = vweird.f32 %v5406_v55 }
 0x255   :  { %v1629_v43 = vmul.f32 %v5442_v6, %v1591_v23  ;;  %v1317_v62 = vsel %vm5486_vm14, %v5378_v29, %v1313_v27  ;;  %vm1335_vm0 = vweird.f32 %v5415_v15  ;;  %v5504_v19 = vadd.f32 %v5455_v12, %v1627_v36  ;;  %vm5514_vm3 = vmor %vm1324_vm1, %vm1325_vm15 }
 0x256   :  { %v1331_v10 = vmul.f32 0.5, %v1330_v37  ;;  %v1238_v58 = vpop.f32.mrf.mxu3  ;;  %v1322_v28 = vsub.f32 1.5, %v1321_v8  ;;  %v5509_v29 = vadd.f32 %v5385_v46, %v1628_v60  ;;  %v1592_v8 = vmul.f32 %v1317_v62, %v5189_v57  ;;  %vm5526_vm5 = vmor %vm1334_vm2, %vm1335_vm0 }
 0x257   :  { %v5465_v13 = vpop.eup %4343  ;;  %v5469_v4 = vadd.f32 %v1238_v58, %v1190_v51  ;;  %vm1344_vm4 = vweird.f32 %v5408_v5  ;;  %v5522_v48 = vadd.f32 %v5455_v12, %v1629_v43  ;;  %vm1354_vm6 = vweird.f32 %v5426_v42 }
 0x258   :  { %v1332_v63 = vsub.f32 1.5, %v1331_v10  ;;  %v1339_v16 = vmul.f32 %v5465_v13, %v5408_v5  ;;  %v1142_v21 = vpop.f32.mrf.mxu1  ;;  %v1191_v59 = vpop.f32.mrf.mxu2  ;;  %v1323_v40 = vmul.f32 %v5406_v55, %v1322_v28  ;;  %v5534_v39 = vmul.f32 0.5, %v5477_v33 }
 0x259   :  { %v5474_v44 = vpop.eup %4345  ;;  %4347 = vrsqrt.f32 %v5469_v4  ;;  %v5481_v14 = vadd.f32 %v1142_v21, %v1094_v0  ;;  %v1192_v34 = vadd.f32 1e-06, %v1191_v59  ;;  %v1728_v21 = vmul.f32 0.044715, %v5477_v33 }
 0x25a   :  { %v1340_v24 = vmul.f32 %v5465_v13, %v1339_v16  ;;  %v1349_v11 = vmul.f32 %v5474_v44, %v5426_v42  ;;  %v1096_v25 = vpop.f32.mrf.mxu0  ;;  %v1333_v18 = vmul.f32 %v5415_v15, %v1332_v63  ;;  %v1327_v10 = vsel %vm5514_vm3, %v5406_v55, %v1323_v40 }
 0x25b   :  { %4349 = vrsqrt.f32 %v5481_v14  ;;  %v1097_v57 = vadd.f32 1e-06, %v1096_v25  ;;  %v1630_v55 = vmul.f32 %v5374_v9, %v1592_v8  ;;  %v1730_v36 = vmul.f32 0.044715, %v5509_v29 }
 0x25c   :  { %v1341_v52 = vmul.f32 0.5, %v1340_v24  ;;  %v1350_v35 = vmul.f32 %v5474_v44, %v1349_v11  ;;  %v1337_v58 = vsel %vm5526_vm5, %v5415_v15, %v1333_v18  ;;  %v1593_v60 = vmul.f32 %v1327_v10, %v5199_v54 }
 0x25d   :  { %vm1345_vm7 = vweird.f32 %v5465_v13  ;;  %v5559_v24 = vmul.f32 0.5, %v5509_v29  ;;  %v1594_v11 = vmul.f32 %v1337_v58, %v5192_v50  ;;  %vm1355_vm8 = vweird.f32 %v5474_v44 }
 0x25e   :  { %v1351_v30 = vmul.f32 0.5, %v1350_v35  ;;  %v1240_v47 = vpop.f32.mrf.mxu3  ;;  %v1342_v61 = vsub.f32 1.5, %v1341_v52  ;;  %v1760_v18 = vmul.f32 %v1728_v21, %v5477_v33  ;;  %v5568_v52 = vadd.f32 %v5385_v46, %v1630_v55  ;;  %vm5579_vm10 = vmor %vm1344_vm4, %vm1345_vm7 }
 0x25f   :  { %v5519_v51 = vpop.eup %4347  ;;  %v5531_v2 = vadd.f32 %v1240_v47, %v1192_v34  ;;  %vm1364_vm9 = vweird.f32 %v5469_v4  ;;  %v1762_v50 = vmul.f32 %v1730_v36, %v5509_v29  ;;  %v1631_v37 = vmul.f32 %v5442_v6, %v1593_v60  ;;  %vm5593_vm11 = vmor %vm1354_vm6, %vm1355_vm8 }
 0x260   :  { %v1359_v23 = vmul.f32 %v5519_v51, %v5469_v4  ;;  %v1145_v27 = vpop.f32.mrf.mxu1  ;;  %v1352_v28 = vsub.f32 1.5, %v1351_v30  ;;  %v1194_v16 = vpop.f32.mrf.mxu2  ;;  %v1343_v25 = vmul.f32 %v5465_v13, %v1342_v61  ;;  %v1632_v10 = vmul.f32 %v5374_v9, %v1594_v11 }
 0x261   :  { %v5544_v0 = vpop.eup %4349  ;;  %4351 = vrsqrt.f32 %v5531_v2  ;;  %v5547_v63 = vadd.f32 %v1145_v27, %v1097_v57  ;;  %v1195_v54 = vadd.f32 1e-06, %v1194_v16  ;;  %vm1374_vm12 = vweird.f32 %v5481_v14 }
 0x262   :  { %v1360_v59 = vmul.f32 %v5519_v51, %v1359_v23  ;;  %v1369_v15 = vmul.f32 %v5544_v0, %v5481_v14  ;;  %v1098_v7 = vpop.f32.mrf.mxu0  ;;  %v1353_v40 = vmul.f32 %v5474_v44, %v1352_v28  ;;  %v1347_v58 = vsel %vm5579_vm10, %v5465_v13, %v1343_v25 }
 0x263   :  { %4353 = vrsqrt.f32 %v5547_v63  ;;  %v1099_v56 = vadd.f32 1e-06, %v1098_v7  ;;  %v5601_v27 = vmul.f32 0.5, %v5504_v19  ;;  %v1792_v16 = vmul.f32 %v1760_v18, %v5477_v33 }
 0x264   :  { %v1361_v43 = vmul.f32 0.5, %v1360_v59  ;;  %v1370_v62 = vmul.f32 %v5544_v0, %v1369_v15  ;;  %v1357_v13 = vsel %vm5593_vm11, %v5474_v44, %v1353_v40  ;;  %v1794_v15 = vmul.f32 %v1762_v50, %v5509_v29 }
 0x265   :  { %v1595_v36 = vmul.f32 %v1347_v58, %v5202_v49  ;;  %vm1365_vm13 = vweird.f32 %v5519_v51  ;;  %v5621_v7 = vadd.f32 %v5455_v12, %v1631_v37  ;;  %v1596_v11 = vmul.f32 %v1357_v13, %v5209_v17 }
 0x266   :  { %v1371_v35 = vmul.f32 0.5, %v1370_v62  ;;  %v1243_v34 = vpop.f32.mrf.mxu3  ;;  %v1362_v47 = vsub.f32 1.5, %v1361_v43  ;;  %v5626_v62 = vadd.f32 %v5385_v46, %v1632_v10  ;;  %vm1375_vm14 = vweird.f32 %v5544_v0  ;;  %vm5633_vm0 = vmor %vm1364_vm9, %vm1365_vm13 }
 0x267   :  { %v5572_v8 = vpop.eup %4351  ;;  %v5583_v57 = vadd.f32 %v1243_v34, %v1195_v54  ;;  %vm1384_vm15 = vweird.f32 %v5531_v2  ;;  %v1824_v40 = vadd.f32 %v1792_v16, %v5477_v33  ;;  %vm1394_vm1 = vweird.f32 %v5547_v63  ;;  %vm5657_vm2 = vmor %vm1374_vm12, %vm1375_vm14 }
 0x268   :  { %v1379_v61 = vmul.f32 %v5572_v8, %v5531_v2  ;;  %v1147_v23 = vpop.f32.mrf.mxu1  ;;  %v1372_v21 = vsub.f32 1.5, %v1371_v35  ;;  %v1363_v60 = vmul.f32 %v5519_v51, %v1362_v47  ;;  %v1196_v44 = vpop.f32.mrf.mxu2  ;;  %v1826_v34 = vadd.f32 %v1794_v15, %v5509_v29 }
 0x269   :  { %v5603_v28 = vpop.eup %4353  ;;  %4355 = vrsqrt.f32 %v5583_v57  ;;  %v5609_v42 = vadd.f32 %v1147_v23, %v1099_v56  ;;  %v1197_v35 = vadd.f32 1e-06, %v1196_v44  ;;  %v1633_v30 = vmul.f32 %v5442_v6, %v1595_v36 }
 0x26a   :  { %v1380_v55 = vmul.f32 %v5572_v8, %v1379_v61  ;;  %v1389_v59 = vmul.f32 %v5603_v28, %v5547_v63  ;;  %v1101_v49 = vpop.f32.mrf.mxu0  ;;  %v1373_v17 = vmul.f32 %v5544_v0, %v1372_v21  ;;  %v1367_v4 = vsel %vm5633_vm0, %v5519_v51, %v1363_v60 }
 0x26b   :  { %4357 = vrsqrt.f32 %v5609_v42  ;;  %v1856_v47 = vmul.f32 0.7978846, %v1824_v40  ;;  %v1634_v56 = vmul.f32 %v5374_v9, %v1596_v11  ;;  %vm1385_vm3 = vweird.f32 %v5572_v8 }
 0x26c   :  { %v1381_v25 = vmul.f32 0.5, %v1380_v55  ;;  %v1390_v43 = vmul.f32 %v5603_v28, %v1389_v59  ;;  %v1102_v51 = vadd.f32 1e-06, %v1101_v49  ;;  %v1858_v13 = vmul.f32 0.7978846, %v1826_v34  ;;  %vm5692_vm5 = vmor %vm1384_vm15, %vm1385_vm3 }
 0x26d   :  { %4359 = vtanh.f32 %v1856_v47  ;;  %v1597_v16 = vmul.f32 %v1367_v4, %v5219_v45  ;;  %v1377_v21 = vsel %vm5657_vm2, %v5544_v0, %v1373_v17  ;;  %v1729_v36 = vmul.f32 0.044715, %v5504_v19 }
 0x26e   :  { %v1391_v18 = vmul.f32 0.5, %v1390_v43  ;;  %v1245_v50 = vpop.f32.mrf.mxu3  ;;  %v1382_v33 = vsub.f32 1.5, %v1381_v25  ;;  %4361 = vtanh.f32 %v1858_v13  ;;  %vm1395_vm4 = vweird.f32 %v5603_v28 }
 0x26f   :  { %v5640_v37 = vpop.eup %4355  ;;  %v5649_v5 = vadd.f32 %v1245_v50, %v1197_v35  ;;  %v5677_v0 = vadd.f32 %v5455_v12, %v1633_v30  ;;  %v5682_v25 = vmul.f32 0.5, %v5522_v48  ;;  %v5685_v43 = vadd.f32 %v5385_v46, %v1634_v56  ;;  %vm5705_vm6 = vmor %vm1394_vm1, %vm1395_vm4 }
 0x270   :  { %v1392_v10 = vsub.f32 1.5, %v1391_v18  ;;  %v1399_v58 = vmul.f32 %v5640_v37, %v5583_v57  ;;  %v1150_v29 = vpop.f32.mrf.mxu1  ;;  %v1383_v59 = vmul.f32 %v5572_v8, %v1382_v33  ;;  %v1199_v11 = vpop.f32.mrf.mxu2  ;;  %v1598_v49 = vmul.f32 %v1377_v21, %v5212_v31 }
 0x271   :  { %v5651_v61 = vpop.eup %4357  ;;  %v5670_v15 = vadd.f32 %v1150_v29, %v1102_v51  ;;  %4363 = vrsqrt.f32 %v5649_v5  ;;  %v1731_v17 = vmul.f32 0.044715, %v5522_v48  ;;  %v1635_v35 = vmul.f32 %v5442_v6, %v1597_v16 }
 0x272   :  { %v1400_v55 = vmul.f32 %v5640_v37, %v1399_v58  ;;  %v1409_v14 = vmul.f32 %v5651_v61, %v5609_v42  ;;  %v1393_v60 = vmul.f32 %v5603_v28, %v1392_v10  ;;  %v1387_v34 = vsel %vm5692_vm5, %v5572_v8, %v1383_v59  ;;  %v1103_v50 = vpop.f32.mrf.mxu0 }
 0x273   :  { %4365 = vrsqrt.f32 %v5670_v15  ;;  %v4360_v18 = vpop.eup %4359  ;;  %vm1404_vm7 = vweird.f32 %v5583_v57  ;;  %v1761_v2 = vmul.f32 %v1729_v36, %v5504_v19  ;;  %v1200_v8 = vadd.f32 1e-06, %v1199_v11 }
 0x274   :  { %v1401_v45 = vmul.f32 0.5, %v1400_v55  ;;  %v1410_v44 = vmul.f32 %v5651_v61, %v1409_v14  ;;  %v1397_v4 = vsel %vm5705_vm6, %v5603_v28, %v1393_v60  ;;  %v1920_v33 = vadd.f32 1.0, %v4360_v18  ;;  %v4362_v56 = vpop.eup %4361 }
 0x275   :  { %v1763_v47 = vmul.f32 %v1731_v17, %v5522_v48  ;;  %vm1405_vm8 = vweird.f32 %v5640_v37  ;;  %v1793_v58 = vmul.f32 %v1761_v2, %v5504_v19  ;;  %v1636_v51 = vmul.f32 %v5374_v9, %v1598_v49 }
 0x276   :  { %v1402_v54 = vsub.f32 1.5, %v1401_v45  ;;  %v1248_v30 = vpop.f32.mrf.mxu3  ;;  %v1411_v10 = vmul.f32 0.5, %v1410_v44  ;;  %v1922_v13 = vadd.f32 1.0, %v4362_v56  ;;  %v1104_v16 = vadd.f32 1e-06, %v1103_v50  ;;  %vm5732_vm9 = vmor %vm1404_vm7, %vm1405_vm8 }
 0x277   :  { %v5718_v23 = vpop.eup %4363  ;;  %v5721_v28 = vadd.f32 %v1248_v30, %v1200_v8  ;;  %v1599_v55 = vmul.f32 %v1387_v34, %v5222_v22  ;;  %v1600_v14 = vmul.f32 %v1397_v4, %v5229_v3  ;;  %v1795_v36 = vmul.f32 %v1763_v47, %v5522_v48 }
 0x278   :  { %v1403_v63 = vmul.f32 %v5640_v37, %v1402_v54  ;;  %v1152_v29 = vpop.f32.mrf.mxu1  ;;  %v1419_v59 = vmul.f32 %v5718_v23, %v5649_v5  ;;  %v1952_v45 = vmul.f32 %v1920_v33, %v5534_v39  ;;  %v1954_v44 = vmul.f32 %v1922_v13, %v5559_v24  ;;  %v1201_v31 = vpop.f32.mrf.mxu2 }
 0x279   :  { %v5723_v21 = vpop.eup %4365  ;;  %v5740_v11 = vadd.f32 %v1152_v29, %v1104_v16  ;;  %v1412_v49 = vsub.f32 1.5, %v1411_v10  ;;  %v1825_v40 = vadd.f32 %v1793_v58, %v5504_v19  ;;  %v1827_v39 = vadd.f32 %v1795_v36, %v5522_v48 }
 0x27a   :  { %v1429_v22 = vmul.f32 %v5723_v21, %v5670_v15  ;;  %v1407_v3 = vsel %vm5732_vm9, %v5640_v37, %v1403_v63  ;;  %v1420_v57 = vmul.f32 %v5718_v23, %v1419_v59  ;;  %v1984_v54 = vpack.c.bf16 %v1954_v44, %v1952_v45  ;;  %v1106_v56 = vpop.f32.mrf.mxu0 }
 0x27b   :  { %4367 = vrsqrt.f32 %v5721_v28  ;;  %v1637_v24 = vmul.f32 %v5442_v6, %v1599_v55  ;;  %vm1414_vm10 = vweird.f32 %v5609_v42  ;;  %v1857_v34 = vmul.f32 0.7978846, %v1825_v40 }
 0x27c   :  { %v1430_v17 = vmul.f32 %v5723_v21, %v1429_v22  ;;  %v1421_v18 = vmul.f32 0.5, %v1420_v57  ;;  %v5753_v37 = vadd.f32 %v5455_v12, %v1635_v35  ;;  %v1638_v2 = vmul.f32 %v5374_v9, %v1600_v14  ;;  %2206 = vmatmul.bf16.vlgmr.msrb.gmra.mxu0 %v1984_v54  ;;  %2304 = vmatmul.bf16.vlgmr.msrb.gmra.mxu2 %v1984_v54 }
 0x27d   :  { %v1859_v19 = vmul.f32 0.7978846, %v1827_v39  ;;  %4369 = vrsqrt.f32 %v5740_v11  ;;  %v1601_v48 = vmul.f32 %v1407_v3, %v5239_v26  ;;  %v1413_v50 = vmul.f32 %v5651_v61, %v1412_v49 }
 0x27e   :  { %vm1415_vm11 = vweird.f32 %v5651_v61  ;;  %4371 = vtanh.f32 %v1857_v34  ;;  %v1250_v30 = vpop.f32.mrf.mxu3  ;;  %v5761_v4 = vadd.f32 %v5385_v46, %v1636_v51  ;;  %v1431_v35 = vmul.f32 0.5, %v1430_v17 }
 0x27f   :  { %4373 = vtanh.f32 %v1859_v19  ;;  %v1202_v33 = vadd.f32 1e-06, %v1201_v31  ;;  %v5764_v8 = vadd.f32 %v5455_v12, %v1637_v24  ;;  %v1422_v47 = vsub.f32 1.5, %v1421_v18  ;;  %vm5775_vm13 = vmor %vm1414_vm10, %vm1415_vm11 }
 0x280   :  { %vm1424_vm12 = vweird.f32 %v5649_v5  ;;  %v1732_v26 = vmul.f32 0.044715, %v5568_v52  ;;  %v5771_v10 = vadd.f32 %v5385_v46, %v1638_v2  ;;  %vm1425_vm14 = vweird.f32 %v5718_v23  ;;  %v1155_v14 = vpop.f32.mrf.mxu1 }
 0x281   :  { %v5768_v63 = vpop.eup %4367  ;;  %vm1434_vm15 = vweird.f32 %v5670_v15  ;;  %v1734_v29 = vmul.f32 0.044715, %v5626_v62  ;;  %v5782_v51 = vadd.f32 %v1250_v30, %v1202_v33  ;;  %v1639_v13 = vmul.f32 %v5442_v6, %v1601_v48  ;;  %vm5816_vm1 = vmor %vm1424_vm12, %vm1425_vm14 }
 0x282   :  { %v1417_v16 = vsel %vm5775_vm13, %v5651_v61, %v1413_v50  ;;  %v1439_v42 = vmul.f32 %v5768_v63, %v5721_v28  ;;  %v1764_v55 = vmul.f32 %v1732_v26, %v5568_v52  ;;  %v1432_v36 = vsub.f32 1.5, %v1431_v35 }
 0x283   :  { %v5791_v59 = vpop.eup %4369  ;;  %v1107_v60 = vadd.f32 1e-06, %v1106_v56  ;;  %v1766_v45 = vmul.f32 %v1734_v29, %v5626_v62  ;;  %4375 = vrsqrt.f32 %v5782_v51  ;;  %v1423_v22 = vmul.f32 %v5718_v23, %v1422_v47 }
 0x284   :  { %v4372_v44 = vpop.eup %4371  ;;  %vm1435_vm0 = vweird.f32 %v5723_v21  ;;  %v1440_v61 = vmul.f32 %v5768_v63, %v1439_v42  ;;  %v1449_v3 = vmul.f32 %v5791_v59, %v5740_v11  ;;  %v1796_v40 = vmul.f32 %v1764_v55, %v5568_v52 }
 0x285   :  { %v4374_v49 = vpop.eup %4373  ;;  %v1921_v57 = vadd.f32 1.0, %v4372_v44  ;;  %v1798_v54 = vmul.f32 %v1766_v45, %v5626_v62  ;;  %v5802_v17 = vadd.f32 %v1155_v14, %v1107_v60  ;;  %v1602_v39 = vmul.f32 %v1417_v16, %v5232_v38  ;;  %vm5833_vm2 = vmor %vm1434_vm15, %vm1435_vm0  ;;  %v1108_v14 = vpop.f32.mrf.mxu0 }
 0x286   :  { %v1923_v24 = vadd.f32 1.0, %v4374_v49  ;;  %v1441_v18 = vmul.f32 0.5, %v1440_v61  ;;  %v1450_v34 = vmul.f32 %v5791_v59, %v1449_v3  ;;  %v5807_v31 = vadd.f32 %v5455_v12, %v1639_v13 }
 0x287   :  { %v1433_v2 = vmul.f32 %v5723_v21, %v1432_v36  ;;  %v1828_v19 = vadd.f32 %v1796_v40, %v5568_v52  ;;  %v1830_v48 = vadd.f32 %v1798_v54, %v5626_v62  ;;  %v1953_v38 = vmul.f32 %v1921_v57, %v5601_v27  ;;  %v1253_v36 = vpop.f32.mrf.mxu3 }
 0x288   :  { %v1955_v30 = vmul.f32 %v1923_v24, %v5682_v25  ;;  %v1442_v35 = vsub.f32 1.5, %v1441_v18  ;;  %v1451_v33 = vmul.f32 0.5, %v1450_v34  ;;  %v1427_v56 = vsel %vm5816_vm1, %v5718_v23, %v1423_v22  ;;  %v1204_v23 = vpop.f32.mrf.mxu2  ;;  %v1157_v61 = vpop.f32.mrf.mxu1 }
 0x289   :  { %v5822_v47 = vpop.eup %4375  ;;  %v1860_v26 = vmul.f32 0.7978846, %v1828_v19  ;;  %v1862_v58 = vmul.f32 0.7978846, %v1830_v48  ;;  %4377 = vrsqrt.f32 %v5802_v17  ;;  %v1640_v5 = vmul.f32 %v5374_v9, %v1602_v39 }
 0x28a   :  { %v1985_v25 = vpack.c.bf16 %v1955_v30, %v1953_v38  ;;  %v1452_v29 = vsub.f32 1.5, %v1451_v33  ;;  %v1459_v13 = vmul.f32 %v5822_v47, %v5782_v51  ;;  %v1437_v16 = vsel %vm5833_vm2, %v5723_v21, %v1433_v2 }
 0x28b   :  { %vm1444_vm3 = vweird.f32 %v5721_v28  ;;  %vm1445_vm4 = vweird.f32 %v5768_v63  ;;  %4379 = vtanh.f32 %v1860_v26  ;;  %v1603_v15 = vmul.f32 %v1427_v56, %v5242_v32 }
 0x28c   :  { %2255 = vmatmul.bf16.vlgmr.msrb.gmra.mxu1 %v1985_v25  ;;  %2353 = vmatmul.bf16.vlgmr.msra.gmra.mxu3 %v1985_v25  ;;  %v1443_v42 = vmul.f32 %v5768_v63, %v1442_v35  ;;  %4381 = vtanh.f32 %v1862_v58  ;;  %v1460_v55 = vmul.f32 %v5822_v47, %v1459_v13  ;;  %v1453_v60 = vmul.f32 %v5791_v59, %v1452_v29  ;;  %vm5859_vm7 = vmor %vm1444_vm3, %vm1445_vm4 }
 0x28d   :  { %vm1455_vm5 = vweird.f32 %v5791_v59  ;;  %v1205_v21 = vadd.f32 1e-06, %v1204_v23  ;;  %v1733_v45 = vmul.f32 0.044715, %v5621_v7  ;;  %v1604_v44 = vmul.f32 %v1437_v16, %v5249_v53 }
 0x28e   :  { %vm1454_vm6 = vweird.f32 %v5740_v11  ;;  %v1461_v32 = vmul.f32 0.5, %v1460_v55  ;;  %v1735_v22 = vmul.f32 0.044715, %v5677_v0  ;;  %v1700_v57 = vmul.f32 0.5, %v5568_v52 }
 0x28f   :  { %v5853_v3 = vpop.eup %4377  ;;  %v1702_v53 = vmul.f32 0.5, %v5626_v62  ;;  %v1765_v11 = vmul.f32 %v1733_v45, %v5621_v7  ;;  %v5866_v40 = vadd.f32 %v1253_v36, %v1205_v21  ;;  %v1447_v54 = vsel %vm5859_vm7, %v5768_v63, %v1443_v42  ;;  %vm5873_vm8 = vmor %vm1454_vm6, %vm1455_vm5  ;;  %v1255_v45 = vpop.f32.mrf.mxu3 }
 0x290   :  { %v1462_v39 = vsub.f32 1.5, %v1461_v32  ;;  %v1469_v52 = vmul.f32 %v5853_v3, %v5802_v17  ;;  %v1767_v62 = vmul.f32 %v1735_v22, %v5677_v0  ;;  %v1641_v18 = vmul.f32 %v5442_v6, %v1603_v15  ;;  %v1206_v16 = vpop.f32.mrf.mxu2  ;;  %v1111_v15 = vpop.f32.mrf.mxu0 }
 0x291   :  { %v4380_v24 = vpop.eup %4379  ;;  %v1457_v34 = vsel %vm5873_vm8, %v5791_v59, %v1453_v60  ;;  %v1797_v63 = vmul.f32 %v1765_v11, %v5621_v7  ;;  %4383 = vrsqrt.f32 %v5866_v40  ;;  %v1642_v19 = vmul.f32 %v5374_v9, %v1604_v44  ;;  %v1160_v44 = vpop.f32.mrf.mxu1 }
 0x292   :  { %v4382_v2 = vpop.eup %4381  ;;  %v1924_v48 = vadd.f32 1.0, %v4380_v24  ;;  %vm1465_vm9 = vweird.f32 %v5822_v47  ;;  %v1799_v50 = vmul.f32 %v1767_v62, %v5677_v0  ;;  %v1605_v38 = vmul.f32 %v1447_v54, %v5259_v20 }
 0x293   :  { %v1926_v30 = vadd.f32 1.0, %v4382_v2  ;;  %v1829_v35 = vadd.f32 %v1797_v63, %v5621_v7  ;;  %v1109_v33 = vadd.f32 1e-06, %v1108_v14  ;;  %v1606_v59 = vmul.f32 %v1457_v34, %v5252_v41 }
 0x294   :  { %v1463_v56 = vmul.f32 %v5822_v47, %v1462_v39  ;;  %v1470_v26 = vmul.f32 %v5853_v3, %v1469_v52  ;;  %v1831_v58 = vadd.f32 %v1799_v50, %v5677_v0  ;;  %v1956_v27 = vmul.f32 %v1924_v48, %v1700_v57 }
 0x295   :  { %v1958_v25 = vmul.f32 %v1926_v30, %v1702_v53  ;;  %v1861_v29 = vmul.f32 0.7978846, %v1829_v35  ;;  %v5895_v13 = vadd.f32 %v1157_v61, %v1109_v33  ;;  %v5898_v23 = vadd.f32 %v5385_v46, %v1640_v5 }
 0x296   :  { %v5901_v20 = vadd.f32 %v5455_v12, %v1641_v18  ;;  %vm1464_vm10 = vweird.f32 %v5782_v51  ;;  %v1863_v41 = vmul.f32 0.7978846, %v1831_v58  ;;  %v5907_v55 = vadd.f32 %v5385_v46, %v1642_v19 }
 0x297   :  { %v5904_v42 = vpop.eup %4383  ;;  %v1643_v14 = vmul.f32 %v5442_v6, %v1605_v38  ;;  %v1986_v36 = vpack.c.bf16 %v1958_v25, %v1956_v27  ;;  %vm5912_vm11 = vmor %vm1464_vm10, %vm1465_vm9  ;;  %4385 = vtanh.f32 %v1861_v29  ;;  %v1471_v60 = vmul.f32 0.5, %v1470_v26 }
 0x298   :  { %v1467_v51 = vsel %vm5912_vm11, %v5822_v47, %v1463_v56  ;;  %4387 = vtanh.f32 %v1863_v41  ;;  %v1479_v21 = vmul.f32 %v5904_v42, %v5866_v40  ;;  %v1644_v32 = vmul.f32 %v5374_v9, %v1606_v59  ;;  %v1209_v26 = vpop.f32.mrf.mxu2 }
 0x299   :  { %2211 = vmatmul.bf16.gmra.mxu0 %v1986_v36  ;;  %2309 = vmatmul.bf16.gmra.mxu2 %v1986_v36  ;;  %4389 = vrsqrt.f32 %v5895_v13  ;;  %v1207_v22 = vadd.f32 1e-06, %v1206_v16  ;;  %v1112_v61 = vadd.f32 1e-06, %v1111_v15  ;;  %vm1474_vm12 = vweird.f32 %v5802_v17 }
 0x29a   :  { %v1701_v49 = vmul.f32 0.5, %v5621_v7  ;;  %v1480_v47 = vmul.f32 %v5904_v42, %v1479_v21  ;;  %v1736_v57 = vmul.f32 0.044715, %v5685_v43  ;;  %v1738_v53 = vmul.f32 0.044715, %v5761_v4 }
 0x29b   :  { %v1607_v11 = vmul.f32 %v1467_v51, %v5262_v1  ;;  %v1703_v54 = vmul.f32 0.5, %v5677_v0  ;;  %v5930_v28 = vadd.f32 %v1255_v45, %v1207_v22  ;;  %v5932_v39 = vadd.f32 %v1160_v44, %v1112_v61  ;;  %v1113_v61 = vpop.f32.mrf.mxu0 }
 0x29c   :  { %v1472_v52 = vsub.f32 1.5, %v1471_v60  ;;  %v1481_v62 = vmul.f32 0.5, %v1480_v47  ;;  %v1768_v24 = vmul.f32 %v1736_v57, %v5685_v43  ;;  %v1770_v7 = vmul.f32 %v1738_v53, %v5761_v4 }
 0x29d   :  { %v4386_v18 = vpop.eup %4385  ;;  %v5937_v34 = vadd.f32 %v5455_v12, %v1643_v14  ;;  %v5940_v63 = vadd.f32 %v5385_v46, %v1644_v32  ;;  %vm1475_vm13 = vweird.f32 %v5853_v3  ;;  %4391 = vrsqrt.f32 %v5930_v28  ;;  %v1258_v14 = vpop.f32.mrf.mxu3 }
 0x29e   :  { %v4388_v1 = vpop.eup %4387  ;;  %v1925_v0 = vadd.f32 1.0, %v4386_v18  ;;  %v1482_v2 = vsub.f32 1.5, %v1481_v62  ;;  %v1800_v19 = vmul.f32 %v1768_v24, %v5685_v43  ;;  %v1802_v48 = vmul.f32 %v1770_v7, %v5761_v4  ;;  %vm5970_vm0 = vmor %vm1474_vm12, %vm1475_vm13 }
 0x29f   :  { %v5946_v50 = vpop.eup %4389  ;;  %v1927_v38 = vadd.f32 1.0, %v4388_v1  ;;  %vm1484_vm14 = vweird.f32 %v5866_v40  ;;  %v5950_v30 = vmul.f32 0.5, %v5685_v43  ;;  %4393 = vrsqrt.f32 %v5932_v39 }
 0x2a0   :  { %v1645_v35 = vmul.f32 %v5442_v6, %v1607_v11  ;;  %v1473_v33 = vmul.f32 %v5853_v3, %v1472_v52  ;;  %v1957_v59 = vmul.f32 %v1925_v0, %v1701_v49  ;;  %v1489_v56 = vmul.f32 %v5946_v50, %v5895_v13  ;;  %v7307_v52 = vld [vmem:[#allocation9_spill] sm:$0xff] }
 0x2a1   :  { %v1959_v58 = vmul.f32 %v1927_v38, %v1703_v54  ;;  %v1832_v27 = vadd.f32 %v1800_v19, %v5685_v43  ;;  %v1834_v25 = vadd.f32 %v1802_v48, %v5761_v4  ;;  %v1737_v29 = vmul.f32 0.044715, %v5753_v37  ;;  %v1162_v54 = vpop.f32.mrf.mxu1 }
 0x2a2   :  { %v1483_v41 = vmul.f32 %v5904_v42, %v1482_v2  ;;  %vm1485_vm15 = vweird.f32 %v5904_v42  ;;  %v1490_v16 = vmul.f32 %v5946_v50, %v1489_v56  ;;  %v1739_v15 = vmul.f32 0.044715, %v5764_v8  ;;  %v7308_v2 = vld [vmem:[#allocation11_spill] sm:$0xff] }
 0x2a3   :  { %v5964_v36 = vpop.eup %4391  ;;  %v1987_v5 = vpack.c.bf16 %v1959_v58, %v1957_v59  ;;  %v1864_v51 = vmul.f32 0.7978846, %v1832_v27  ;;  %v1866_v60 = vmul.f32 0.7978846, %v1834_v25  ;;  %v1210_v21 = vadd.f32 1e-06, %v1209_v26  ;;  %vm5989_vm1 = vmor %vm1484_vm14, %vm1485_vm15 }
 0x2a4   :  { %v1477_v45 = vsel %vm5970_vm0, %v5853_v3, %v1473_v33  ;;  %v1491_v44 = vmul.f32 0.5, %v1490_v16  ;;  %v1499_v32 = vmul.f32 %v5964_v36, %v5930_v28  ;;  %v1769_v22 = vmul.f32 %v1737_v29, %v5753_v37 }
 0x2a5   :  { %v5980_v17 = vpop.eup %4393  ;;  %v5983_v49 = vadd.f32 %v5455_v12, %v1645_v35  ;;  %2260 = vmatmul.bf16.gmra.mxu1 %v1987_v5  ;;  %2358 = vmatmul.bf16.gmra.mxu3 %v1987_v5  ;;  %4395 = vtanh.f32 %v1864_v51  ;;  %v1771_v47 = vmul.f32 %v1739_v15, %v5764_v8  ;;  %v5994_v57 = vadd.f32 %v1258_v14, %v1210_v21  ;;  %v1211_v51 = vpop.f32.mrf.mxu2 }
 0x2a6   :  { %v1487_v53 = vsel %vm5989_vm1, %v5904_v42, %v1483_v41  ;;  %vm1494_vm2 = vweird.f32 %v5895_v13  ;;  %4397 = vtanh.f32 %v1866_v60  ;;  %v1500_v11 = vmul.f32 %v5964_v36, %v1499_v32  ;;  %v1260_v3 = vpop.f32.mrf.mxu3 }
 0x2a7   :  { %v1509_v40 = vmul.f32 %v5980_v17, %v5932_v39  ;;  %v1608_v62 = vmul.f32 %v1477_v45, %v7307_v52  ;;  %v1801_v24 = vmul.f32 %v1769_v22, %v5753_v37  ;;  %v1803_v7 = vmul.f32 %v1771_v47, %v5764_v8 }
 0x2a8   :  { %v1114_v18 = vadd.f32 1e-06, %v1113_v61  ;;  %v1492_v1 = vsub.f32 1.5, %v1491_v44  ;;  %v1501_v0 = vmul.f32 0.5, %v1500_v11  ;;  %4399 = vrsqrt.f32 %v5994_v57 }
 0x2a9   :  { %v1510_v42 = vmul.f32 %v5980_v17, %v1509_v40  ;;  %v1609_v19 = vmul.f32 %v1487_v53, %v7308_v2  ;;  %v1833_v48 = vadd.f32 %v1801_v24, %v5753_v37  ;;  %v1835_v38 = vadd.f32 %v1803_v7, %v5764_v8  ;;  %v7315_v7 = vld [vmem:[#allocation10_spill] sm:$0xff] }
 0x2aa   :  { %v6011_v35 = vadd.f32 %v1162_v54, %v1114_v18  ;;  %v1706_v33 = vmul.f32 0.5, %v5761_v4  ;;  %v1502_v59 = vsub.f32 1.5, %v1501_v0  ;;  %v6015_v26 = vmul.f32 0.5, %v5753_v37  ;;  %v1116_v54 = vpop.f32.mrf.mxu0 }
 0x2ab   :  { %v1511_v56 = vmul.f32 0.5, %v1510_v42  ;;  %v4396_v58 = vpop.eup %4395  ;;  %v1646_v27 = vmul.f32 %v5374_v9, %v1608_v62  ;;  %v1865_v25 = vmul.f32 0.7978846, %v1833_v48  ;;  %v1867_v29 = vmul.f32 0.7978846, %v1835_v38 }
 0x2ac   :  { %4401 = vrsqrt.f32 %v6011_v35  ;;  %v4398_v41 = vpop.eup %4397  ;;  %v1493_v16 = vmul.f32 %v5946_v50, %v1492_v1  ;;  %vm1495_vm3 = vweird.f32 %v5946_v50  ;;  %v1928_v15 = vadd.f32 1.0, %v4396_v58 }
 0x2ad   :  { %v1512_v14 = vsub.f32 1.5, %v1511_v56  ;;  %v1647_v4 = vmul.f32 %v5442_v6, %v1609_v19  ;;  %v1930_v43 = vadd.f32 1.0, %v4398_v41  ;;  %vm1504_vm4 = vweird.f32 %v5930_v28  ;;  %vm6030_vm7 = vmor %vm1494_vm2, %vm1495_vm3 }
 0x2ae   :  { %4403 = vtanh.f32 %v1865_v25  ;;  %v6023_v37 = vpop.eup %4399  ;;  %v1503_v5 = vmul.f32 %v5964_v36, %v1502_v59  ;;  %vm1505_vm5 = vweird.f32 %v5964_v36  ;;  %vm1515_vm6 = vweird.f32 %v5980_v17  ;;  %v7316_v59 = vld [vmem:[#allocation12_spill] sm:$0xff] }
 0x2af   :  { %4405 = vtanh.f32 %v1867_v29  ;;  %v1960_v21 = vmul.f32 %v1928_v15, %v5950_v30  ;;  %v1962_v45 = vmul.f32 %v1930_v43, %v1706_v33  ;;  %v1513_v44 = vmul.f32 %v5980_v17, %v1512_v14  ;;  %vm6055_vm9 = vmor %vm1504_vm4, %vm1505_vm5  ;;  %v1165_v33 = vpop.f32.mrf.mxu1 }
 0x2b0   :  { %v1519_v32 = vmul.f32 %v6023_v37, %v5994_v57  ;;  %v6039_v22 = vadd.f32 %v5385_v46, %v1646_v27  ;;  %v1497_v61 = vsel %vm6030_vm7, %v5946_v50, %v1493_v16  ;;  %vm1514_vm8 = vweird.f32 %v5932_v39  ;;  %v7317_v16 = vld [vmem:[#allocation13_spill] sm:$0xff] }
 0x2b1   :  { %v1707_v13 = vmul.f32 0.5, %v5764_v8  ;;  %v6049_v30 = vadd.f32 %v5455_v12, %v1647_v4  ;;  %v1988_v53 = vpack.c.bf16 %v1962_v45, %v1960_v21  ;;  %v1212_v39 = vadd.f32 1e-06, %v1211_v51  ;;  %vm6065_vm10 = vmor %vm1514_vm8, %vm1515_vm6  ;;  %v1214_v45 = vpop.f32.mrf.mxu2 }
 0x2b2   :  { %v6046_v47 = vpop.eup %4401  ;;  %v1520_v50 = vmul.f32 %v6023_v37, %v1519_v32  ;;  %v1507_v8 = vsel %vm6055_vm9, %v5964_v36, %v1503_v5  ;;  %v1740_v52 = vmul.f32 0.044715, %v5771_v10  ;;  %v1742_v62 = vmul.f32 0.044715, %v5898_v23 }
 0x2b3   :  { %v1529_v28 = vmul.f32 %v6046_v47, %v6011_v35  ;;  %v1610_v18 = vmul.f32 %v1497_v61, %v7315_v7  ;;  %2216 = vmatmul.bf16.gmra.mxu0 %v1988_v53  ;;  %2314 = vmatmul.bf16.gmra.mxu2 %v1988_v53  ;;  %v1517_v36 = vsel %vm6065_vm10, %v5980_v17, %v1513_v44  ;;  %vm1524_vm11 = vweird.f32 %v5994_v57 }
 0x2b4   :  { %v4404_v24 = vpop.eup %4403  ;;  %v1521_v1 = vmul.f32 0.5, %v1520_v50  ;;  %v6077_v0 = vadd.f32 %v1260_v3, %v1212_v39  ;;  %v1772_v48 = vmul.f32 %v1740_v52, %v5771_v10  ;;  %v1774_v38 = vmul.f32 %v1742_v62, %v5898_v23 }
 0x2b5   :  { %v4406_v42 = vpop.eup %4405  ;;  %v1929_v2 = vadd.f32 1.0, %v4404_v24  ;;  %v1530_v19 = vmul.f32 %v6046_v47, %v1529_v28  ;;  %v1611_v56 = vmul.f32 %v1507_v8, %v7316_v59  ;;  %vm1534_vm12 = vweird.f32 %v6011_v35 }
 0x2b6   :  { %v1931_v58 = vadd.f32 1.0, %v4406_v42  ;;  %v1117_v17 = vadd.f32 1e-06, %v1116_v54  ;;  %4407 = vrsqrt.f32 %v6077_v0  ;;  %v1522_v27 = vsub.f32 1.5, %v1521_v1  ;;  %v1263_v54 = vpop.f32.mrf.mxu3  ;;  %v1118_v1 = vpop.f32.mrf.mxu0 }
 0x2b7   :  { %v1531_v25 = vmul.f32 0.5, %v1530_v19  ;;  %v1804_v29 = vmul.f32 %v1772_v48, %v5771_v10  ;;  %v1806_v41 = vmul.f32 %v1774_v38, %v5898_v23  ;;  %v1612_v15 = vmul.f32 %v1517_v36, %v7317_v16  ;;  %v1167_v59 = vpop.f32.mrf.mxu1 }
 0x2b8   :  { %v1961_v14 = vmul.f32 %v1929_v2, %v6015_v26  ;;  %v1963_v4 = vmul.f32 %v1931_v58, %v1707_v13  ;;  %v6090_v43 = vadd.f32 %v1165_v33, %v1117_v17  ;;  %v1648_v5 = vmul.f32 %v5374_v9, %v1610_v18 }
 0x2b9   :  { %v1532_v51 = vsub.f32 1.5, %v1531_v25  ;;  %v1836_v60 = vadd.f32 %v1804_v29, %v5771_v10  ;;  %v1838_v21 = vadd.f32 %v1806_v41, %v5898_v23  ;;  %v1649_v44 = vmul.f32 %v5442_v6, %v1611_v56  ;;  %v7322_v56 = vld [vmem:[#allocation15_spill] sm:$0xff]  ;;  %v7323_v25 = vld [vmem:[#allocation14_spill] sm:$0xff] }
 0x2ba   :  { %v1989_v32 = vpack.c.bf16 %v1963_v4, %v1961_v14  ;;  %vm1525_vm13 = vweird.f32 %v6023_v37  ;;  %4409 = vrsqrt.f32 %v6090_v43  ;;  %v1523_v26 = vmul.f32 %v6023_v37, %v1522_v27  ;;  %v1216_v14 = vpop.f32.mrf.mxu2 }
 0x2bb   :  { %vm1535_vm14 = vweird.f32 %v6046_v47  ;;  %v1868_v61 = vmul.f32 0.7978846, %v1836_v60  ;;  %v1870_v13 = vmul.f32 0.7978846, %v1838_v21  ;;  %v1650_v53 = vmul.f32 %v5374_v9, %v1612_v15  ;;  %vm6116_vm15 = vmor %vm1524_vm11, %vm1525_vm13 }
 0x2bc   :  { %v6100_v3 = vpop.eup %4407  ;;  %2265 = vmatmul.bf16.gmra.mxu1 %v1989_v32  ;;  %2363 = vmatmul.bf16.gmra.mxu3 %v1989_v32  ;;  %v1533_v11 = vmul.f32 %v6046_v47, %v1532_v51  ;;  %v1741_v50 = vmul.f32 0.044715, %v5807_v31  ;;  %v1743_v39 = vmul.f32 0.044715, %v5901_v20  ;;  %v6107_v8 = vadd.f32 %v5385_v46, %v1648_v5  ;;  %vm6132_vm0 = vmor %vm1534_vm12, %vm1535_vm14 }
 0x2bd   :  { %v1708_v40 = vmul.f32 0.5, %v5771_v10  ;;  %4411 = vtanh.f32 %v1868_v61  ;;  %v1539_v28 = vmul.f32 %v6100_v3, %v6077_v0  ;;  %v1710_v62 = vmul.f32 0.5, %v5898_v23 }
 0x2be   :  { %4413 = vtanh.f32 %v1870_v13  ;;  %v1215_v24 = vadd.f32 1e-06, %v1214_v45  ;;  %v1773_v7 = vmul.f32 %v1741_v50, %v5807_v31  ;;  %v6123_v10 = vadd.f32 %v5455_v12, %v1649_v44 }
 0x2bf   :  { %v1527_v18 = vsel %vm6116_vm15, %v6023_v37, %v1523_v26  ;;  %v1540_v23 = vmul.f32 %v6100_v3, %v1539_v28  ;;  %v1775_v36 = vmul.f32 %v1743_v39, %v5901_v20  ;;  %v6141_v2 = vadd.f32 %v5385_v46, %v1650_v53  ;;  %v1265_v28 = vpop.f32.mrf.mxu3 }
 0x2c0   :  { %v6138_v42 = vpop.eup %4409  ;;  %v1537_v37 = vsel %vm6132_vm0, %v6046_v47, %v1533_v11  ;;  %v1805_v35 = vmul.f32 %v1773_v7, %v5807_v31  ;;  %v6147_v19 = vadd.f32 %v1263_v54, %v1215_v24  ;;  %vm1544_vm1 = vweird.f32 %v6077_v0 }
 0x2c1   :  { %v1541_v48 = vmul.f32 0.5, %v1540_v23  ;;  %v1549_v38 = vmul.f32 %v6138_v42, %v6090_v43  ;;  %v1807_v33 = vmul.f32 %v1775_v36, %v5901_v20  ;;  %v1613_v58 = vmul.f32 %v1527_v18, %v7322_v56  ;;  %v7326_v36 = vld [vmem:[#allocation16_spill] sm:$0xff] }
 0x2c2   :  { %v1837_v17 = vadd.f32 %v1805_v35, %v5807_v31  ;;  %v1119_v27 = vadd.f32 1e-06, %v1118_v1  ;;  %4415 = vrsqrt.f32 %v6147_v19  ;;  %v1614_v29 = vmul.f32 %v1537_v37, %v7323_v25 }
 0x2c3   :  { %v4412_v47 = vpop.eup %4411  ;;  %v1542_v41 = vsub.f32 1.5, %v1541_v48  ;;  %v1550_v16 = vmul.f32 %v6138_v42, %v1549_v38  ;;  %v1839_v15 = vadd.f32 %v1807_v33, %v5901_v20  ;;  %vm1545_vm2 = vweird.f32 %v6100_v3 }
 0x2c4   :  { %v4414_v4 = vpop.eup %4413  ;;  %v1932_v5 = vadd.f32 1.0, %v4412_v47  ;;  %v1869_v51 = vmul.f32 0.7978846, %v1837_v17  ;;  %v6160_v60 = vadd.f32 %v1167_v59, %v1119_v27  ;;  %v1651_v26 = vmul.f32 %v5442_v6, %v1613_v58  ;;  %vm6167_vm3 = vmor %vm1544_vm1, %vm1545_vm2 }
 0x2c5   :  { %v1934_v21 = vadd.f32 1.0, %v4414_v4  ;;  %v1543_v45 = vmul.f32 %v6100_v3, %v1542_v41  ;;  %v1551_v44 = vmul.f32 0.5, %v1550_v16  ;;  %v1871_v32 = vmul.f32 0.7978846, %v1839_v15 }
 0x2c6   :  { %4417 = vtanh.f32 %v1869_v51  ;;  %v1217_v61 = vadd.f32 1e-06, %v1216_v14  ;;  %v1744_v13 = vmul.f32 0.044715, %v5907_v55  ;;  %v1964_v53 = vmul.f32 %v1932_v5, %v1708_v40 }
 0x2c7   :  { %v1966_v11 = vmul.f32 %v1934_v21, %v1710_v62  ;;  %v1552_v39 = vsub.f32 1.5, %v1551_v44  ;;  %4419 = vtanh.f32 %v1871_v32  ;;  %v1547_v52 = vsel %vm6167_vm3, %v6100_v3, %v1543_v45 }
 0x2c8   :  { %v6171_v54 = vpop.eup %4415  ;;  %4421 = vrsqrt.f32 %v6160_v60  ;;  %v1746_v40 = vmul.f32 0.044715, %v5940_v63  ;;  %v1776_v62 = vmul.f32 %v1744_v13, %v5907_v55  ;;  %v1652_v0 = vmul.f32 %v5374_v9, %v1614_v29 }
 0x2c9   :  { %v1990_v24 = vpack.c.bf16 %v1966_v11, %v1964_v53  ;;  %vm1554_vm4 = vweird.f32 %v6090_v43  ;;  %v1559_v7 = vmul.f32 %v6171_v54, %v6147_v19  ;;  %v1709_v18 = vmul.f32 0.5, %v5807_v31 }
 0x2ca   :  { %v1778_v57 = vmul.f32 %v1746_v40, %v5940_v63  ;;  %v1808_v3 = vmul.f32 %v1776_v62, %v5907_v55  ;;  %v6186_v23 = vadd.f32 %v1265_v28, %v1217_v61  ;;  %v1615_v1 = vmul.f32 %v1547_v52, %v7326_v36 }
 0x2cb   :  { %2221 = vmatmul.bf16.gmra.mxu0 %v1990_v24  ;;  %2319 = vmatmul.bf16.gmra.mxu2 %v1990_v24  ;;  %v1553_v37 = vmul.f32 %v6138_v42, %v1552_v39  ;;  %vm1555_vm5 = vweird.f32 %v6138_v42  ;;  %v1560_v35 = vmul.f32 %v6171_v54, %v1559_v7  ;;  %v6193_v38 = vadd.f32 %v5455_v12, %v1651_v26 }
 0x2cc   :  { %v4418_v48 = vpop.eup %4417  ;;  %v1711_v31 = vmul.f32 0.5, %v5901_v20  ;;  %v1810_v33 = vmul.f32 %v1778_v57, %v5940_v63  ;;  %v1840_v59 = vadd.f32 %v1808_v3, %v5907_v55  ;;  %v6199_v58 = vadd.f32 %v5385_v46, %v1652_v0  ;;  %vm6207_vm6 = vmor %vm1554_vm4, %vm1555_vm5 }
 0x2cd   :  { %v4420_v56 = vpop.eup %4419  ;;  %v1933_v17 = vadd.f32 1.0, %v4418_v48  ;;  %v6202_v27 = vmul.f32 0.5, %v5907_v55  ;;  %4423 = vrsqrt.f32 %v6186_v23  ;;  %v1714_v29 = vmul.f32 0.5, %v5940_v63 }
 0x2ce   :  { %v4422_v47 = vpop.eup %4421  ;;  %v1935_v20 = vadd.f32 1.0, %v4420_v56  ;;  %v1842_v41 = vadd.f32 %v1810_v33, %v5940_v63  ;;  %v1872_v16 = vmul.f32 0.7978846, %v1840_v59  ;;  %v1653_v15 = vmul.f32 %v5442_v6, %v1615_v1 }
 0x2cf   :  { %v1557_v55 = vsel %vm6207_vm6, %v6138_v42, %v1553_v37  ;;  %v1561_v14 = vmul.f32 0.5, %v1560_v35  ;;  %v1569_v4 = vmul.f32 %v4422_v47, %v6160_v60  ;;  %vm1574_vm7 = vweird.f32 %v6160_v60  ;;  %v7329_v42 = vld [vmem:[#allocation17_spill] sm:$0xff] }
 0x2d0   :  { %v1965_v43 = vmul.f32 %v1933_v17, %v1709_v18  ;;  %v1967_v5 = vmul.f32 %v1935_v20, %v1711_v31  ;;  %v1874_v51 = vmul.f32 0.7978846, %v1842_v41  ;;  %4425 = vtanh.f32 %v1872_v16  ;;  %v7330_v16 = vld [vmem:[#allocation18_spill] sm:$0xff] }
 0x2d1   :  { %vm1565_vm8 = vweird.f32 %v6171_v54  ;;  %v1570_v21 = vmul.f32 %v4422_v47, %v1569_v4  ;;  %v6221_v63 = vmul.f32 0.5, %v5937_v34  ;;  %v1745_v45 = vmul.f32 0.044715, %v5937_v34 }
 0x2d2   :  { %v1747_v44 = vmul.f32 0.044715, %v5983_v49  ;;  %v1616_v32 = vmul.f32 %v1557_v55, %v7329_v42  ;;  %v1991_v26 = vpack.c.bf16 %v1967_v5, %v1965_v43  ;;  %4427 = vtanh.f32 %v1874_v51 }
 0x2d3   :  { %v6227_v61 = vmul.f32 0.5, %v5983_v49  ;;  %v4424_v13 = vpop.eup %4423  ;;  %v6230_v53 = vadd.f32 %v5455_v12, %v1653_v15  ;;  %vm1564_vm9 = vweird.f32 %v6147_v19  ;;  %v1571_v11 = vmul.f32 0.5, %v1570_v21 }
 0x2d4   :  { %v1777_v50 = vmul.f32 %v1745_v45, %v5937_v34  ;;  %v1779_v39 = vmul.f32 %v1747_v44, %v5983_v49  ;;  %2270 = vmatmul.bf16.gmra.mxu1 %v1991_v26  ;;  %2368 = vmatmul.bf16.gmra.mxu3 %v1991_v26  ;;  %v1562_v28 = vsub.f32 1.5, %v1561_v14  ;;  %vm1575_vm10 = vweird.f32 %v4422_v47  ;;  %vm6262_vm14 = vmor %vm1564_vm9, %vm1565_vm8  ;;  %v7333_v26 = vld [vmem:[#allocation20_spill] sm:$0xff] }
 0x2d5   :  { %v1579_v52 = vmul.f32 %v4424_v13, %v6186_v23  ;;  %v1748_v40 = vmul.f32 0.044715, %v6039_v22  ;;  %v1572_v62 = vsub.f32 1.5, %v1571_v11  ;;  %v1750_v7 = vmul.f32 0.044715, %v6107_v8  ;;  %vm1576_vm12 = vmor %vm1574_vm7, %vm1575_vm10 }
 0x2d6   :  { %v1809_v0 = vmul.f32 %v1777_v50, %v5937_v34  ;;  %v1811_v24 = vmul.f32 %v1779_v39, %v5983_v49  ;;  %v4426_v18 = vpop.eup %4425  ;;  %v1654_v57 = vmul.f32 %v5374_v9, %v1616_v32  ;;  %vm1584_vm11 = vweird.f32 %v6186_v23 }
 0x2d7   :  { %v1580_v3 = vmul.f32 %v4424_v13, %v1579_v52  ;;  %v1780_v36 = vmul.f32 %v1748_v40, %v6039_v22  ;;  %v1573_v1 = vmul.f32 %v4422_v47, %v1572_v62  ;;  %v1936_v37 = vadd.f32 1.0, %v4426_v18 }
 0x2d8   :  { %v1841_v35 = vadd.f32 %v1809_v0, %v5937_v34  ;;  %v1843_v48 = vadd.f32 %v1811_v24, %v5983_v49  ;;  %v4428_v31 = vpop.eup %4427  ;;  %v1563_v33 = vmul.f32 %v6171_v54, %v1562_v28  ;;  %v1782_v56 = vmul.f32 %v1750_v7, %v6107_v8 }
 0x2d9   :  { %v1581_v59 = vmul.f32 0.5, %v1580_v3  ;;  %v1812_v17 = vmul.f32 %v1780_v36, %v6039_v22  ;;  %v1577_v25 = vsel %vm1576_vm12, %v4422_v47, %v1573_v1  ;;  %v1938_v20 = vadd.f32 1.0, %v4428_v31 }
 0x2da   :  { %vm1585_vm13 = vweird.f32 %v4424_v13  ;;  %v1873_v41 = vmul.f32 0.7978846, %v1841_v35  ;;  %v1618_v34 = vmul.f32 %v1577_v25, %v7330_v16  ;;  %v1875_v49 = vmul.f32 0.7978846, %v1843_v48 }
 0x2db   :  { %v1582_v15 = vsub.f32 1.5, %v1581_v59  ;;  %v1814_v55 = vmul.f32 %v1782_v56, %v6107_v8  ;;  %v1968_v14 = vmul.f32 %v1936_v37, %v6202_v27  ;;  %v1970_v4 = vmul.f32 %v1938_v20, %v1714_v29  ;;  %vm1586_vm15 = vmor %vm1584_vm11, %vm1585_vm13 }
 0x2dc   :  { %4429 = vtanh.f32 %v1873_v41  ;;  %v1844_v60 = vadd.f32 %v1812_v17, %v6039_v22  ;;  %v6256_v43 = vadd.f32 %v5385_v46, %v1654_v57  ;;  %v1749_v21 = vmul.f32 0.044715, %v6049_v30 }
 0x2dd   :  { %v1583_v5 = vmul.f32 %v4424_v13, %v1582_v15  ;;  %4431 = vtanh.f32 %v1875_v49  ;;  %v1846_v51 = vadd.f32 %v1814_v55, %v6107_v8  ;;  %v1992_v27 = vpack.c.bf16 %v1970_v4, %v1968_v14 }
 0x2de   :  { %v1876_v29 = vmul.f32 0.7978846, %v1844_v60  ;;  %v1751_v45 = vmul.f32 0.044715, %v6123_v10  ;;  %v1567_v19 = vsel %vm6262_vm14, %v6171_v54, %v1563_v33  ;;  %v1656_v44 = vmul.f32 %v5374_v9, %v1618_v34  ;;  %v7334_v9 = vld [vmem:[#allocation19_spill] sm:$0xff] }
 0x2df   :  { %v1587_v42 = vsel %vm1586_vm15, %v4424_v13, %v1583_v5  ;;  %v1878_v32 = vmul.f32 0.7978846, %v1846_v51  ;;  %2226 = vmatmul.bf16.gmra.mxu0 %v1992_v27  ;;  %2324 = vmatmul.bf16.gmra.mxu2 %v1992_v27  ;;  %v1781_v23 = vmul.f32 %v1749_v21, %v6049_v30  ;;  %v1716_v39 = vmul.f32 0.5, %v6039_v22 }
 0x2e0   :  { %v1619_v11 = vmul.f32 %v1587_v42, %v7333_v26  ;;  %4433 = vtanh.f32 %v1876_v29  ;;  %v1783_v50 = vmul.f32 %v1751_v45, %v6123_v10  ;;  %v1752_v28 = vmul.f32 0.044715, %v6141_v2 }
 0x2e1   :  { %4435 = vtanh.f32 %v1878_v32  ;;  %v1754_v54 = vmul.f32 0.044715, %v6199_v58  ;;  %v1617_v13 = vmul.f32 %v1567_v19, %v7334_v9  ;;  %v1718_v40 = vmul.f32 0.5, %v6107_v8 }
 0x2e2   :  { %v4430_v52 = vpop.eup %4429  ;;  %v1813_v62 = vmul.f32 %v1781_v23, %v6049_v30  ;;  %v1815_v0 = vmul.f32 %v1783_v50, %v6123_v10  ;;  %v6287_v7 = vadd.f32 %v5385_v46, %v1656_v44  ;;  %v1784_v22 = vmul.f32 %v1752_v28, %v6141_v2 }
 0x2e3   :  { %v4432_v24 = vpop.eup %4431  ;;  %v1937_v18 = vadd.f32 1.0, %v4430_v52  ;;  %v1786_v57 = vmul.f32 %v1754_v54, %v6199_v58  ;;  %v1657_v3 = vmul.f32 %v5442_v6, %v1619_v11  ;;  %v1753_v46 = vmul.f32 0.044715, %v6193_v38 }
 0x2e4   :  { %v1939_v36 = vadd.f32 1.0, %v4432_v24  ;;  %v1845_v1 = vadd.f32 %v1813_v62, %v6049_v30  ;;  %v1847_v8 = vadd.f32 %v1815_v0, %v6123_v10  ;;  %v1816_v35 = vmul.f32 %v1784_v22, %v6141_v2 }
 0x2e5   :  { %v1969_v37 = vmul.f32 %v1937_v18, %v6221_v63  ;;  %v1818_v48 = vmul.f32 %v1786_v57, %v6199_v58  ;;  %v1755_v17 = vmul.f32 0.044715, %v6230_v53  ;;  %v1785_v63 = vmul.f32 %v1753_v46, %v6193_v38 }
 0x2e6   :  { %v4434_v31 = vpop.eup %4433  ;;  %v1971_v33 = vmul.f32 %v1939_v36, %v6227_v61  ;;  %v1877_v59 = vmul.f32 0.7978846, %v1845_v1  ;;  %v1879_v56 = vmul.f32 0.7978846, %v1847_v8  ;;  %v1848_v41 = vadd.f32 %v1816_v35, %v6141_v2 }
 0x2e7   :  { %v4436_v25 = vpop.eup %4435  ;;  %v1940_v20 = vadd.f32 1.0, %v4434_v31  ;;  %v1850_v16 = vadd.f32 %v1818_v48, %v6199_v58  ;;  %v1787_v49 = vmul.f32 %v1755_v17, %v6230_v53  ;;  %v1655_v47 = vmul.f32 %v5442_v6, %v1617_v13 }
 0x2e8   :  { %v1993_v34 = vpack.c.bf16 %v1971_v33, %v1969_v37  ;;  %v1942_v15 = vadd.f32 1.0, %v4436_v25  ;;  %4437 = vtanh.f32 %v1877_v59  ;;  %v1880_v55 = vmul.f32 0.7978846, %v1848_v41 }
 0x2e9   :  { %4439 = vtanh.f32 %v1879_v56  ;;  %v1882_v61 = vmul.f32 0.7978846, %v1850_v16  ;;  %v1972_v14 = vmul.f32 %v1940_v20, %v1716_v39  ;;  %v1819_v60 = vmul.f32 %v1787_v49, %v6230_v53 }
 0x2ea   :  { %2275 = vmatmul.bf16.gmra.mxu1 %v1993_v34  ;;  %2373 = vmatmul.bf16.gmra.mxu3 %v1993_v34  ;;  %v1974_v4 = vmul.f32 %v1942_v15, %v1718_v40  ;;  %v1817_v5 = vmul.f32 %v1785_v63, %v6193_v38  ;;  %v1756_v51 = vmul.f32 0.044715, %v6256_v43  ;;  %v1758_v27 = vmul.f32 0.044715, %v6287_v7 }
 0x2eb   :  { %v6310_v29 = vadd.f32 %v5455_v12, %v1657_v3  ;;  %4441 = vtanh.f32 %v1882_v61  ;;  %v1851_v45 = vadd.f32 %v1819_v60, %v6230_v53  ;;  %v6316_v32 = vadd.f32 %v5455_v12, %v1655_v47 }
 0x2ec   :  { %v1994_v21 = vpack.c.bf16 %v1974_v4, %v1972_v14  ;;  %4443 = vtanh.f32 %v1880_v55  ;;  %v1788_v19 = vmul.f32 %v1756_v51, %v6256_v43  ;;  %v1790_v44 = vmul.f32 %v1758_v27, %v6287_v7 }
 0x2ed   :  { %v1849_v26 = vadd.f32 %v1817_v5, %v6193_v38  ;;  %v1719_v23 = vmul.f32 0.5, %v6123_v10  ;;  %v1883_v28 = vmul.f32 0.7978846, %v1851_v45  ;;  %v1759_v52 = vmul.f32 0.044715, %v6310_v29 }
 0x2ee   :  { %v4438_v42 = vpop.eup %4437  ;;  %v1822_v11 = vmul.f32 %v1790_v44, %v6287_v7  ;;  %v1820_v54 = vmul.f32 %v1788_v19, %v6256_v43  ;;  %v1717_v13 = vmul.f32 0.5, %v6049_v30  ;;  %v1757_v24 = vmul.f32 0.044715, %v6316_v32 }
 0x2ef   :  { %v4440_v6 = vpop.eup %4439  ;;  %2231 = vmatmul.bf16.gmra.mxu0 %v1994_v21  ;;  %2329 = vmatmul.bf16.gmra.mxu2 %v1994_v21  ;;  %v1941_v50 = vadd.f32 1.0, %v4438_v42  ;;  %v1881_v62 = vmul.f32 0.7978846, %v1849_v26  ;;  %4445 = vtanh.f32 %v1883_v28  ;;  %v1791_v57 = vmul.f32 %v1759_v52, %v6310_v29 }
 0x2f0   :  { %v1943_v39 = vadd.f32 1.0, %v4440_v6  ;;  %v1854_v0 = vadd.f32 %v1822_v11, %v6287_v7  ;;  %v1852_v10 = vadd.f32 %v1820_v54, %v6256_v43  ;;  %v1722_v36 = vmul.f32 0.5, %v6199_v58 }
 0x2f1   :  { %v4442_v9 = vpop.eup %4441  ;;  %v1973_v18 = vmul.f32 %v1941_v50, %v1717_v13  ;;  %4447 = vtanh.f32 %v1881_v62  ;;  %v1789_v8 = vmul.f32 %v1757_v24, %v6316_v32  ;;  %v1720_v37 = vmul.f32 0.5, %v6141_v2 }
 0x2f2   :  { %v1975_v12 = vmul.f32 %v1943_v39, %v1719_v23  ;;  %v4444_v40 = vpop.eup %4443  ;;  %v1946_v22 = vadd.f32 1.0, %v4442_v9  ;;  %v1886_v30 = vmul.f32 0.7978846, %v1854_v0  ;;  %v1884_v48 = vmul.f32 0.7978846, %v1852_v10 }
 0x2f3   :  { %v1944_v1 = vadd.f32 1.0, %v4444_v40  ;;  %v1823_v46 = vmul.f32 %v1791_v57, %v6310_v29  ;;  %v1821_v59 = vmul.f32 %v1789_v8, %v6316_v32  ;;  %v1723_v2 = vmul.f32 0.5, %v6230_v53  ;;  %v2032_v53 = vld [vmem:[%s7231_s8] sm:$0x3] }
 0x2f4   :  { %v1995_v3 = vpack.c.bf16 %v1975_v12, %v1973_v18  ;;  %v1978_v35 = vmul.f32 %v1946_v22, %v1722_v36  ;;  %4449 = vtanh.f32 %v1886_v30  ;;  %v1721_v34 = vmul.f32 0.5, %v6193_v38 }
 0x2f5   :  { %v1976_v31 = vmul.f32 %v1944_v1, %v1720_v37  ;;  %v4446_v33 = vpop.eup %4445  ;;  %4451 = vtanh.f32 %v1884_v48  ;;  %v1855_v17 = vadd.f32 %v1823_v46, %v6310_v29  ;;  %v1853_v20 = vadd.f32 %v1821_v59, %v6316_v32 }
 0x2f6   :  { %v1947_v25 = vadd.f32 1.0, %v4446_v33  ;;  %v1726_v60 = vmul.f32 0.5, %v6287_v7  ;;  %v1724_v5 = vmul.f32 0.5, %v6256_v43  ;;  %v6342_v44 = vperm.slane %v2032_v53, 0 }
 0x2f7   :  { %v1996_v56 = vpack.c.bf16 %v1978_v35, %v1976_v31  ;;  %v4448_v58 = vpop.eup %4447  ;;  %v1887_v63 = vmul.f32 0.7978846, %v1855_v17  ;;  %v1885_v55 = vmul.f32 0.7978846, %v1853_v20  ;;  %v6344_v42 = vperm.slane %v2032_v53, 1 }
 0x2f8   :  { %v1945_v41 = vadd.f32 1.0, %v4448_v58  ;;  %v1979_v15 = vmul.f32 %v1947_v25, %v1723_v2  ;;  %v1727_v43 = vmul.f32 0.5, %v6310_v29  ;;  %v1725_v28 = vmul.f32 0.5, %v6316_v32 }
 0x2f9   :  { %4453 = vtanh.f32 %v1887_v63  ;;  %v2207_v21 = vpop.f32.mrf.mxu0  ;;  %vm3487_vm14 = vcmask 261120  }
 0x2fa   :  { %2280 = vmatmul.bf16.gmra.mxu1 %v1995_v3  ;;  %2378 = vmatmul.bf16.gmra.mxu3 %v1995_v3  ;;  %v4450_v16 = vpop.eup %4449  ;;  %v1977_v61 = vmul.f32 %v1945_v41, %v1721_v34  ;;  %4455 = vtanh.f32 %v1885_v55  ;;  %v2208_v23 = vadd.f32 %v2207_v21, %v6342_v44 }
 0x2fb   :  { %v4452_v49 = vpop.eup %4451  ;;  %v1950_v14 = vadd.f32 1.0, %v4450_v16 }
 0x2fc   :  { %v1997_v4 = vpack.c.bf16 %v1979_v15, %v1977_v61  ;;  %v1948_v47 = vadd.f32 1.0, %v4452_v49 }
 0x2fd   :  { %v1982_v51 = vmul.f32 %v1950_v14, %v1726_v60 }
 0x2fe   :  { %v1980_v38 = vmul.f32 %v1948_v47, %v1724_v5 }
 0x2ff   :  { %2236 = vmatmul.bf16.gmra.mxu0 %v1996_v56  ;;  %2334 = vmatmul.bf16.gmra.mxu2 %v1996_v56  ;;  %v4454_v27 = vpop.eup %4453  ;;  %v2305_v45 = vpop.f32.mrf.mxu2 }
 0x300   :  { %v1998_v19 = vpack.c.bf16 %v1982_v51, %v1980_v38  ;;  %v4456_v7 = vpop.eup %4455  ;;  %v1951_v26 = vadd.f32 1.0, %v4454_v27  ;;  %v2306_v50 = vadd.f32 %v2305_v45, %v6344_v42 }
 0x301   :  { %v1949_v11 = vadd.f32 1.0, %v4456_v7  ;;  %v2209_v40 = vpop.f32.mrf.mxu0 }
 0x302   :  { %v1983_v54 = vmul.f32 %v1951_v26, %v1727_v43  ;;  %v2210_v24 = vadd.f32 %v2209_v40, %v6342_v44 }
 0x303   :  { %v1981_v13 = vmul.f32 %v1949_v11, %v1725_v28 }
 0x305   :  { %v1999_v29 = vpack.c.bf16 %v1983_v54, %v1981_v13 }
 0x307   :  { %v2307_v62 = vpop.f32.mrf.mxu2 }
 0x308   :  { %v2308_v18 = vadd.f32 %v2307_v62, %v6344_v42 }
 0x309   :  { %v2256_v6 = vpop.f32.mrf.mxu1 }
 0x30a   :  { %2285 = vmatmul.bf16.gmra.mxu1 %v1997_v4  ;;  %2383 = vmatmul.bf16.gmra.mxu3 %v1997_v4  ;;  %v6350_v52 = vadd.f32 %v2256_v6, %v2208_v23 }
 0x30f   :  { %2241 = vmatmul.bf16.gmra.mxu0 %v1998_v19  ;;  %2339 = vmatmul.bf16.gmra.mxu2 %v1998_v19  ;;  %v2354_v39 = vpop.f32.mrf.mxu3 }
 0x310   :  { %v6352_v9 = vadd.f32 %v2354_v39, %v2306_v50 }
 0x311   :  { %v2258_v0 = vpop.f32.mrf.mxu1 }
 0x312   :  { %v2394_v12 = vadd.f32 %v6352_v9, %v6350_v52  ;;  %v6358_v32 = vadd.f32 %v2258_v0, %v2210_v24 }
 0x314   :  { %2395 = vadd.xlane.f32.xlu0 %v2394_v12 }
 0x316   :  { %v2212_v3 = vpop.f32.mrf.mxu0 }
 0x317   :  { %v2356_v22 = vpop.f32.mrf.mxu3  ;;  %v2213_v30 = vadd.f32 %v2212_v3, %v6342_v44 }
 0x318   :  { %v6360_v10 = vadd.f32 %v2356_v22, %v2308_v18 }
 0x31a   :  { %2290 = vmatmul.bf16.gmra.mxu1 %v1999_v29  ;;  %2388 = vmatmul.bf16.gmra.mxu3 %v1999_v29  ;;  %v2397_v57 = vadd.f32 %v6360_v10, %v6358_v32 }
 0x31c   :  { %2398 = vadd.xlane.f32.xlu0 %v2397_v57  ;;  %v2310_v36 = vpop.f32.mrf.mxu2 }
 0x31d   :  { %v2311_v8 = vadd.f32 %v2310_v36, %v6344_v42 }
 0x31e   :  { %v2214_v31 = vpop.f32.mrf.mxu0 }
 0x31f   :  { %v2215_v56 = vadd.f32 %v2214_v31, %v6342_v44 }
 0x322   :  { %v2261_v1 = vpop.f32.mrf.mxu1 }
 0x323   :  { %v6366_v35 = vadd.f32 %v2261_v1, %v2213_v30 }
 0x324   :  { %v2312_v33 = vpop.f32.mrf.mxu2 }
 0x325   :  { %v2313_v58 = vadd.f32 %v2312_v33, %v6344_v42 }
 0x328   :  { %v2359_v37 = vpop.f32.mrf.mxu3 }
 0x329   :  { %v6368_v48 = vadd.f32 %v2359_v37, %v2311_v8  ;;  %v4636_v37 = vmov 256.0  }
 0x32a   :  { %v2263_v59 = vpop.f32.mrf.mxu1  ;;  %4457 = vrcp.f32 %v4636_v37 }
 0x32b   :  { %v2400_v46 = vadd.f32 %v6368_v48, %v6366_v35  ;;  %v6374_v25 = vadd.f32 %v2263_v59, %v2215_v56 }
 0x32d   :  { %2401 = vadd.xlane.f32.xlu1 %v2400_v46 }
 0x330   :  { %v2361_v17 = vpop.f32.mrf.mxu3  ;;  %v2217_v41 = vpop.f32.mrf.mxu0 }
 0x331   :  { %v6376_v20 = vadd.f32 %v2361_v17, %v2313_v58  ;;  %v2218_v34 = vadd.f32 %v2217_v41, %v6342_v44  ;;  %v4458_v46 = vpop.eup %4457 }
 0x332   :  { %v2443_v31 = vmul.f32 256.0, %v4458_v46  ;;  %vm2447_vm0 = vweird.f32 %v4458_v46 }
 0x333   :  { %v2403_v2 = vadd.f32 %v6376_v20, %v6374_v25 }
 0x334   :  { %v2444_v33 = vsub.f32 1.0, %v2443_v31 }
 0x335   :  { %2404 = vadd.xlane.f32.xlu1 %v2403_v2 }
 0x336   :  { %v2315_v16 = vpop.f32.mrf.mxu2  ;;  %v2445_v59 = vmul.f32 %v4458_v46, %v2444_v33 }
 0x337   :  { %v2316_v15 = vadd.f32 %v2315_v16, %v6344_v42 }
 0x338   :  { %v2219_v4 = vpop.f32.mrf.mxu0  ;;  %v2446_v58 = vadd.f32 %v4458_v46, %v2445_v59 }
 0x339   :  { %v2266_v63 = vpop.f32.mrf.mxu1  ;;  %v2220_v5 = vadd.f32 %v2219_v4, %v6342_v44 }
 0x33a   :  { %v6382_v55 = vadd.f32 %v2266_v63, %v2218_v34  ;;  %v6420_v17 = vsel %vm2447_vm0, %v4458_v46, %v2446_v58 }
 0x33e   :  { %v2317_v60 = vpop.f32.mrf.mxu2 }
 0x33f   :  { %v2364_v49 = vpop.f32.mrf.mxu3  ;;  %v2318_v51 = vadd.f32 %v2317_v60, %v6344_v42 }
 0x340   :  { %v6384_v61 = vadd.f32 %v2364_v49, %v2316_v15 }
 0x341   :  { %v2268_v47 = vpop.f32.mrf.mxu1 }
 0x342   :  { %v2406_v14 = vadd.f32 %v6384_v61, %v6382_v55  ;;  %v6390_v38 = vadd.f32 %v2268_v47, %v2220_v5 }
 0x344   :  { %2407 = vadd.xlane.f32.xlu2 %v2406_v14 }
 0x347   :  { %v2366_v53 = vpop.f32.mrf.mxu3 }
 0x348   :  { %v6392_v27 = vadd.f32 %v2366_v53, %v2318_v51  ;;  %v2222_v45 = vpop.f32.mrf.mxu0 }
 0x349   :  { %v2223_v6 = vadd.f32 %v2222_v45, %v6342_v44 }
 0x34a   :  { %v2409_v21 = vadd.f32 %v6392_v27, %v6390_v38 }
 0x34c   :  { %2410 = vadd.xlane.f32.xlu2 %v2409_v21 }
 0x34e   :  { %v2320_v19 = vpop.f32.mrf.mxu2 }
 0x34f   :  { %v2321_v26 = vadd.f32 %v2320_v19, %v6344_v42 }
 0x350   :  { %v2224_v39 = vpop.f32.mrf.mxu0 }
 0x351   :  { %v2271_v7 = vpop.f32.mrf.mxu1  ;;  %v2225_v13 = vadd.f32 %v2224_v39, %v6342_v44 }
 0x352   :  { %v6398_v11 = vadd.f32 %v2271_v7, %v2223_v6 }
 0x356   :  { %v2322_v28 = vpop.f32.mrf.mxu2 }
 0x357   :  { %v2369_v43 = vpop.f32.mrf.mxu3  ;;  %v2323_v12 = vadd.f32 %v2322_v28, %v6344_v42 }
 0x358   :  { %v6400_v23 = vadd.f32 %v2369_v43, %v2321_v26 }
 0x359   :  { %v2273_v54 = vpop.f32.mrf.mxu1 }
 0x35a   :  { %v2412_v50 = vadd.f32 %v6400_v23, %v6398_v11  ;;  %v6406_v62 = vadd.f32 %v2273_v54, %v2225_v13 }
 0x35c   :  { %2413 = vadd.xlane.f32.xlu0 %v2412_v50  ;;  %v2227_v24 = vpop.f32.mrf.mxu0 }
 0x35d   :  { %v2228_v57 = vadd.f32 %v2227_v24, %v6342_v44 }
 0x35f   :  { %v2371_v40 = vpop.f32.mrf.mxu3 }
 0x360   :  { %v6408_v29 = vadd.f32 %v2371_v40, %v2323_v12 }
 0x362   :  { %v2415_v0 = vadd.f32 %v6408_v29, %v6406_v62  ;;  %v2325_v18 = vpop.f32.mrf.mxu2 }
 0x363   :  { %v2326_v3 = vadd.f32 %v2325_v18, %v6344_v42 }
 0x364   :  { %2416 = vadd.xlane.f32.xlu1 %v2415_v0  ;;  %v2229_v14 = vpop.f32.mrf.mxu0 }
 0x365   :  { %v2230_v45 = vadd.f32 %v2229_v14, %v6342_v44 }
 0x367   :  { %v2276_v22 = vpop.f32.mrf.mxu1 }
 0x368   :  { %v6414_v1 = vadd.f32 %v2276_v22, %v2228_v57 }
 0x36a   :  { %v2327_v63 = vpop.f32.mrf.mxu2 }
 0x36b   :  { %v2328_v51 = vadd.f32 %v2327_v63, %v6344_v42 }
 0x36c   :  { %v2232_v26 = vpop.f32.mrf.mxu0 }
 0x36d   :  { %v2374_v36 = vpop.f32.mrf.mxu3  ;;  %v2233_v28 = vadd.f32 %v2232_v26, %v6342_v44 }
 0x36e   :  { %v6416_v30 = vadd.f32 %v2374_v36, %v2326_v3 }
 0x36f   :  { %v2278_v5 = vpop.f32.mrf.mxu1 }
 0x370   :  { %v2418_v8 = vadd.f32 %v6416_v30, %v6414_v1  ;;  %v6448_v6 = vadd.f32 %v2278_v5, %v2230_v45 }
 0x372   :  { %2419 = vadd.xlane.f32.xlu1 %v2418_v8 }
 0x374   :  { %v2234_v36 = vpop.f32.mrf.mxu0 }
 0x375   :  { %v2376_v4 = vpop.f32.mrf.mxu3 }
 0x376   :  { %v6446_v19 = vadd.f32 %v2376_v4, %v2328_v51 }
 0x377   :  { %v2281_v39 = vpop.f32.mrf.mxu1 }
 0x378   :  { %v6456_v13 = vadd.f32 %v2281_v39, %v2233_v28 }
 0x37c   :  { %v2237_v4 = vpop.f32.mrf.mxu0 }
 0x37d   :  { %v2379_v43 = vpop.f32.mrf.mxu3 }
 0x37f   :  { %v2283_v46 = vpop.f32.mrf.mxu1 }
 0x385   :  { %v2381_v8 = vpop.f32.mrf.mxu3 }
 0x387   :  { %v2396_v56 = vpop.xlane.xlu0 %2395 }
 0x388   :  { %v2449_v2 = vmul.f32 %v6420_v17, %v2396_v56 }
 0x38a   :  { %v6424_v41 = vsub.f32 %v6350_v52, %v2449_v2  ;;  %v6427_v16 = vsub.f32 %v6352_v9, %v2449_v2 }
 0x38c   :  { %v2497_v15 = vmul.f32 %v6424_v41, %v6424_v41  ;;  %v2498_v49 = vmul.f32 %v6427_v16, %v6427_v16 }
 0x38e   :  { %v2529_v47 = vadd.f32 %v2498_v49, %v2497_v15 }
 0x38f   :  { %v2399_v34 = vpop.xlane.xlu0 %2398 }
 0x390   :  { %v2450_v60 = vmul.f32 %v6420_v17, %v2399_v34  ;;  %2530 = vadd.xlane.f32.xlu2 %v2529_v47  ;;  %v2238_v47 = vadd.f32 %v2237_v4, %v6342_v44  ;;  %v4286_v4 = vld [vmem:[%s7234_s11 + $0x78] sm:$0xff] }
 0x391   :  { %3362 = vmatpush.bf16.msra.mxu1 %v4286_v4 }
 0x392   :  { %v6435_v52 = vsub.f32 %v6358_v32, %v2450_v60  ;;  %v6438_v9 = vsub.f32 %v6360_v10, %v2450_v60  ;;  %v2330_v32 = vpop.f32.mrf.mxu2  ;;  %v2421_v10 = vadd.f32 %v6446_v19, %v6448_v6  ;;  %v2384_v60 = vpop.f32.mrf.mxu3 }
 0x393   :  { %v2331_v50 = vadd.f32 %v2330_v32, %v6344_v42 }
 0x394   :  { %v2499_v53 = vmul.f32 %v6435_v52, %v6435_v52  ;;  %v2500_v21 = vmul.f32 %v6438_v9, %v6438_v9 }
 0x395   :  { %v6454_v54 = vadd.f32 %v2379_v43, %v2331_v50  ;;  %v2239_v50 = vpop.f32.mrf.mxu0 }
 0x396   :  { %v2532_v7 = vadd.f32 %v2500_v21, %v2499_v53 }
 0x397   :  { %v2424_v0 = vadd.f32 %v6454_v54, %v6456_v13 }
 0x398   :  { %2533 = vadd.xlane.f32.xlu0 %v2532_v7  ;;  %2422 = vadd.xlane.f32.xlu2 %v2421_v10 }
 0x39a   :  { %v2332_v22 = vpop.f32.mrf.mxu2  ;;  %v2386_v39 = vpop.f32.mrf.mxu3 }
 0x39b   :  { %v2333_v33 = vadd.f32 %v2332_v22, %v6344_v42 }
 0x39d   :  { %v6474_v59 = vadd.f32 %v2381_v8, %v2333_v33 }
 0x3a0   :  { %v2402_v12 = vpop.xlane.xlu1 %2401  ;;  %2425 = vadd.xlane.f32.xlu2 %v2424_v0 }
 0x3a1   :  { %v2451_v40 = vmul.f32 %v6420_v17, %v2402_v12 }
 0x3a2   :  { %v2335_v15 = vpop.f32.mrf.mxu2 }
 0x3a3   :  { %v6462_v24 = vsub.f32 %v6366_v35, %v2451_v40  ;;  %v6465_v18 = vsub.f32 %v6368_v48, %v2451_v40  ;;  %v2235_v48 = vadd.f32 %v2234_v36, %v6342_v44 }
 0x3a5   :  { %v2501_v57 = vmul.f32 %v6462_v24, %v6462_v24  ;;  %v2502_v3 = vmul.f32 %v6465_v18, %v6465_v18  ;;  %v6482_v2 = vadd.f32 %v2283_v46, %v2235_v48  ;;  %v2389_v48 = vpop.f32.mrf.mxu3 }
 0x3a7   :  { %v2535_v37 = vadd.f32 %v2502_v3, %v2501_v57  ;;  %v2427_v14 = vadd.f32 %v6474_v59, %v6482_v2 }
 0x3a8   :  { %v2405_v31 = vpop.xlane.xlu1 %2404 }
 0x3a9   :  { %v2452_v35 = vmul.f32 %v6420_v17, %v2405_v31  ;;  %2536 = vadd.xlane.f32.xlu0 %v2535_v37 }
 0x3aa   :  { %v2337_v10 = vpop.f32.mrf.mxu2 }
 0x3ab   :  { %v6477_v56 = vsub.f32 %v6374_v25, %v2452_v35  ;;  %v6480_v58 = vsub.f32 %v6376_v20, %v2452_v35  ;;  %v2336_v25 = vadd.f32 %v2335_v15, %v6344_v42  ;;  %v2286_v20 = vpop.f32.mrf.mxu1  ;;  %v2338_v0 = vadd.f32 %v2337_v10, %v6344_v42  ;;  %v2242_v35 = vpop.f32.mrf.mxu0 }
 0x3ac   :  { %v6494_v51 = vadd.f32 %v2286_v20, %v2238_v47 }
 0x3ad   :  { %v2503_v63 = vmul.f32 %v6477_v56, %v6477_v56  ;;  %v2504_v34 = vmul.f32 %v6480_v58, %v6480_v58  ;;  %v6492_v5 = vadd.f32 %v2384_v60, %v2336_v25  ;;  %v6512_v22 = vadd.f32 %v2386_v39, %v2338_v0 }
 0x3af   :  { %v2538_v49 = vadd.f32 %v2504_v34, %v2503_v63  ;;  %v2430_v45 = vadd.f32 %v6492_v5, %v6494_v51  ;;  %v2243_v63 = vadd.f32 %v2242_v35, %v6342_v44 }
 0x3b1   :  { %2539 = vadd.xlane.f32.xlu1 %v2538_v49  ;;  %2428 = vadd.xlane.f32.xlu0 %v2427_v14  ;;  %v4296_v49 = vld [vmem:[%s7236_s13 + $0x8] sm:$0xff]  ;;  %v4278_v14 = vld [vmem:[%s7234_s11 + $0x38] sm:$0xff] }
 0x3b2   :  { %v2340_v46 = vpop.f32.mrf.mxu2  ;;  %3518 = vmatpush.bf16.msra.mxu2 %v4296_v49  ;;  %3313 = vmatpush.bf16.msra.mxu0 %v4278_v14 }
 0x3b3   :  { %v2288_v12 = vpop.f32.mrf.mxu1 }
 0x3b7   :  { %v2408_v53 = vpop.xlane.xlu2 %2407 }
 0x3b8   :  { %v2453_v21 = vmul.f32 %v6420_v17, %v2408_v53 }
 0x3b9   :  { %2431 = vadd.xlane.f32.xlu0 %v2430_v45 }
 0x3ba   :  { %v6500_v7 = vsub.f32 %v6382_v55, %v2453_v21  ;;  %v6503_v32 = vsub.f32 %v6384_v61, %v2453_v21  ;;  %v2240_v61 = vadd.f32 %v2239_v50, %v6342_v44  ;;  %v2342_v10 = vpop.f32.mrf.mxu2  ;;  %v2391_v50 = vpop.f32.mrf.mxu3 }
 0x3bc   :  { %v2505_v26 = vmul.f32 %v6500_v7, %v6500_v7  ;;  %v2506_v43 = vmul.f32 %v6503_v32, %v6503_v32  ;;  %v6520_v36 = vadd.f32 %v2288_v12, %v2240_v61 }
 0x3be   :  { %v2541_v28 = vadd.f32 %v2506_v43, %v2505_v26  ;;  %v2433_v31 = vadd.f32 %v6512_v22, %v6520_v36  ;;  %v2244_v26 = vpop.f32.mrf.mxu0 }
 0x3bf   :  { %v2411_v40 = vpop.xlane.xlu2 %2410 }
 0x3c0   :  { %v2454_v55 = vmul.f32 %v6420_v17, %v2411_v40  ;;  %2542 = vadd.xlane.f32.xlu1 %v2541_v28  ;;  %v2343_v28 = vadd.f32 %v2342_v10, %v6344_v42 }
 0x3c2   :  { %v6515_v57 = vsub.f32 %v6390_v38, %v2454_v55  ;;  %v6518_v3 = vsub.f32 %v6392_v27, %v2454_v55  ;;  %v2341_v38 = vadd.f32 %v2340_v46, %v6344_v42  ;;  %v2291_v27 = vpop.f32.mrf.mxu1  ;;  %v6559_v40 = vadd.f32 %v2391_v50, %v2343_v28 }
 0x3c3   :  { %v6532_v15 = vadd.f32 %v2291_v27, %v2243_v63 }
 0x3c4   :  { %v2507_v8 = vmul.f32 %v6515_v57, %v6515_v57  ;;  %v2508_v37 = vmul.f32 %v6518_v3, %v6518_v3  ;;  %v6530_v34 = vadd.f32 %v2389_v48, %v2341_v38  ;;  %v4277_v38 = vld [vmem:[%s7234_s11 + $0x30] sm:$0xff] }
 0x3c5   :  { %3314 = vmatpush.bf16.msra.mxu0 %v4277_v38 }
 0x3c6   :  { %v2544_v33 = vadd.f32 %v2508_v37, %v2507_v8  ;;  %v2436_v60 = vadd.f32 %v6530_v34, %v6532_v15 }
 0x3c8   :  { %2434 = vadd.xlane.f32.xlu1 %v2433_v31  ;;  %2545 = vadd.xlane.f32.xlu2 %v2544_v33 }
 0x3cf   :  { %v2414_v25 = vpop.xlane.xlu0 %2413 }
 0x3d0   :  { %v2455_v20 = vmul.f32 %v6420_v17, %v2414_v25  ;;  %2437 = vadd.xlane.f32.xlu1 %v2436_v60 }
 0x3d2   :  { %v6547_v47 = vsub.f32 %v6398_v11, %v2455_v20  ;;  %v6550_v53 = vsub.f32 %v6400_v23, %v2455_v20  ;;  %v2293_v11 = vpop.f32.mrf.mxu1  ;;  %v2245_v23 = vadd.f32 %v2244_v26, %v6342_v44 }
 0x3d4   :  { %v2509_v21 = vmul.f32 %v6547_v47, %v6547_v47  ;;  %v2510_v45 = vmul.f32 %v6550_v53, %v6550_v53  ;;  %v6567_v61 = vadd.f32 %v2293_v11, %v2245_v23 }
 0x3d6   :  { %v2547_v43 = vadd.f32 %v2510_v45, %v2509_v21  ;;  %v2439_v44 = vadd.f32 %v6559_v40, %v6567_v61 }
 0x3d7   :  { %v2417_v39 = vpop.xlane.xlu1 %2416 }
 0x3d8   :  { %v2456_v12 = vmul.f32 %v6420_v17, %v2417_v39  ;;  %2548 = vadd.xlane.f32.xlu2 %v2547_v43 }
 0x3da   :  { %v6562_v0 = vsub.f32 %v6406_v62, %v2456_v12  ;;  %v6565_v55 = vsub.f32 %v6408_v29, %v2456_v12 }
 0x3dc   :  { %v2511_v8 = vmul.f32 %v6562_v0, %v6562_v0  ;;  %v2512_v42 = vmul.f32 %v6565_v55, %v6565_v55 }
 0x3de   :  { %v2550_v37 = vadd.f32 %v2512_v42, %v2511_v8  ;;  %v4276_v8 = vld [vmem:[%s7234_s11 + $0x28] sm:$0xff] }
 0x3df   :  { %3315 = vmatpush.bf16.msra.mxu0 %v4276_v8 }
 0x3e0   :  { %2551 = vadd.xlane.f32.xlu0 %v2550_v37  ;;  %2440 = vadd.xlane.f32.xlu2 %v2439_v44  ;;  %v2839_v37 = vld [vmem:[%s7233_s10] sm:$0x3] }
 0x3e5   :  { %v2420_v46 = vpop.xlane.xlu1 %2419 }
 0x3e6   :  { %v2457_v62 = vmul.f32 %v6420_v17, %v2420_v46 }
 0x3e8   :  { %v6577_v29 = vsub.f32 %v6414_v1, %v2457_v62  ;;  %v6580_v31 = vsub.f32 %v6416_v30, %v2457_v62  ;;  %v4285_v1 = vld [vmem:[%s7234_s11 + $0x70] sm:$0xff] }
 0x3e9   :  { %3363 = vmatpush.bf16.msra.mxu1 %v4285_v1 }
 0x3ea   :  { %v2513_v33 = vmul.f32 %v6577_v29, %v6577_v29  ;;  %v2514_v35 = vmul.f32 %v6580_v31, %v6580_v31 }
 0x3ec   :  { %v2553_v48 = vadd.f32 %v2514_v35, %v2513_v33 }
 0x3ee   :  { %2554 = vadd.xlane.f32.xlu0 %v2553_v48 }
 0x403   :  { %v2531_v27 = vpop.xlane.xlu2 %2530 }
 0x404   :  { %v2577_v30 = vmul.f32 %v2531_v27, %v6420_v17 }
 0x406   :  { %v2593_v63 = vadd.f32 1e-06, %v2577_v30  ;;  %v6631_v30 = vperm.slane %v2839_v37, 1 }
 0x408   :  { %4459 = vrsqrt.f32 %v2593_v63  ;;  %vm2615_vm2 = vweird.f32 %v2593_v63 }
 0x40b   :  { %v2534_v49 = vpop.xlane.xlu0 %2533  ;;  %v2423_v4 = vpop.xlane.xlu2 %2422 }
 0x40c   :  { %v2578_v14 = vmul.f32 %v2534_v49, %v6420_v17  ;;  %v2458_v25 = vmul.f32 %v6420_v17, %v2423_v4 }
 0x40e   :  { %v2594_v60 = vadd.f32 1e-06, %v2578_v14  ;;  %v4460_v20 = vpop.eup %4459  ;;  %v6596_v21 = vsub.f32 %v6448_v6, %v2458_v25  ;;  %v6599_v45 = vsub.f32 %v6446_v19, %v2458_v25  ;;  %v2801_v6 = vld [vmem:[%s7232_s9] sm:$0x3] }
 0x40f   :  { %v2610_v10 = vmul.f32 %v4460_v20, %v2593_v63  ;;  %vm2616_vm1 = vweird.f32 %v4460_v20  ;;  %v6621_v33 = vperm.slane %v2801_v6, 0  ;;  %v6623_v48 = vperm.slane %v2801_v6, 1 }
 0x410   :  { %4461 = vrsqrt.f32 %v2594_v60  ;;  %v2515_v26 = vmul.f32 %v6596_v21, %v6596_v21  ;;  %v2516_v43 = vmul.f32 %v6599_v45, %v6599_v45  ;;  %vm2617_vm3 = vmor %vm2615_vm2, %vm2616_vm1  ;;  %vm2625_vm5 = vweird.f32 %v2594_v60 }
 0x411   :  { %v2611_v50 = vmul.f32 %v4460_v20, %v2610_v10 }
 0x412   :  { %v2556_v39 = vadd.f32 %v2516_v43, %v2515_v26 }
 0x413   :  { %v2612_v12 = vmul.f32 0.5, %v2611_v50  ;;  %v2426_v11 = vpop.xlane.xlu2 %2425 }
 0x414   :  { %v2459_v19 = vmul.f32 %v6420_v17, %v2426_v11  ;;  %2557 = vadd.xlane.f32.xlu1 %v2556_v39 }
 0x415   :  { %v2613_v42 = vsub.f32 1.5, %v2612_v12 }
 0x416   :  { %v4462_v28 = vpop.eup %4461  ;;  %v6616_v46 = vsub.f32 %v6456_v13, %v2459_v19  ;;  %v6619_v62 = vsub.f32 %v6454_v54, %v2459_v19  ;;  %v6629_v13 = vperm.slane %v2839_v37, 0 }
 0x417   :  { %v2620_v23 = vmul.f32 %v4462_v28, %v2594_v60  ;;  %v2614_v35 = vmul.f32 %v4460_v20, %v2613_v42  ;;  %vm2626_vm4 = vweird.f32 %v4462_v28 }
 0x418   :  { %v2517_v27 = vmul.f32 %v6616_v46, %v6616_v46  ;;  %v2518_v1 = vmul.f32 %v6619_v62, %v6619_v62  ;;  %vm2627_vm6 = vmor %vm2625_vm5, %vm2626_vm4 }
 0x419   :  { %v2621_v44 = vmul.f32 %v4462_v28, %v2620_v23  ;;  %v2618_v54 = vsel %vm2617_vm3, %v4460_v20, %v2614_v35  ;;  %v4284_v20 = vld [vmem:[%s7234_s11 + $0x68] sm:$0xff] }
 0x41a   :  { %v2769_v14 = vmul.f32 %v2618_v54, %v6424_v41  ;;  %v2770_v63 = vmul.f32 %v2618_v54, %v6427_v16  ;;  %v2559_v10 = vadd.f32 %v2518_v1, %v2517_v27  ;;  %3364 = vmatpush.bf16.msra.mxu1 %v4284_v20 }
 0x41b   :  { %v2622_v38 = vmul.f32 0.5, %v2621_v44 }
 0x41c   :  { %v2537_v49 = vpop.xlane.xlu0 %2536  ;;  %v2807_v26 = vmul.f32 %v6621_v33, %v2769_v14  ;;  %v2808_v43 = vmul.f32 %v6623_v48, %v2770_v63  ;;  %2560 = vadd.xlane.f32.xlu2 %v2559_v10 }
 0x41d   :  { %v2623_v4 = vsub.f32 1.5, %v2622_v38  ;;  %v2579_v25 = vmul.f32 %v2537_v49, %v6420_v17 }
 0x41e   :  { %v6642_v41 = vadd.f32 %v6629_v13, %v2807_v26  ;;  %v6645_v16 = vadd.f32 %v6631_v30, %v2808_v43 }
 0x41f   :  { %v2624_v50 = vmul.f32 %v4462_v28, %v2623_v4  ;;  %v2595_v39 = vadd.f32 1e-06, %v2579_v25 }
 0x420   :  { %v2909_v6 = vmul.f32 0.044715, %v6642_v41  ;;  %v2910_v23 = vmul.f32 0.044715, %v6645_v16 }
 0x421   :  { %v2628_v60 = vsel %vm2627_vm6, %v4462_v28, %v2624_v50  ;;  %4463 = vrsqrt.f32 %v2595_v39  ;;  %vm2635_vm8 = vweird.f32 %v2595_v39 }
 0x422   :  { %v2771_v12 = vmul.f32 %v2628_v60, %v6435_v52  ;;  %v2772_v11 = vmul.f32 %v2628_v60, %v6438_v9  ;;  %v2941_v35 = vmul.f32 %v2909_v6, %v6642_v41  ;;  %v2942_v52 = vmul.f32 %v2910_v23, %v6645_v16  ;;  %v4275_v23 = vld [vmem:[%s7234_s11 + $0x20] sm:$0xff] }
 0x423   :  { %3316 = vmatpush.bf16.msra.mxu0 %v4275_v23 }
 0x424   :  { %v2809_v19 = vmul.f32 %v6621_v33, %v2771_v12  ;;  %v2810_v8 = vmul.f32 %v6623_v48, %v2772_v11  ;;  %v2540_v42 = vpop.xlane.xlu1 %2539  ;;  %v2429_v37 = vpop.xlane.xlu0 %2428  ;;  %v2973_v49 = vmul.f32 %v2941_v35, %v6642_v41  ;;  %v2974_v4 = vmul.f32 %v2942_v52, %v6645_v16 }
 0x425   :  { %v2580_v44 = vmul.f32 %v2540_v42, %v6420_v17  ;;  %v2460_v28 = vmul.f32 %v6420_v17, %v2429_v37 }
 0x426   :  { %v6658_v9 = vadd.f32 %v6629_v13, %v2809_v19  ;;  %v6670_v14 = vadd.f32 %v6631_v30, %v2810_v8  ;;  %v3006_v26 = vadd.f32 %v2974_v4, %v6645_v16  ;;  %v4283_v19 = vld [vmem:[%s7234_s11 + $0x60] sm:$0xff] }
 0x427   :  { %v4464_v38 = vpop.eup %4463  ;;  %v6660_v27 = vadd.f32 1e-06, %v2580_v44  ;;  %v6663_v1 = vsub.f32 %v6482_v2, %v2460_v28  ;;  %v6666_v54 = vsub.f32 %v6474_v59, %v2460_v28  ;;  %v3005_v59 = vadd.f32 %v2973_v49, %v6642_v41  ;;  %3365 = vmatpush.bf16.msra.mxu1 %v4283_v19 }
 0x428   :  { %v2630_v63 = vmul.f32 %v4464_v38, %v2595_v39  ;;  %v2911_v50 = vmul.f32 0.044715, %v6658_v9  ;;  %v2912_v11 = vmul.f32 0.044715, %v6670_v14  ;;  %vm2636_vm7 = vweird.f32 %v4464_v38 }
 0x429   :  { %4465 = vrsqrt.f32 %v6660_v27  ;;  %v2519_v25 = vmul.f32 %v6663_v1, %v6663_v1  ;;  %v2520_v2 = vmul.f32 %v6666_v54, %v6666_v54  ;;  %v3037_v12 = vmul.f32 0.7978846, %v3005_v59  ;;  %vm2637_vm9 = vmor %vm2635_vm8, %vm2636_vm7 }
 0x42a   :  { %v2631_v10 = vmul.f32 %v4464_v38, %v2630_v63  ;;  %v2943_v8 = vmul.f32 %v2911_v50, %v6658_v9  ;;  %v2944_v37 = vmul.f32 %v2912_v11, %v6670_v14  ;;  %v3038_v44 = vmul.f32 0.7978846, %v3006_v26 }
 0x42b   :  { %v2562_v43 = vadd.f32 %v2520_v2, %v2519_v25  ;;  %4467 = vtanh.f32 %v3037_v12  ;;  %vm2645_vm11 = vweird.f32 %v6660_v27 }
 0x42c   :  { %v2632_v20 = vmul.f32 0.5, %v2631_v10  ;;  %v2432_v60 = vpop.xlane.xlu0 %2431  ;;  %v2975_v49 = vmul.f32 %v2943_v8, %v6658_v9  ;;  %v2976_v25 = vmul.f32 %v2944_v37, %v6670_v14  ;;  %v4282_v10 = vld [vmem:[%s7234_s11 + $0x58] sm:$0xff]  ;;  %4469 = vtanh.f32 %v3038_v44 }
 0x42d   :  { %v2461_v6 = vmul.f32 %v6420_v17, %v2432_v60  ;;  %2563 = vadd.xlane.f32.xlu0 %v2562_v43  ;;  %3366 = vmatpush.bf16.msra.mxu1 %v4282_v10  ;;  %v2877_v10 = vmul.f32 0.5, %v6642_v41  ;;  %v4287_v41 = vld [vmem:[%s7224_s1] sm:$0xff] }
 0x42e   :  { %v2633_v42 = vsub.f32 1.5, %v2632_v20  ;;  %v3007_v39 = vadd.f32 %v2975_v49, %v6658_v9  ;;  %v3008_v50 = vadd.f32 %v2976_v25, %v6670_v14 }
 0x42f   :  { %v4466_v28 = vpop.eup %4465  ;;  %v6692_v35 = vsub.f32 %v6494_v51, %v2461_v6  ;;  %v6695_v52 = vsub.f32 %v6492_v5, %v2461_v6  ;;  %v4274_v5 = vld [vmem:[%s7234_s11 + $0x18] sm:$0xff] }
 0x430   :  { %v2634_v63 = vmul.f32 %v4464_v38, %v2633_v42  ;;  %v2640_v4 = vmul.f32 %v4466_v28, %v6660_v27  ;;  %3317 = vmatpush.bf16.msra.mxu0 %v4274_v5  ;;  %v3039_v23 = vmul.f32 0.7978846, %v3007_v39  ;;  %v3040_v19 = vmul.f32 0.7978846, %v3008_v50  ;;  %v4272_v27 = vld [vmem:[%s7234_s11 + $0x8] sm:$0xff] }
 0x431   :  { %v2521_v2 = vmul.f32 %v6692_v35, %v6692_v35  ;;  %v2522_v51 = vmul.f32 %v6695_v52, %v6695_v52  ;;  %v4468_v8 = vpop.eup %4467  ;;  %vm2646_vm10 = vweird.f32 %v4466_v28  ;;  %v4280_v5 = vld [vmem:[%s7234_s11 + $0x48] sm:$0xff]  ;;  %v2878_v50 = vmul.f32 0.5, %v6645_v16 }
 0x432   :  { %v2638_v59 = vsel %vm2637_vm9, %v4464_v38, %v2634_v63  ;;  %v2641_v26 = vmul.f32 %v4466_v28, %v2640_v4  ;;  %4471 = vtanh.f32 %v3039_v23  ;;  %v4470_v63 = vpop.eup %4469  ;;  %vm2647_vm12 = vmor %vm2645_vm11, %vm2646_vm10  ;;  %v2880_v16 = vmul.f32 0.5, %v6670_v14  ;;  %v4279_v14 = vld [vmem:[%s7234_s11 + $0x40] sm:$0xff] }
 0x433   :  { %v2543_v43 = vpop.xlane.xlu1 %2542  ;;  %v2773_v20 = vmul.f32 %v2638_v59, %v6462_v24  ;;  %v2774_v60 = vmul.f32 %v2638_v59, %v6465_v18  ;;  %v2565_v11 = vadd.f32 %v2522_v51, %v2521_v2  ;;  %v4273_v24 = vld [vmem:[%s7234_s11 + $0x10] sm:$0xff]  ;;  %v3101_v2 = vadd.f32 1.0, %v4468_v8  ;;  %v4295_v51 = vld [vmem:[%s7236_s13] sm:$0xff] }
 0x434   :  { %v2581_v12 = vmul.f32 %v2543_v43, %v6420_v17  ;;  %v2642_v6 = vmul.f32 0.5, %v2641_v26  ;;  %v4281_v18 = vld [vmem:[%s7234_s11 + $0x50] sm:$0xff]  ;;  %3318 = vmatpush.bf16.msra.mxu0 %v4273_v24  ;;  %v2879_v43 = vmul.f32 0.5, %v6658_v9  ;;  %3519 = vmatpush.bf16.msra.mxu2 %v4295_v51  ;;  %v4271_v24 = vld [vmem:[%s7234_s11] sm:$0xff] }
 0x435   :  { %v2811_v38 = vmul.f32 %v6621_v33, %v2773_v20  ;;  %v2812_v42 = vmul.f32 %v6623_v48, %v2774_v60  ;;  %2566 = vadd.xlane.f32.xlu1 %v2565_v11  ;;  %3367 = vmatpush.bf16.msra.mxu1 %v4281_v18  ;;  %v3133_v9 = vmul.f32 %v3101_v2, %v2877_v10 }
 0x436   :  { %v6717_v37 = vadd.f32 1e-06, %v2581_v12  ;;  %v2643_v44 = vsub.f32 1.5, %v2642_v6 }
 0x437   :  { %v6726_v49 = vadd.f32 %v6629_v13, %v2811_v38  ;;  %v6731_v4 = vadd.f32 %v6631_v30, %v2812_v42  ;;  %4151 = vmatmul.msk.bf16.vlgmr.msra.gmra.mxu2 %vm3487_vm14, %v4287_v41 }
 0x438   :  { %4473 = vrsqrt.f32 %v6717_v37  ;;  %v2644_v25 = vmul.f32 %v4466_v28, %v2643_v44  ;;  %v4472_v23 = vpop.eup %4471  ;;  %3319 = vmatpush.bf16.msra.mxu0 %v4272_v27  ;;  %vm2655_vm13 = vweird.f32 %v6717_v37 }
 0x439   :  { %4475 = vtanh.f32 %v3040_v19  ;;  %v2913_v20 = vmul.f32 0.044715, %v6726_v49  ;;  %3368 = vmatpush.bf16.msra.mxu1 %v4280_v5  ;;  %v3103_v5 = vadd.f32 1.0, %v4472_v23 }
 0x43a   :  { %v2648_v39 = vsel %vm2647_vm12, %v4466_v28, %v2644_v25  ;;  %v3102_v28 = vadd.f32 1.0, %v4470_v63 }
 0x43b   :  { %v2435_v59 = vpop.xlane.xlu1 %2434  ;;  %v2546_v26 = vpop.xlane.xlu2 %2545  ;;  %v2775_v60 = vmul.f32 %v2648_v39, %v6477_v56  ;;  %v2776_v12 = vmul.f32 %v2648_v39, %v6480_v58  ;;  %v2914_v56 = vmul.f32 0.044715, %v6731_v4 }
 0x43c   :  { %v2462_v11 = vmul.f32 %v6420_v17, %v2435_v59  ;;  %v2582_v6 = vmul.f32 %v2546_v26, %v6420_v17  ;;  %3320 = vmatpush.bf16.msra.mxu0 %v4271_v24  ;;  %v3134_v26 = vmul.f32 %v3102_v28, %v2878_v50 }
 0x43d   :  { %v2813_v58 = vmul.f32 %v6621_v33, %v2775_v60  ;;  %v2814_v8 = vmul.f32 %v6623_v48, %v2776_v12  ;;  %3369 = vmatpush.bf16.msra.mxu1 %v4279_v14  ;;  %v2946_v10 = vmul.f32 %v2914_v56, %v6731_v4 }
 0x43e   :  { %v4474_v19 = vpop.eup %4473  ;;  %v6758_v38 = vsub.f32 %v6520_v36, %v2462_v11  ;;  %v6761_v42 = vsub.f32 %v6512_v22, %v2462_v11  ;;  %v6771_v63 = vadd.f32 1e-06, %v2582_v6  ;;  %v2945_v36 = vmul.f32 %v2913_v20, %v6726_v49 }
 0x43f   :  { %v4476_v18 = vpop.eup %4475  ;;  %v2650_v44 = vmul.f32 %v4474_v19, %v6717_v37  ;;  %v6775_v22 = vadd.f32 %v6629_v13, %v2813_v58  ;;  %v6778_v25 = vadd.f32 %v6631_v30, %v2814_v8  ;;  %vm2656_vm15 = vweird.f32 %v4474_v19 }
 0x440   :  { %v2523_v2 = vmul.f32 %v6758_v38, %v6758_v38  ;;  %v2524_v51 = vmul.f32 %v6761_v42, %v6761_v42  ;;  %4477 = vrsqrt.f32 %v6771_v63  ;;  %v3104_v59 = vadd.f32 1.0, %v4476_v18  ;;  %vm2657_vm0 = vmor %vm2655_vm13, %vm2656_vm15 }
 0x441   :  { %v2651_v27 = vmul.f32 %v4474_v19, %v2650_v44  ;;  %v2915_v20 = vmul.f32 0.044715, %v6775_v22  ;;  %v3135_v11 = vmul.f32 %v3103_v5, %v2879_v43  ;;  %v2977_v6 = vmul.f32 %v2945_v36, %v6726_v49 }
 0x442   :  { %v2568_v39 = vadd.f32 %v2524_v51, %v2523_v2  ;;  %v3136_v58 = vmul.f32 %v3104_v59, %v2880_v16  ;;  %v2916_v23 = vmul.f32 0.044715, %v6778_v25  ;;  %v2978_v28 = vmul.f32 %v2946_v10, %v6731_v4 }
 0x443   :  { %v2652_v60 = vmul.f32 0.5, %v2651_v27  ;;  %v2438_v12 = vpop.xlane.xlu1 %2437  ;;  %v2947_v8 = vmul.f32 %v2915_v20, %v6775_v22  ;;  %v3165_v24 = vpack.c.bf16 %v3135_v11, %v3133_v9  ;;  %v3009_v50 = vadd.f32 %v2977_v6, %v6726_v49 }
 0x444   :  { %v2463_v41 = vmul.f32 %v6420_v17, %v2438_v12  ;;  %2569 = vadd.xlane.f32.xlu2 %v2568_v39  ;;  %v3166_v18 = vpack.c.bf16 %v3136_v58, %v3134_v26  ;;  %v2948_v51 = vmul.f32 %v2916_v23, %v6778_v25  ;;  %v3010_v9 = vadd.f32 %v2978_v28, %v6731_v4 }
 0x445   :  { %v2653_v56 = vsub.f32 1.5, %v2652_v60  ;;  %v2979_v44 = vmul.f32 %v2947_v8, %v6775_v22  ;;  %3321 = vmatmul.bf16.vlgmr.msra.gmra.mxu0 %v3165_v24  ;;  %v3041_v2 = vmul.f32 0.7978846, %v3009_v50  ;;  %vm2665_vm2 = vweird.f32 %v6771_v63 }
 0x446   :  { %v6795_v14 = vsub.f32 %v6532_v15, %v2463_v41  ;;  %v6798_v43 = vsub.f32 %v6530_v34, %v2463_v41  ;;  %v4478_v16 = vpop.eup %4477  ;;  %3370 = vmatmul.bf16.vlgmr.msra.gmra.mxu1 %v3166_v18  ;;  %v2980_v39 = vmul.f32 %v2948_v51, %v6778_v25  ;;  %v3042_v6 = vmul.f32 0.7978846, %v3010_v9 }
 0x447   :  { %v2654_v36 = vmul.f32 %v4474_v19, %v2653_v56  ;;  %v2660_v15 = vmul.f32 %v4478_v16, %v6771_v63  ;;  %v3011_v10 = vadd.f32 %v2979_v44, %v6775_v22  ;;  %4479 = vtanh.f32 %v3041_v2 }
 0x448   :  { %v2525_v34 = vmul.f32 %v6795_v14, %v6795_v14  ;;  %v2526_v27 = vmul.f32 %v6798_v43, %v6798_v43  ;;  %v3012_v11 = vadd.f32 %v2980_v39, %v6778_v25  ;;  %vm2666_vm1 = vweird.f32 %v4478_v16 }
 0x449   :  { %v2658_v5 = vsel %vm2657_vm0, %v4474_v19, %v2654_v36  ;;  %v2661_v26 = vmul.f32 %v4478_v16, %v2660_v15  ;;  %v3043_v12 = vmul.f32 0.7978846, %v3011_v10  ;;  %vm2667_vm3 = vmor %vm2665_vm2, %vm2666_vm1  ;;  %v2881_v2 = vmul.f32 0.5, %v6726_v49 }
 0x44a   :  { %v2777_v59 = vmul.f32 %v2658_v5, %v6500_v7  ;;  %v2778_v37 = vmul.f32 %v2658_v5, %v6503_v32  ;;  %v2571_v20 = vadd.f32 %v2526_v27, %v2525_v34  ;;  %v4288_v7 = vld [vmem:[%s7224_s1 + $0x8] sm:$0xff]  ;;  %v3044_v32 = vmul.f32 0.7978846, %v3012_v11 }
 0x44b   :  { %v2549_v60 = vpop.xlane.xlu2 %2548  ;;  %v2662_v58 = vmul.f32 0.5, %v2661_v26  ;;  %4481 = vtanh.f32 %v3043_v12  ;;  %4152 = vmatmul.msk.bf16.gmra.mxu2 %vm3487_vm14, %v4288_v7  ;;  %v2882_v9 = vmul.f32 0.5, %v6731_v4  ;;  %v2883_v49 = vmul.f32 0.5, %v6775_v22 }
 0x44c   :  { %v2815_v41 = vmul.f32 %v6621_v33, %v2777_v59  ;;  %v2816_v19 = vmul.f32 %v6623_v48, %v2778_v37  ;;  %v2583_v8 = vmul.f32 %v2549_v60, %v6420_v17  ;;  %2572 = vadd.xlane.f32.xlu0 %v2571_v20  ;;  %4483 = vtanh.f32 %v3042_v6 }
 0x44d   :  { %v2663_v56 = vsub.f32 1.5, %v2662_v58  ;;  %v4480_v50 = vpop.eup %4479 }
 0x44e   :  { %v6823_v23 = vadd.f32 %v6629_v13, %v2815_v41  ;;  %v6825_v24 = vadd.f32 1e-06, %v2583_v8  ;;  %v6828_v28 = vadd.f32 %v6631_v30, %v2816_v19  ;;  %v3105_v51 = vadd.f32 1.0, %v4480_v50 }
 0x44f   :  { %v2664_v18 = vmul.f32 %v4478_v16, %v2663_v56 }
 0x450   :  { %4485 = vrsqrt.f32 %v6825_v24  ;;  %v2917_v44 = vmul.f32 0.044715, %v6823_v23  ;;  %v2918_v39 = vmul.f32 0.044715, %v6828_v28  ;;  %v3137_v8 = vmul.f32 %v3105_v51, %v2881_v2 }
 0x451   :  { %4487 = vtanh.f32 %v3044_v32  ;;  %v2668_v36 = vsel %vm2667_vm3, %v4478_v16, %v2664_v18  ;;  %v4482_v15 = vpop.eup %4481  ;;  %vm2675_vm5 = vweird.f32 %v6825_v24 }
 0x452   :  { %v2779_v34 = vmul.f32 %v2668_v36, %v6515_v57  ;;  %v2780_v27 = vmul.f32 %v2668_v36, %v6518_v3  ;;  %v2949_v10 = vmul.f32 %v2917_v44, %v6823_v23  ;;  %v3107_v37 = vadd.f32 1.0, %v4482_v15  ;;  %v4484_v26 = vpop.eup %4483 }
 0x453   :  { %v2552_v63 = vpop.xlane.xlu0 %2551  ;;  %v2441_v5 = vpop.xlane.xlu2 %2440  ;;  %v2884_v3 = vmul.f32 0.5, %v6778_v25  ;;  %v2950_v25 = vmul.f32 %v2918_v39, %v6828_v28  ;;  %v3106_v50 = vadd.f32 1.0, %v4484_v26 }
 0x454   :  { %v2584_v59 = vmul.f32 %v2552_v63, %v6420_v17  ;;  %v2464_v16 = vmul.f32 %v6420_v17, %v2441_v5  ;;  %v2817_v4 = vmul.f32 %v6621_v33, %v2779_v34  ;;  %v2818_v57 = vmul.f32 %v6623_v48, %v2780_v27  ;;  %v4289_v27 = vld [vmem:[%s7224_s1 + $0x10] sm:$0xff] }
 0x455   :  { %v2981_v20 = vmul.f32 %v2949_v10, %v6823_v23  ;;  %v3139_v22 = vmul.f32 %v3107_v37, %v2883_v49  ;;  %v3138_v15 = vmul.f32 %v3106_v50, %v2882_v9  ;;  %v2982_v39 = vmul.f32 %v2950_v25, %v6828_v28 }
 0x456   :  { %v4486_v60 = vpop.eup %4485  ;;  %v6847_v12 = vadd.f32 1e-06, %v2584_v59  ;;  %v6850_v11 = vsub.f32 %v6567_v61, %v2464_v16  ;;  %v6853_v6 = vsub.f32 %v6559_v40, %v2464_v16  ;;  %v6856_v19 = vadd.f32 %v6629_v13, %v2817_v4 }
 0x457   :  { %v4488_v41 = vpop.eup %4487  ;;  %v2670_v58 = vmul.f32 %v4486_v60, %v6825_v24  ;;  %v6861_v7 = vadd.f32 %v6631_v30, %v2818_v57  ;;  %v3167_v56 = vpack.c.bf16 %v3139_v22, %v3137_v8  ;;  %v3013_v2 = vadd.f32 %v2981_v20, %v6823_v23 }
 0x458   :  { %4489 = vrsqrt.f32 %v6847_v12  ;;  %v2527_v61 = vmul.f32 %v6850_v11, %v6850_v11  ;;  %v2528_v40 = vmul.f32 %v6853_v6, %v6853_v6  ;;  %v3108_v18 = vadd.f32 1.0, %v4488_v41 }
 0x459   :  { %v2671_v32 = vmul.f32 %v4486_v60, %v2670_v58  ;;  %v2919_v36 = vmul.f32 0.044715, %v6856_v19  ;;  %3326 = vmatmul.bf16.gmra.mxu0 %v3167_v56  ;;  %v3045_v5 = vmul.f32 0.7978846, %v3013_v2  ;;  %v2920_v10 = vmul.f32 0.044715, %v6861_v7 }
 0x45a   :  { %v2574_v44 = vadd.f32 %v2528_v40, %v2527_v61  ;;  %v3140_v34 = vmul.f32 %v3108_v18, %v2884_v3  ;;  %vm2676_vm4 = vweird.f32 %v4486_v60  ;;  %v3014_v26 = vadd.f32 %v2982_v39, %v6828_v28 }
 0x45b   :  { %v2672_v51 = vmul.f32 0.5, %v2671_v32  ;;  %v2951_v63 = vmul.f32 %v2919_v36, %v6856_v19  ;;  %v2952_v9 = vmul.f32 %v2920_v10, %v6861_v7  ;;  %vm2677_vm6 = vmor %vm2675_vm5, %vm2676_vm4  ;;  %4153 = vmatmul.msk.bf16.gmra.mxu2 %vm3487_vm14, %v4289_v27  ;;  %4491 = vtanh.f32 %v3045_v5 }
 0x45c   :  { %2575 = vadd.xlane.f32.xlu1 %v2574_v44  ;;  %v3168_v16 = vpack.c.bf16 %v3140_v34, %v3138_v15  ;;  %v3046_v41 = vmul.f32 0.7978846, %v3014_v26  ;;  %vm2685_vm8 = vweird.f32 %v6847_v12 }
 0x45d   :  { %v2673_v59 = vsub.f32 1.5, %v2672_v51  ;;  %v2983_v37 = vmul.f32 %v2951_v63, %v6856_v19  ;;  %v2984_v22 = vmul.f32 %v2952_v9, %v6861_v7 }
 0x45e   :  { %v4490_v49 = vpop.eup %4489  ;;  %3375 = vmatmul.bf16.gmra.mxu1 %v3168_v16  ;;  %4493 = vtanh.f32 %v3046_v41  ;;  %v2885_v16 = vmul.f32 0.5, %v6823_v23 }
 0x45f   :  { %v2674_v4 = vmul.f32 %v4486_v60, %v2673_v59  ;;  %v2680_v57 = vmul.f32 %v4490_v49, %v6847_v12  ;;  %v3015_v20 = vadd.f32 %v2983_v37, %v6856_v19  ;;  %v3016_v32 = vadd.f32 %v2984_v22, %v6861_v7 }
 0x460   :  { %vm2686_vm7 = vweird.f32 %v4490_v49  ;;  %v2887_v12 = vmul.f32 0.5, %v6856_v19 }
 0x461   :  { %v2555_v3 = vpop.xlane.xlu0 %2554  ;;  %v2678_v58 = vsel %vm2677_vm6, %v4486_v60, %v2674_v4  ;;  %v2681_v8 = vmul.f32 %v4490_v49, %v2680_v57  ;;  %v3047_v40 = vmul.f32 0.7978846, %v3015_v20  ;;  %v3048_v44 = vmul.f32 0.7978846, %v3016_v32  ;;  %v4492_v2 = vpop.eup %4491  ;;  %vm2687_vm9 = vmor %vm2685_vm8, %vm2686_vm7 }
 0x462   :  { %v2585_v25 = vmul.f32 %v2555_v3, %v6420_v17  ;;  %v2781_v61 = vmul.f32 %v2678_v58, %v6547_v47  ;;  %v2782_v24 = vmul.f32 %v2678_v58, %v6550_v53  ;;  %v3109_v5 = vadd.f32 1.0, %v4492_v2 }
 0x463   :  { %v2682_v56 = vmul.f32 0.5, %v2681_v8  ;;  %4495 = vtanh.f32 %v3047_v40  ;;  %v2886_v20 = vmul.f32 0.5, %v6828_v28 }
 0x464   :  { %v2819_v50 = vmul.f32 %v6621_v33, %v2781_v61  ;;  %v2820_v18 = vmul.f32 %v6623_v48, %v2782_v24  ;;  %v6890_v60 = vadd.f32 1e-06, %v2585_v25  ;;  %4497 = vtanh.f32 %v3048_v44  ;;  %v4494_v27 = vpop.eup %4493 }
 0x465   :  { %v2683_v36 = vsub.f32 1.5, %v2682_v56  ;;  %v3110_v26 = vadd.f32 1.0, %v4494_v27  ;;  %v3141_v23 = vmul.f32 %v3109_v5, %v2885_v16 }
 0x466   :  { %v6893_v47 = vadd.f32 %v6629_v13, %v2819_v50  ;;  %v6896_v53 = vadd.f32 %v6631_v30, %v2820_v18  ;;  %4499 = vrsqrt.f32 %v6890_v60  ;;  %vm2695_vm11 = vweird.f32 %v6890_v60 }
 0x467   :  { %v2684_v51 = vmul.f32 %v4490_v49, %v2683_v36  ;;  %v3142_v28 = vmul.f32 %v3110_v26, %v2886_v20 }
 0x468   :  { %v2921_v15 = vmul.f32 0.044715, %v6893_v47  ;;  %v2922_v34 = vmul.f32 0.044715, %v6896_v53 }
 0x469   :  { %v2688_v63 = vsel %vm2687_vm9, %v4490_v49, %v2684_v51  ;;  %v4496_v10 = vpop.eup %4495 }
 0x46a   :  { %v2783_v39 = vmul.f32 %v2688_v63, %v6562_v0  ;;  %v2784_v59 = vmul.f32 %v2688_v63, %v6565_v55  ;;  %v2953_v37 = vmul.f32 %v2921_v15, %v6893_v47  ;;  %v3111_v9 = vadd.f32 1.0, %v4496_v10  ;;  %v4498_v57 = vpop.eup %4497  ;;  %v4290_v55 = vld [vmem:[%s7224_s1 + $0x18] sm:$0xff] }
 0x46b   :  { %v2954_v4 = vmul.f32 %v2922_v34, %v6896_v53  ;;  %v2888_v0 = vmul.f32 0.5, %v6861_v7  ;;  %v3112_v19 = vadd.f32 1.0, %v4498_v57  ;;  %4154 = vmatmul.msk.bf16.gmra.mxu2 %vm3487_vm14, %v4290_v55  ;;  %v2890_v55 = vmul.f32 0.5, %v6896_v53 }
 0x46c   :  { %v2821_v49 = vmul.f32 %v6621_v33, %v2783_v39  ;;  %v2822_v3 = vmul.f32 %v6623_v48, %v2784_v59  ;;  %v3143_v22 = vmul.f32 %v3111_v9, %v2887_v12  ;;  %v2985_v41 = vmul.f32 %v2953_v37, %v6893_v47  ;;  %v4500_v61 = vpop.eup %4499 }
 0x46d   :  { %v2986_v25 = vmul.f32 %v2954_v4, %v6896_v53  ;;  %v3144_v40 = vmul.f32 %v3112_v19, %v2888_v0  ;;  %v2690_v44 = vmul.f32 %v4500_v61, %v6890_v60  ;;  %vm2696_vm10 = vweird.f32 %v4500_v61 }
 0x46e   :  { %v2859_v58 = vadd.f32 %v6629_v13, %v2821_v49  ;;  %v2860_v8 = vadd.f32 %v6631_v30, %v2822_v3  ;;  %v3169_v24 = vpack.c.bf16 %v3143_v22, %v3141_v23  ;;  %v3017_v7 = vadd.f32 %v2985_v41, %v6893_v47  ;;  %vm2697_vm12 = vmor %vm2695_vm11, %vm2696_vm10 }
 0x46f   :  { %v3170_v56 = vpack.c.bf16 %v3144_v40, %v3142_v28  ;;  %v3018_v18 = vadd.f32 %v2986_v25, %v6896_v53  ;;  %v2691_v63 = vmul.f32 %v4500_v61, %v2690_v44  ;;  %v2889_v3 = vmul.f32 0.5, %v6893_v47 }
 0x470   :  { %v2923_v32 = vmul.f32 0.044715, %v2859_v58  ;;  %3331 = vmatmul.bf16.gmra.mxu0 %v3169_v24  ;;  %v2924_v50 = vmul.f32 0.044715, %v2860_v8  ;;  %v3049_v2 = vmul.f32 0.7978846, %v3017_v7 }
 0x471   :  { %3380 = vmatmul.bf16.gmra.mxu1 %v3170_v56  ;;  %v3050_v15 = vmul.f32 0.7978846, %v3018_v18  ;;  %v2692_v16 = vmul.f32 0.5, %v2691_v63  ;;  %v2891_v20 = vmul.f32 0.5, %v2859_v58  ;;  %v2892_v22 = vmul.f32 0.5, %v2860_v8 }
 0x472   :  { %v2955_v36 = vmul.f32 %v2923_v32, %v2859_v58  ;;  %v2956_v51 = vmul.f32 %v2924_v50, %v2860_v8  ;;  %4501 = vtanh.f32 %v3049_v2 }
 0x473   :  { %4503 = vtanh.f32 %v3050_v15  ;;  %v2693_v9 = vsub.f32 1.5, %v2692_v16 }
 0x474   :  { %v2987_v34 = vmul.f32 %v2955_v36, %v2859_v58  ;;  %v2988_v27 = vmul.f32 %v2956_v51, %v2860_v8 }
 0x475   :  { %v2694_v23 = vmul.f32 %v4500_v61, %v2693_v9 }
 0x476   :  { %v3019_v5 = vadd.f32 %v2987_v34, %v2859_v58  ;;  %v3020_v10 = vadd.f32 %v2988_v27, %v2860_v8 }
 0x477   :  { %v2698_v7 = vsel %vm2697_vm12, %v4500_v61, %v2694_v23 }
 0x478   :  { %v3051_v39 = vmul.f32 0.7978846, %v3019_v5  ;;  %v3052_v59 = vmul.f32 0.7978846, %v3020_v10  ;;  %v4502_v37 = vpop.eup %4501  ;;  %v2785_v47 = vmul.f32 %v2698_v7, %v6577_v29  ;;  %v2786_v53 = vmul.f32 %v2698_v7, %v6580_v31 }
 0x479   :  { %v4504_v12 = vpop.eup %4503  ;;  %v3113_v26 = vadd.f32 1.0, %v4502_v37 }
 0x47a   :  { %4505 = vtanh.f32 %v3051_v39  ;;  %v3114_v57 = vadd.f32 1.0, %v4504_v12  ;;  %v2823_v56 = vmul.f32 %v6621_v33, %v2785_v47  ;;  %v2824_v50 = vmul.f32 %v6623_v48, %v2786_v53 }
 0x47b   :  { %4507 = vtanh.f32 %v3052_v59  ;;  %v3145_v41 = vmul.f32 %v3113_v26, %v2889_v3 }
 0x47c   :  { %v3146_v24 = vmul.f32 %v3114_v57, %v2890_v55  ;;  %v6932_v18 = vadd.f32 %v6629_v13, %v2823_v56  ;;  %v6935_v61 = vadd.f32 %v6631_v30, %v2824_v50 }
 0x47e   :  { %v2925_v31 = vmul.f32 0.044715, %v6932_v18  ;;  %v2926_v36 = vmul.f32 0.044715, %v6935_v61 }
 0x480   :  { %v4506_v4 = vpop.eup %4505  ;;  %v2957_v27 = vmul.f32 %v2925_v31, %v6932_v18  ;;  %v2958_v63 = vmul.f32 %v2926_v36, %v6935_v61 }
 0x481   :  { %v4508_v49 = vpop.eup %4507  ;;  %v3115_v0 = vadd.f32 1.0, %v4506_v4 }
 0x482   :  { %v3116_v19 = vadd.f32 1.0, %v4508_v49  ;;  %v2989_v39 = vmul.f32 %v2957_v27, %v6932_v18  ;;  %v2990_v59 = vmul.f32 %v2958_v63, %v6935_v61 }
 0x483   :  { %v3147_v25 = vmul.f32 %v3115_v0, %v2891_v20 }
 0x484   :  { %v3148_v28 = vmul.f32 %v3116_v19, %v2892_v22  ;;  %v3021_v4 = vadd.f32 %v2989_v39, %v6932_v18  ;;  %v3022_v57 = vadd.f32 %v2990_v59, %v6935_v61  ;;  %v4291_v59 = vld [vmem:[%s7224_s1 + $0x20] sm:$0xff] }
 0x485   :  { %v3171_v40 = vpack.c.bf16 %v3147_v25, %v3145_v41  ;;  %4155 = vmatmul.msk.bf16.gmra.mxu2 %vm3487_vm14, %v4291_v59 }
 0x486   :  { %v3172_v32 = vpack.c.bf16 %v3148_v28, %v3146_v24  ;;  %v3053_v41 = vmul.f32 0.7978846, %v3021_v4  ;;  %v3054_v25 = vmul.f32 0.7978846, %v3022_v57 }
 0x487   :  { %3336 = vmatmul.bf16.gmra.mxu0 %v3171_v40  ;;  %v2558_v58 = vpop.xlane.xlu1 %2557 }
 0x488   :  { %3385 = vmatmul.bf16.gmra.mxu1 %v3172_v32  ;;  %v2586_v8 = vmul.f32 %v2558_v58, %v6420_v17 }
 0x48a   :  { %v2602_v60 = vadd.f32 1e-06, %v2586_v8 }
 0x48c   :  { %4509 = vrsqrt.f32 %v2602_v60  ;;  %vm2705_vm15 = vweird.f32 %v2602_v60 }
 0x48f   :  { %v2561_v44 = vpop.xlane.xlu2 %2560 }
 0x490   :  { %v2587_v29 = vmul.f32 %v2561_v44, %v6420_v17 }
 0x492   :  { %v4510_v2 = vpop.eup %4509  ;;  %v2603_v15 = vadd.f32 1e-06, %v2587_v29 }
 0x493   :  { %v2700_v51 = vmul.f32 %v4510_v2, %v2602_v60  ;;  %vm2706_vm13 = vweird.f32 %v4510_v2 }
 0x494   :  { %4511 = vrsqrt.f32 %v2603_v15  ;;  %vm2707_vm0 = vmor %vm2705_vm15, %vm2706_vm13  ;;  %vm2715_vm2 = vweird.f32 %v2603_v15 }
 0x495   :  { %v2701_v34 = vmul.f32 %v4510_v2, %v2700_v51 }
 0x497   :  { %v2702_v5 = vmul.f32 0.5, %v2701_v34 }
 0x499   :  { %v2703_v10 = vsub.f32 1.5, %v2702_v5 }
 0x49a   :  { %v4512_v16 = vpop.eup %4511 }
 0x49b   :  { %v2704_v37 = vmul.f32 %v4510_v2, %v2703_v10  ;;  %v2710_v12 = vmul.f32 %v4512_v16, %v2603_v15  ;;  %vm2716_vm1 = vweird.f32 %v4512_v16 }
 0x49c   :  { %vm2717_vm3 = vmor %vm2715_vm2, %vm2716_vm1 }
 0x49d   :  { %v2708_v9 = vsel %vm2707_vm0, %v4510_v2, %v2704_v37  ;;  %v2711_v20 = vmul.f32 %v4512_v16, %v2710_v12 }
 0x49e   :  { %v2787_v49 = vmul.f32 %v2708_v9, %v6596_v21  ;;  %v2788_v3 = vmul.f32 %v2708_v9, %v6599_v45 }
 0x49f   :  { %v2712_v22 = vmul.f32 0.5, %v2711_v20  ;;  %v2894_v20 = vmul.f32 0.5, %v6935_v61 }
 0x4a0   :  { %v2564_v26 = vpop.xlane.xlu0 %2563  ;;  %v2825_v55 = vmul.f32 %v6621_v33, %v2787_v49  ;;  %v2826_v23 = vmul.f32 %v6623_v48, %v2788_v3  ;;  %v2893_v3 = vmul.f32 0.5, %v6932_v18 }
 0x4a1   :  { %v2588_v0 = vmul.f32 %v2564_v26, %v6420_v17  ;;  %v2713_v21 = vsub.f32 1.5, %v2712_v22 }
 0x4a2   :  { %v6952_v24 = vadd.f32 %v6629_v13, %v2825_v55  ;;  %v6955_v28 = vadd.f32 %v6631_v30, %v2826_v23 }
 0x4a3   :  { %v2604_v19 = vadd.f32 1e-06, %v2588_v0  ;;  %v2714_v45 = vmul.f32 %v4512_v16, %v2713_v21 }
 0x4a4   :  { %v2927_v40 = vmul.f32 0.044715, %v6952_v24  ;;  %v2928_v32 = vmul.f32 0.044715, %v6955_v28 }
 0x4a5   :  { %4513 = vrsqrt.f32 %v2604_v19  ;;  %v2718_v47 = vsel %vm2717_vm3, %v4512_v16, %v2714_v45  ;;  %vm2725_vm5 = vweird.f32 %v2604_v19 }
 0x4a6   :  { %4515 = vtanh.f32 %v3053_v41  ;;  %v2959_v58 = vmul.f32 %v2927_v40, %v6952_v24  ;;  %v2789_v8 = vmul.f32 %v2718_v47, %v6616_v46  ;;  %v2790_v56 = vmul.f32 %v2718_v47, %v6619_v62 }
 0x4a7   :  { %4517 = vtanh.f32 %v3054_v25  ;;  %v2960_v50 = vmul.f32 %v2928_v32, %v6955_v28 }
 0x4a8   :  { %v2567_v7 = vpop.xlane.xlu1 %2566  ;;  %v2991_v29 = vmul.f32 %v2959_v58, %v6952_v24  ;;  %v2827_v31 = vmul.f32 %v6621_v33, %v2789_v8  ;;  %v2828_v36 = vmul.f32 %v6623_v48, %v2790_v56  ;;  %v2896_v8 = vmul.f32 0.5, %v6955_v28 }
 0x4a9   :  { %v2589_v53 = vmul.f32 %v2567_v7, %v6420_v17  ;;  %v2992_v46 = vmul.f32 %v2960_v50, %v6955_v28 }
 0x4aa   :  { %v3023_v51 = vadd.f32 %v2991_v29, %v6952_v24  ;;  %v6973_v62 = vadd.f32 %v6629_v13, %v2827_v31  ;;  %v6976_v34 = vadd.f32 %v6631_v30, %v2828_v36 }
 0x4ab   :  { %v4514_v60 = vpop.eup %4513  ;;  %v6964_v44 = vadd.f32 1e-06, %v2589_v53  ;;  %v3024_v10 = vadd.f32 %v2992_v46, %v6955_v28 }
 0x4ac   :  { %v2720_v2 = vmul.f32 %v4514_v60, %v2604_v19  ;;  %v4516_v15 = vpop.eup %4515  ;;  %v3055_v5 = vmul.f32 0.7978846, %v3023_v51  ;;  %v2929_v16 = vmul.f32 0.044715, %v6973_v62  ;;  %v2930_v9 = vmul.f32 0.044715, %v6976_v34 }
 0x4ad   :  { %4519 = vrsqrt.f32 %v6964_v44  ;;  %v4518_v63 = vpop.eup %4517  ;;  %v3117_v37 = vadd.f32 1.0, %v4516_v15  ;;  %v3056_v12 = vmul.f32 0.7978846, %v3024_v10  ;;  %vm2726_vm4 = vweird.f32 %v4514_v60 }
 0x4ae   :  { %v2721_v27 = vmul.f32 %v4514_v60, %v2720_v2  ;;  %4521 = vtanh.f32 %v3055_v5  ;;  %v3118_v4 = vadd.f32 1.0, %v4518_v63  ;;  %v2961_v57 = vmul.f32 %v2929_v16, %v6973_v62  ;;  %vm2727_vm6 = vmor %vm2725_vm5, %vm2726_vm4 }
 0x4af   :  { %4523 = vtanh.f32 %v3056_v12  ;;  %v2962_v0 = vmul.f32 %v2930_v9, %v6976_v34  ;;  %v3149_v41 = vmul.f32 %v3117_v37, %v2893_v3  ;;  %v2895_v19 = vmul.f32 0.5, %v6952_v24 }
 0x4b0   :  { %v2722_v39 = vmul.f32 0.5, %v2721_v27  ;;  %v2993_v22 = vmul.f32 %v2961_v57, %v6973_v62  ;;  %v3150_v40 = vmul.f32 %v3118_v4, %v2894_v20  ;;  %vm2735_vm8 = vweird.f32 %v6964_v44  ;;  %v7025_v4 = vld [vmem:[%s7237_s14] ss:$0 sm:$0xff] }
 0x4b1   :  { %v2994_v7 = vmul.f32 %v2962_v0, %v6976_v34 }
 0x4b2   :  { %v2723_v26 = vsub.f32 1.5, %v2722_v39  ;;  %v3025_v56 = vadd.f32 %v2993_v22, %v6973_v62 }
 0x4b3   :  { %v4520_v49 = vpop.eup %4519  ;;  %v3026_v2 = vadd.f32 %v2994_v7, %v6976_v34 }
 0x4b4   :  { %v2724_v55 = vmul.f32 %v4514_v60, %v2723_v26  ;;  %v2730_v23 = vmul.f32 %v4520_v49, %v6964_v44  ;;  %v4522_v18 = vpop.eup %4521  ;;  %vm2736_vm7 = vweird.f32 %v4520_v49  ;;  %v3057_v27 = vmul.f32 0.7978846, %v3025_v56  ;;  %v7020_v26 = vld [vmem:[%s7235_s12] ss:$0 sm:$0xff] }
 0x4b5   :  { %v3119_v58 = vadd.f32 1.0, %v4522_v18  ;;  %v4524_v50 = vpop.eup %4523  ;;  %vm2737_vm9 = vmor %vm2735_vm8, %vm2736_vm7  ;;  %v3058_v16 = vmul.f32 0.7978846, %v3026_v2  ;;  %v2897_v2 = vmul.f32 0.5, %v6973_v62 }
 0x4b6   :  { %v2728_v25 = vsel %vm2727_vm6, %v4514_v60, %v2724_v55  ;;  %v2731_v21 = vmul.f32 %v4520_v49, %v2730_v23  ;;  %v3120_v36 = vadd.f32 1.0, %v4524_v50 }
 0x4b7   :  { %v2570_v45 = vpop.xlane.xlu2 %2569  ;;  %v2791_v61 = vmul.f32 %v2728_v25, %v6663_v1  ;;  %v2792_v32 = vmul.f32 %v2728_v25, %v6666_v54  ;;  %v3151_v54 = vmul.f32 %v3119_v58, %v2895_v19 }
 0x4b8   :  { %v2590_v47 = vmul.f32 %v2570_v45, %v6420_v17  ;;  %v2732_v53 = vmul.f32 0.5, %v2731_v21  ;;  %v3152_v15 = vmul.f32 %v3120_v36, %v2896_v8 }
 0x4b9   :  { %v2829_v60 = vmul.f32 %v6621_v33, %v2791_v61  ;;  %v2830_v29 = vmul.f32 %v6623_v48, %v2792_v32  ;;  %v3173_v46 = vpack.c.bf16 %v3151_v54, %v3149_v41 }
 0x4ba   :  { %v7000_v31 = vadd.f32 1e-06, %v2590_v47  ;;  %v2733_v1 = vsub.f32 1.5, %v2732_v53  ;;  %v3174_v59 = vpack.c.bf16 %v3152_v15, %v3150_v40  ;;  %v3521_v23 = vpop.f32.mrf.mxu2 }
 0x4bb   :  { %v7004_v24 = vadd.f32 %v6629_v13, %v2829_v60  ;;  %v7007_v28 = vadd.f32 %v6631_v30, %v2830_v29  ;;  %3341 = vmatmul.bf16.gmra.mxu0 %v3173_v46  ;;  %v3522_v18 = vadd.f32 %v7025_v4, %v3521_v23 }
 0x4bc   :  { %4525 = vrsqrt.f32 %v7000_v31  ;;  %v2734_v51 = vmul.f32 %v4520_v49, %v2733_v1  ;;  %3390 = vmatmul.bf16.gmra.mxu1 %v3174_v59  ;;  %vm2745_vm11 = vweird.f32 %v7000_v31 }
 0x4bd   :  { %v2931_v63 = vmul.f32 0.044715, %v7004_v24  ;;  %v2932_v5 = vmul.f32 0.044715, %v7007_v28  ;;  %4527 = vtanh.f32 %v3057_v27  ;;  %v2899_v62 = vmul.f32 0.5, %v7004_v24 }
 0x4be   :  { %v2738_v10 = vsel %vm2737_vm9, %v4520_v49, %v2734_v51  ;;  %4529 = vtanh.f32 %v3058_v16 }
 0x4bf   :  { %v2573_v39 = vpop.xlane.xlu0 %2572  ;;  %v2793_v37 = vmul.f32 %v2738_v10, %v6692_v35  ;;  %v2794_v44 = vmul.f32 %v2738_v10, %v6695_v52  ;;  %v2963_v9 = vmul.f32 %v2931_v63, %v7004_v24  ;;  %v4292_v35 = vld [vmem:[%s7224_s1 + $0x28] sm:$0xff]  ;;  %v2964_v52 = vmul.f32 %v2932_v5, %v7007_v28 }
 0x4c0   :  { %v2591_v12 = vmul.f32 %v2573_v39, %v6420_v17  ;;  %4156 = vmatmul.msk.bf16.gmra.mxu2 %vm3487_vm14, %v4292_v35  ;;  %v2898_v10 = vmul.f32 0.5, %v6976_v34  ;;  %v2900_v39 = vmul.f32 0.5, %v7007_v28 }
 0x4c1   :  { %v2831_v49 = vmul.f32 %v6621_v33, %v2793_v37  ;;  %v2832_v3 = vmul.f32 %v6623_v48, %v2794_v44  ;;  %v2995_v0 = vmul.f32 %v2963_v9, %v7004_v24  ;;  %v2996_v22 = vmul.f32 %v2964_v52, %v7007_v28 }
 0x4c2   :  { %v4526_v57 = vpop.eup %4525  ;;  %v7033_v20 = vadd.f32 1e-06, %v2591_v12  ;;  %v3322_v21 = vpop.f32.mrf.mxu0 }
 0x4c3   :  { %v2740_v55 = vmul.f32 %v4526_v57, %v7000_v31  ;;  %v7040_v41 = vadd.f32 %v6629_v13, %v2831_v49  ;;  %v7043_v25 = vadd.f32 %v6631_v30, %v2832_v3  ;;  %v3323_v40 = vadd.f32 %v7020_v26, %v3322_v21  ;;  %v3371_v7 = vpop.f32.mrf.mxu1  ;;  %v4528_v47 = vpop.eup %4527 }
 0x4c4   :  { %4531 = vrsqrt.f32 %v7033_v20  ;;  %v3027_v61 = vadd.f32 %v2995_v0, %v7004_v24  ;;  %v3028_v32 = vadd.f32 %v2996_v22, %v7007_v28  ;;  %vm2746_vm10 = vweird.f32 %v4526_v57  ;;  %v4530_v60 = vpop.eup %4529  ;;  %v3523_v27 = vpop.f32.mrf.mxu2 }
 0x4c5   :  { %v2741_v45 = vmul.f32 %v4526_v57, %v2740_v55  ;;  %v3372_v53 = vadd.f32 %v3371_v7, %v3323_v40  ;;  %v2933_v8 = vmul.f32 0.044715, %v7040_v41  ;;  %v2934_v50 = vmul.f32 0.044715, %v7043_v25  ;;  %vm2747_vm12 = vmor %vm2745_vm11, %vm2746_vm10 }
 0x4c6   :  { %v3059_v58 = vmul.f32 0.7978846, %v3027_v61  ;;  %v3060_v56 = vmul.f32 0.7978846, %v3028_v32  ;;  %v3121_v51 = vadd.f32 1.0, %v4528_v47  ;;  %v3524_v44 = vadd.f32 %v7025_v4, %v3523_v27 }
 0x4c7   :  { %v2742_v19 = vmul.f32 0.5, %v2741_v45  ;;  %v3561_v1 = vadd.f32 %v3522_v18, %v3372_v53  ;;  %v2965_v54 = vmul.f32 %v2933_v8, %v7040_v41  ;;  %v2966_v63 = vmul.f32 %v2934_v50, %v7043_v25 }
 0x4c8   :  { %4533 = vtanh.f32 %v3059_v58  ;;  %v3153_v52 = vmul.f32 %v3121_v51, %v2897_v2  ;;  %v3122_v49 = vadd.f32 1.0, %v4530_v60  ;;  %vm2755_vm15 = vweird.f32 %v7033_v20 }
 0x4c9   :  { %v2743_v29 = vsub.f32 1.5, %v2742_v19  ;;  %4535 = vtanh.f32 %v3060_v56  ;;  %3577 = vst.msk [vmem:[%s7238_s15] sm:$0xff] %vm3487_vm14, %v3561_v1  ;;  %v2997_v31 = vmul.f32 %v2965_v54, %v7040_v41  ;;  %v2998_v0 = vmul.f32 %v2966_v63, %v7043_v25 }
 0x4ca   :  { %v4532_v36 = vpop.eup %4531  ;;  %v3324_v5 = vpop.f32.mrf.mxu0 }
 0x4cb   :  { %v2744_v46 = vmul.f32 %v4526_v57, %v2743_v29  ;;  %v2750_v15 = vmul.f32 %v4532_v36, %v7033_v20  ;;  %v3325_v37 = vadd.f32 %v7020_v26, %v3324_v5  ;;  %v3373_v35 = vpop.f32.mrf.mxu1  ;;  %vm2756_vm13 = vweird.f32 %v4532_v36 }
 0x4cc   :  { %v3029_v7 = vadd.f32 %v2997_v31, %v7040_v41  ;;  %vm2757_vm0 = vmor %vm2755_vm15, %vm2756_vm13  ;;  %v3030_v8 = vadd.f32 %v2998_v0, %v7043_v25 }
 0x4cd   :  { %v2748_v59 = vsel %vm2747_vm12, %v4526_v57, %v2744_v46  ;;  %v2751_v16 = vmul.f32 %v4532_v36, %v2750_v15  ;;  %v3374_v28 = vadd.f32 %v3373_v35, %v3325_v37  ;;  %v4293_v57 = vld [vmem:[%s7224_s1 + $0x30] sm:$0xff] }
 0x4ce   :  { %v2795_v12 = vmul.f32 %v2748_v59, %v6758_v38  ;;  %v2796_v9 = vmul.f32 %v2748_v59, %v6761_v42  ;;  %v4534_v24 = vpop.eup %4533  ;;  %v3526_v1 = vpop.f32.mrf.mxu2  ;;  %v3061_v54 = vmul.f32 0.7978846, %v3029_v7  ;;  %v3062_v63 = vmul.f32 0.7978846, %v3030_v8 }
 0x4cf   :  { %v2752_v3 = vmul.f32 0.5, %v2751_v16  ;;  %v2576_v34 = vpop.xlane.xlu1 %2575  ;;  %v4536_v55 = vpop.eup %4535  ;;  %v3123_v22 = vadd.f32 1.0, %v4534_v24  ;;  %v3562_v45 = vadd.f32 %v3524_v44, %v3374_v28  ;;  %v3527_v59 = vadd.f32 %v7025_v4, %v3526_v1 }
 0x4d0   :  { %v2833_v23 = vmul.f32 %v6621_v33, %v2795_v12  ;;  %v2834_v38 = vmul.f32 %v6623_v48, %v2796_v9  ;;  %v2592_v42 = vmul.f32 %v2576_v34, %v6420_v17  ;;  %v3124_v40 = vadd.f32 1.0, %v4536_v55  ;;  %4157 = vmatmul.msk.bf16.gmra.mxu2 %vm3487_vm14, %v4293_v57  ;;  %v4294_v34 = vld [vmem:[%s7224_s1 + $0x38] sm:$0xff] }
 0x4d1   :  { %v2753_v21 = vsub.f32 1.5, %v2752_v3  ;;  %v3155_v47 = vmul.f32 %v3123_v22, %v2899_v62  ;;  %3578 = vst.msk [vmem:[%s7238_s15 + $0x8] sm:$0xff] %vm3487_vm14, %v3562_v45  ;;  %v3154_v17 = vmul.f32 %v3122_v49, %v2898_v10 }
 0x4d2   :  { %v7079_v18 = vadd.f32 %v6629_v13, %v2833_v23  ;;  %v7082_v61 = vadd.f32 %v6631_v30, %v2834_v38  ;;  %v7084_v32 = vadd.f32 1e-06, %v2592_v42  ;;  %v3156_v53 = vmul.f32 %v3124_v40, %v2900_v39 }
 0x4d3   :  { %v2754_v19 = vmul.f32 %v4532_v36, %v2753_v21  ;;  %v3175_v58 = vpack.c.bf16 %v3155_v47, %v3153_v52  ;;  %v2901_v47 = vmul.f32 0.5, %v7040_v41 }
 0x4d4   :  { %4537 = vrsqrt.f32 %v7084_v32  ;;  %v3176_v50 = vpack.c.bf16 %v3156_v53, %v3154_v17  ;;  %v2935_v20 = vmul.f32 0.044715, %v7079_v18  ;;  %v2936_v2 = vmul.f32 0.044715, %v7082_v61 }
 0x4d5   :  { %v2758_v56 = vsel %vm2757_vm0, %v4532_v36, %v2754_v19  ;;  %3346 = vmatmul.bf16.gmra.mxu0 %v3175_v58  ;;  %4539 = vtanh.f32 %v3061_v54  ;;  %vm2765_vm2 = vweird.f32 %v7084_v32  ;;  %v2902_v17 = vmul.f32 0.5, %v7043_v25 }
 0x4d6   :  { %v2797_v60 = vmul.f32 %v2758_v56, %v6795_v14  ;;  %v2798_v29 = vmul.f32 %v2758_v56, %v6798_v43  ;;  %3395 = vmatmul.bf16.gmra.mxu1 %v3176_v50  ;;  %v2967_v51 = vmul.f32 %v2935_v20, %v7079_v18  ;;  %v3327_v36 = vpop.f32.mrf.mxu0  ;;  %v2968_v27 = vmul.f32 %v2936_v2, %v7082_v61  ;;  %v3528_v55 = vpop.f32.mrf.mxu2 }
 0x4d7   :  { %v3328_v14 = vadd.f32 %v7020_v26, %v3327_v36  ;;  %4541 = vtanh.f32 %v3062_v63  ;;  %v3529_v45 = vadd.f32 %v7025_v4, %v3528_v55  ;;  %v2903_v56 = vmul.f32 0.5, %v7079_v18 }
 0x4d8   :  { %v2835_v46 = vmul.f32 %v6621_v33, %v2797_v60  ;;  %v2836_v15 = vmul.f32 %v6623_v48, %v2798_v29  ;;  %v2999_v43 = vmul.f32 %v2967_v51, %v7079_v18  ;;  %v3000_v10 = vmul.f32 %v2968_v27, %v7082_v61 }
 0x4d9   :  { %v2904_v41 = vmul.f32 0.5, %v7082_v61 }
 0x4da   :  { %v4538_v5 = vpop.eup %4537  ;;  %v7106_v62 = vadd.f32 %v6629_v13, %v2835_v46  ;;  %v7110_v39 = vadd.f32 %v6631_v30, %v2836_v15  ;;  %v3031_v16 = vadd.f32 %v2999_v43, %v7079_v18  ;;  %v3032_v44 = vadd.f32 %v3000_v10, %v7082_v61 }
 0x4db   :  { %v2760_v31 = vmul.f32 %v4538_v5, %v7084_v32  ;;  %v3376_v37 = vpop.f32.mrf.mxu1  ;;  %v4540_v57 = vpop.eup %4539  ;;  %vm2766_vm1 = vweird.f32 %v4538_v5 }
 0x4dc   :  { %v3377_v9 = vadd.f32 %v3376_v37, %v3328_v14  ;;  %v3063_v35 = vmul.f32 0.7978846, %v3031_v16  ;;  %v3064_v52 = vmul.f32 0.7978846, %v3032_v44  ;;  %v2937_v49 = vmul.f32 0.044715, %v7106_v62  ;;  %vm2767_vm3 = vmor %vm2765_vm2, %vm2766_vm1 }
 0x4dd   :  { %v2761_v12 = vmul.f32 %v4538_v5, %v2760_v31  ;;  %v2938_v28 = vmul.f32 0.044715, %v7110_v39  ;;  %v4542_v42 = vpop.eup %4541  ;;  %v3125_v19 = vadd.f32 1.0, %v4540_v57 }
 0x4de   :  { %v3563_v3 = vadd.f32 %v3527_v59, %v3377_v9  ;;  %4543 = vtanh.f32 %v3063_v35  ;;  %v3329_v0 = vpop.f32.mrf.mxu0  ;;  %v2969_v22 = vmul.f32 %v2937_v49, %v7106_v62  ;;  %v3126_v50 = vadd.f32 1.0, %v4542_v42  ;;  %v3531_v63 = vpop.f32.mrf.mxu2 }
 0x4df   :  { %v2762_v24 = vmul.f32 0.5, %v2761_v12  ;;  %4545 = vtanh.f32 %v3064_v52  ;;  %v3330_v38 = vadd.f32 %v7020_v26, %v3329_v0  ;;  %v2970_v40 = vmul.f32 %v2938_v28, %v7110_v39 }
 0x4e0   :  { %3579 = vst.msk [vmem:[%s7238_s15 + $0x10] sm:$0xff] %vm3487_vm14, %v3563_v3  ;;  %4158 = vmatmul.msk.bf16.gmra.mxu2 %vm3487_vm14, %v4294_v34  ;;  %v3001_v1 = vmul.f32 %v2969_v22, %v7106_v62  ;;  %v3157_v18 = vmul.f32 %v3125_v19, %v2901_v47  ;;  %v2905_v19 = vmul.f32 0.5, %v7106_v62 }
 0x4e1   :  { %v2763_v23 = vsub.f32 1.5, %v2762_v24  ;;  %v3002_v25 = vmul.f32 %v2970_v40, %v7110_v39 }
 0x4e2   :  { %v3033_v14 = vadd.f32 %v3001_v1, %v7106_v62 }
 0x4e3   :  { %v2764_v21 = vmul.f32 %v4538_v5, %v2763_v23  ;;  %v3378_v7 = vpop.f32.mrf.mxu1 }
 0x4e4   :  { %v4544_v53 = vpop.eup %4543  ;;  %v3379_v8 = vadd.f32 %v3378_v7, %v3330_v38  ;;  %v3065_v59 = vmul.f32 0.7978846, %v3033_v14 }
 0x4e5   :  { %v2768_v58 = vsel %vm2767_vm3, %v4538_v5, %v2764_v21  ;;  %v4546_v32 = vpop.eup %4545  ;;  %v3127_v29 = vadd.f32 1.0, %v4544_v53 }
 0x4e6   :  { %v2799_v20 = vmul.f32 %v2768_v58, %v6850_v11  ;;  %v2800_v60 = vmul.f32 %v2768_v58, %v6853_v6  ;;  %v3564_v54 = vadd.f32 %v3529_v45, %v3379_v8  ;;  %v3128_v2 = vadd.f32 1.0, %v4546_v32  ;;  %v3533_v3 = vpop.f32.mrf.mxu2 }
 0x4e7   :  { %v3159_v15 = vmul.f32 %v3127_v29, %v2903_v56  ;;  %v3158_v11 = vmul.f32 %v3126_v50, %v2902_v17  ;;  %4547 = vtanh.f32 %v3065_v59  ;;  %v3534_v55 = vadd.f32 %v7025_v4, %v3533_v3 }
 0x4e8   :  { %v2837_v51 = vmul.f32 %v6621_v33, %v2799_v20  ;;  %v2838_v46 = vmul.f32 %v6623_v48, %v2800_v60  ;;  %3580 = vst.msk [vmem:[%s7238_s15 + $0x18] sm:$0xff] %vm3487_vm14, %v3564_v54  ;;  %v3160_v6 = vmul.f32 %v3128_v2, %v2904_v41  ;;  %v3034_v48 = vadd.f32 %v3002_v25, %v7110_v39 }
 0x4e9   :  { %v3177_v27 = vpack.c.bf16 %v3159_v15, %v3157_v18  ;;  %v2906_v58 = vmul.f32 0.5, %v7110_v39 }
 0x4ea   :  { %v2875_v36 = vadd.f32 %v6629_v13, %v2837_v51  ;;  %v2876_v61 = vadd.f32 %v6631_v30, %v2838_v46  ;;  %v3178_v33 = vpack.c.bf16 %v3160_v6, %v3158_v11  ;;  %v3532_v13 = vadd.f32 %v7025_v4, %v3531_v63 }
 0x4eb   :  { %3351 = vmatmul.bf16.gmra.mxu0 %v3177_v27  ;;  %v3066_v30 = vmul.f32 0.7978846, %v3034_v48 }
 0x4ec   :  { %v2939_v43 = vmul.f32 0.044715, %v2875_v36  ;;  %3400 = vmatmul.bf16.gmra.mxu1 %v3178_v33  ;;  %v2940_v5 = vmul.f32 0.044715, %v2876_v61  ;;  %v2907_v17 = vmul.f32 0.5, %v2875_v36  ;;  %v2908_v8 = vmul.f32 0.5, %v2876_v61 }
 0x4ed   :  { %v3332_v10 = vpop.f32.mrf.mxu0  ;;  %4549 = vtanh.f32 %v3066_v30  ;;  %v4548_v23 = vpop.eup %4547 }
 0x4ee   :  { %v2971_v31 = vmul.f32 %v2939_v43, %v2875_v36  ;;  %v3333_v16 = vadd.f32 %v7020_v26, %v3332_v10  ;;  %v2972_v37 = vmul.f32 %v2940_v5, %v2876_v61  ;;  %v3381_v44 = vpop.f32.mrf.mxu1  ;;  %v3129_v45 = vadd.f32 1.0, %v4548_v23  ;;  %v3536_v29 = vpop.f32.mrf.mxu2 }
 0x4ef   :  { %v3537_v62 = vadd.f32 %v7025_v4, %v3536_v29 }
 0x4f0   :  { %v3003_v12 = vmul.f32 %v2971_v31, %v2875_v36  ;;  %v3382_v9 = vadd.f32 %v3381_v44, %v3333_v16  ;;  %v3004_v35 = vmul.f32 %v2972_v37, %v2876_v61  ;;  %v3161_v50 = vmul.f32 %v3129_v45, %v2905_v19 }
 0x4f2   :  { %v3035_v52 = vadd.f32 %v3003_v12, %v2875_v36  ;;  %v3565_v49 = vadd.f32 %v3532_v13, %v3382_v9  ;;  %v3036_v24 = vadd.f32 %v3004_v35, %v2876_v61 }
 0x4f3   :  { %v4550_v42 = vpop.eup %4549 }
 0x4f4   :  { %v3067_v34 = vmul.f32 0.7978846, %v3035_v52  ;;  %3581 = vst.msk [vmem:[%s7238_s15 + $0x20] sm:$0xff] %vm3487_vm14, %v3565_v49  ;;  %v3068_v28 = vmul.f32 0.7978846, %v3036_v24  ;;  %v3130_v7 = vadd.f32 1.0, %v4550_v42 }
 0x4f5   :  { %v3334_v57 = vpop.f32.mrf.mxu0 }
 0x4f6   :  { %4551 = vtanh.f32 %v3067_v34  ;;  %v3335_v0 = vadd.f32 %v7020_v26, %v3334_v57  ;;  %v3383_v38 = vpop.f32.mrf.mxu1  ;;  %v3162_v20 = vmul.f32 %v3130_v7, %v2906_v58  ;;  %v3538_v39 = vpop.f32.mrf.mxu2 }
 0x4f7   :  { %4553 = vtanh.f32 %v3068_v28  ;;  %v3539_v11 = vadd.f32 %v7025_v4, %v3538_v39 }
 0x4f8   :  { %v3384_v22 = vadd.f32 %v3383_v38, %v3335_v0 }
 0x4fa   :  { %v3566_v21 = vadd.f32 %v3534_v55, %v3384_v22 }
 0x4fc   :  { %v4552_v40 = vpop.eup %4551  ;;  %3582 = vst.msk [vmem:[%s7238_s15 + $0x28] sm:$0xff] %vm3487_vm14, %v3566_v21 }
 0x4fd   :  { %v4554_v47 = vpop.eup %4553  ;;  %v3131_v53 = vadd.f32 1.0, %v4552_v40 }
 0x4fe   :  { %v3132_v56 = vadd.f32 1.0, %v4554_v47 }
 0x4ff   :  { %v3163_v32 = vmul.f32 %v3131_v53, %v2907_v17 }
 0x500   :  { %v3164_v60 = vmul.f32 %v3132_v56, %v2908_v8 }
 0x501   :  { %v3179_v1 = vpack.c.bf16 %v3163_v32, %v3161_v50 }
 0x502   :  { %v3180_v54 = vpack.c.bf16 %v3164_v60, %v3162_v20 }
 0x503   :  { %3356 = vmatmul.bf16.gmra.mxu0 %v3179_v1 }
 0x504   :  { %3405 = vmatmul.bf16.gmra.mxu1 %v3180_v54  ;;  %v3337_v41 = vpop.f32.mrf.mxu0 }
 0x505   :  { %v3338_v2 = vadd.f32 %v7020_v26, %v3337_v41  ;;  %v3386_v25 = vpop.f32.mrf.mxu1 }
 0x507   :  { %v3387_v51 = vadd.f32 %v3386_v25, %v3338_v2 }
 0x508   :  { %v3541_v27 = vpop.f32.mrf.mxu2 }
 0x509   :  { %v3567_v46 = vadd.f32 %v3537_v62, %v3387_v51  ;;  %v3542_v14 = vadd.f32 %v7025_v4, %v3541_v27 }
 0x50b   :  { %3583 = vst.msk [vmem:[%s7238_s15 + $0x30] sm:$0xff] %vm3487_vm14, %v3567_v46 }
 0x50c   :  { %v3339_v18 = vpop.f32.mrf.mxu0 }
 0x50d   :  { %v3340_v15 = vadd.f32 %v7020_v26, %v3339_v18  ;;  %v3388_v6 = vpop.f32.mrf.mxu1 }
 0x50f   :  { %v3389_v36 = vadd.f32 %v3388_v6, %v3340_v15 }
 0x510   :  { %v3543_v10 = vpop.f32.mrf.mxu2 }
 0x511   :  { %v3568_v61 = vadd.f32 %v3539_v11, %v3389_v36  ;;  %v3544_v13 = vadd.f32 %v7025_v4, %v3543_v10 }
 0x513   :  { %3584 = vst.msk [vmem:[%s7238_s15 + $0x38] sm:$0xff] %vm3487_vm14, %v3568_v61 }
 0x538   :  { %v3342_v63 = vpop.f32.mrf.mxu0 }
 0x539   :  { %v3343_v33 = vadd.f32 %v7020_v26, %v3342_v63  ;;  %v3391_v48 = vpop.f32.mrf.mxu1 }
 0x53b   :  { %v3392_v43 = vadd.f32 %v3391_v48, %v3343_v33 }
 0x53d   :  { %v3569_v5 = vadd.f32 %v3542_v14, %v3392_v43 }
 0x53f   :  { %3585 = vst.msk [vmem:[%s7238_s15 + $0x40] sm:$0xff] %vm3487_vm14, %v3569_v5 }
 0x540   :  { %v3344_v31 = vpop.f32.mrf.mxu0 }
 0x541   :  { %v3345_v59 = vadd.f32 %v7020_v26, %v3344_v31  ;;  %v3393_v16 = vpop.f32.mrf.mxu1 }
 0x543   :  { %v3394_v37 = vadd.f32 %v3393_v16, %v3345_v59  ;;  %v3546_v44 = vpop.f32.mrf.mxu2 }
 0x544   :  { %v3547_v9 = vadd.f32 %v7025_v4, %v3546_v44 }
 0x545   :  { %v3570_v30 = vadd.f32 %v3544_v13, %v3394_v37 }
 0x547   :  { %3586 = vst.msk [vmem:[%s7238_s15 + $0x48] sm:$0xff] %vm3487_vm14, %v3570_v30 }
 0x54b   :  { %v3548_v3 = vpop.f32.mrf.mxu2 }
 0x54c   :  { %v3549_v0 = vadd.f32 %v7025_v4, %v3548_v3 }
 0x552   :  { %v3347_v12 = vpop.f32.mrf.mxu0 }
 0x553   :  { %v3348_v35 = vadd.f32 %v7020_v26, %v3347_v12  ;;  %v3396_v52 = vpop.f32.mrf.mxu1  ;;  %v3551_v38 = vpop.f32.mrf.mxu2 }
 0x554   :  { %v3552_v22 = vadd.f32 %v7025_v4, %v3551_v38 }
 0x555   :  { %v3397_v49 = vadd.f32 %v3396_v52, %v3348_v35 }
 0x557   :  { %v3571_v24 = vadd.f32 %v3547_v9, %v3397_v49 }
 0x559   :  { %3587 = vst.msk [vmem:[%s7238_s15 + $0x50] sm:$0xff] %vm3487_vm14, %v3571_v24 }
 0x55a   :  { %v3349_v34 = vpop.f32.mrf.mxu0 }
 0x55b   :  { %v3350_v28 = vadd.f32 %v7020_v26, %v3349_v34  ;;  %v3398_v57 = vpop.f32.mrf.mxu1  ;;  %v3553_v47 = vpop.f32.mrf.mxu2 }
 0x55c   :  { %v3554_v58 = vadd.f32 %v7025_v4, %v3553_v47 }
 0x55d   :  { %v3399_v55 = vadd.f32 %v3398_v57, %v3350_v28 }
 0x55f   :  { %v3572_v23 = vadd.f32 %v3549_v0, %v3399_v55 }
 0x561   :  { %3588 = vst.msk [vmem:[%s7238_s15 + $0x58] sm:$0xff] %vm3487_vm14, %v3572_v23 }
 0x563   :  { %v3556_v50 = vpop.f32.mrf.mxu2 }
 0x564   :  { %v3557_v20 = vadd.f32 %v7025_v4, %v3556_v50 }
 0x568   :  { %v3352_v42 = vpop.f32.mrf.mxu0 }
 0x569   :  { %v3353_v21 = vadd.f32 %v7020_v26, %v3352_v42  ;;  %v3401_v45 = vpop.f32.mrf.mxu1 }
 0x56b   :  { %v3402_v40 = vadd.f32 %v3401_v45, %v3353_v21  ;;  %v3558_v41 = vpop.f32.mrf.mxu2 }
 0x56c   :  { %v3559_v51 = vadd.f32 %v7025_v4, %v3558_v41 }
 0x56d   :  { %v3573_v7 = vadd.f32 %v3552_v22, %v3402_v40 }
 0x56f   :  { %3589 = vst.msk [vmem:[%s7238_s15 + $0x60] sm:$0xff] %vm3487_vm14, %v3573_v7 }
 0x570   :  { %v3354_v19 = vpop.f32.mrf.mxu0 }
 0x571   :  { %v3355_v17 = vadd.f32 %v7020_v26, %v3354_v19  ;;  %v3403_v53 = vpop.f32.mrf.mxu1 }
 0x573   :  { %v3404_v8 = vadd.f32 %v3403_v53, %v3355_v17 }
 0x575   :  { %v3574_v56 = vadd.f32 %v3554_v58, %v3404_v8 }
 0x577   :  { %3590 = vst.msk [vmem:[%s7238_s15 + $0x68] sm:$0xff] %vm3487_vm14, %v3574_v56 }
 0x580   :  { %v3357_v32 = vpop.f32.mrf.mxu0 }
 0x581   :  { %v3358_v60 = vadd.f32 %v7020_v26, %v3357_v32  ;;  %v3406_v29 = vpop.f32.mrf.mxu1 }
 0x583   :  { %v3407_v1 = vadd.f32 %v3406_v29, %v3358_v60 }
 0x585   :  { %v3575_v54 = vadd.f32 %v3557_v20, %v3407_v1 }
 0x587   :  { %3591 = vst.msk [vmem:[%s7238_s15 + $0x70] sm:$0xff] %vm3487_vm14, %v3575_v54 }
 0x588   :  { %v3359_v2 = vpop.f32.mrf.mxu0 }
 0x589   :  { %v3360_v25 = vadd.f32 %v7020_v26, %v3359_v2  ;;  %v3408_v62 = vpop.f32.mrf.mxu1 }
 0x58b   :  { %v3409_v46 = vadd.f32 %v3408_v62, %v3360_v25 }
 0x58d   :  { %v3576_v39 = vadd.f32 %v3559_v51, %v3409_v46 }
 0x58f   :  { %3592 = vst.msk [vmem:[%s7238_s15 + $0x78] sm:$0xff] %vm3487_vm14, %v3576_v39 }
 0x590   :  { %3597 = vsyncpa [#allocation3], 1 }
 0x591   :  { %3598 = vsyncpa [#allocation5], 1 }

</bundles_post_ra>
